<compile_context>
chip_gen: v7x
topology: tpu7x:2x2x1
jax: 0.10.0
libtpu: 0.0.40
codegen_flags: <defaults>
</compile_context>

<pallas_src>
import functools

import jax
import jax.numpy as jnp
from jax.experimental import pallas as pl
from jax.experimental.pallas import tpu as pltpu


# ----------------------------------------------------------------------------
# Parameter helpers (glue): fold eval-mode BatchNorm into the preceding conv.
# ----------------------------------------------------------------------------
_BN_EPS = 1e-5


def _fold_bn(w, b, gamma, beta, mean, var):
    """w: (cout, cin, kh, kw), b: (cout,)."""
    scale = gamma / jnp.sqrt(var + _BN_EPS)
    return w * scale.reshape(-1, 1, 1, 1), (b - mean) * scale + beta


def init_params(key, in_ch, out_ch):
    assert out_ch == 1, ("WindowTrunction.forward is only shape-consistent for "
                         "out_ch == 1 (CoordAtt(1, 1) expects 1 channel).")
    ks = iter(jax.random.split(key, 64))

    def nrm(shape, s=0.2):
        return s * jax.random.normal(next(ks), shape, jnp.float32)

    def uni(shape, lo, hi):
        return jax.random.uniform(next(ks), shape, jnp.float32, lo, hi)

    def bn(c):
        return dict(gamma=uni((c,), 0.8, 1.2), beta=nrm((c,), 0.05),
                    mean=nrm((c,), 0.1), var=uni((c,), 0.5, 1.5))

    p = {}

    # pre_conv: Conv2d(in_ch, 1, 1) + BN(1) + ReLU
    w, b = _fold_bn(nrm((1, in_ch, 1, 1)), nrm((1,)), **bn(1))
    p["pre_w"], p["pre_b"] = w.reshape(in_ch), b            # (in_ch,), (1,)

    # conv: [Conv2d(1,out_ch,3)+BN+ReLU], [Conv2d(out_ch,out_ch,3)+BN+ReLU]
    w1, b1 = _fold_bn(nrm((out_ch, 1, 3, 3)), nrm((out_ch,)), **bn(out_ch))
    w2, b2 = _fold_bn(nrm((out_ch, out_ch, 3, 3)), nrm((out_ch,)), **bn(out_ch))
    p["c1_w"], p["c1_b"] = w1.reshape(9), b1                # (9,), (1,)
    p["c2_w"], p["c2_b"] = w2.reshape(9), b2

    # coord_att = CoordAtt(1, 1): mip = max(8, 1 // 1) = 8; BN1 folded into conv1.
    mip = 8
    ca_w1 = nrm((mip, 1, 1, 1)).reshape(mip)
    ca_b1 = nrm((mip,))
    bn1 = bn(mip)
    scale = bn1["gamma"] / jnp.sqrt(bn1["var"] + _BN_EPS)
    p["ca_w1"] = ca_w1 * scale
    p["ca_b1"] = (ca_b1 - bn1["mean"]) * scale + bn1["beta"]
    p["ca_wh"], p["ca_bh"] = nrm((1, mip, 1, 1)).reshape(mip), nrm((1,))
    p["ca_ww"], p["ca_bw"] = nrm((1, mip, 1, 1)).reshape(mip), nrm((1,))

    # threshold MLP: Linear(1,1) -> ReLU -> Linear(1,1) -> Sigmoid => [w1,b1,w2,b2]
    p["t_mlp"] = jnp.stack([nrm(()), nrm(()), nrm(()), nrm(())])    # (4,)
    # (threshold_linear exists in __init__ but is unused by forward.)

    # post_conv: same structure as conv
    w3, b3 = _fold_bn(nrm((out_ch, 1, 3, 3)), nrm((out_ch,)), **bn(out_ch))
    w4, b4 = _fold_bn(nrm((out_ch, out_ch, 3, 3)), nrm((out_ch,)), **bn(out_ch))
    p["p1_w"], p["p1_b"] = w3.reshape(9), b3
    p["p2_w"], p["p2_b"] = w4.reshape(9), b4
    return p


# ----------------------------------------------------------------------------
# Packed scalar parameters: one SMEM array (single copy at kernel entry).
# ----------------------------------------------------------------------------
_SP_FIELDS = ("pre_w", "pre_b", "c1_w", "c1_b", "c2_w", "c2_b",
              "ca_bh", "ca_bw", "t_mlp", "p1_w", "p1_b", "p2_w", "p2_b")


def _param_offsets(cin):
    sizes = dict(pre_w=cin, pre_b=1, c1_w=9, c1_b=1, c2_w=9, c2_b=1,
                 ca_bh=1, ca_bw=1, t_mlp=4, p1_w=9, p1_b=1, p2_w=9, p2_b=1)
    off, i = {}, 0
    for f in _SP_FIELDS:
        off[f] = i
        i += sizes[f]
    return off, i


def _pack_params(p):
    sp = jnp.concatenate([p[f].reshape(-1).astype(jnp.float32) for f in _SP_FIELDS])
    # CoordAtt per-mip params in both layouts (mip along lanes / along sublanes)
    # so the vectorized CoordAtt needs no in-kernel transpose.
    ca_r = jnp.stack([p["ca_w1"], p["ca_b1"], p["ca_wh"], p["ca_ww"]]
                     ).astype(jnp.float32)                   # (4, mip)
    return sp, ca_r, ca_r.T                                  # (4,mip), (mip,4)


# ----------------------------------------------------------------------------
# Fused kernel: whole forward pass in one grid step.
# ----------------------------------------------------------------------------
def _fused_kernel(x_ref, sp_ref, ca_r_ref, ca_c_ref, o_ref, *, cin, H, W, N, off):
    # Only the 4 edge masks are kept live; corner taps get two selects.
    row = jax.lax.broadcasted_iota(jnp.int32, (H, W), 0)
    col = jax.lax.broadcasted_iota(jnp.int32, (H, W), 1)
    rmask = {-1: row >= 1, 0: None, 1: row <= H - 2}
    cmask = {-1: col >= 1, 0: None, 1: col <= W - 2}

    def conv3x3(img, wname, bname):
        """3x3 conv, 1->1 channel, zero padding 1, folded-BN bias included.
        pltpu.roll rides the XLU; masks kill the wrap-around."""
        w0 = off[wname]
        acc = jnp.full((H, W), sp_ref[off[bname]], jnp.float32)
        k = 0
        for oy in (-1, 0, 1):          # kernel row  ky = oy + 1
            for ox in (-1, 0, 1):      # kernel col  kx = ox + 1
                t = img
                if oy:
                    t = pltpu.roll(t, shift=(-oy) % H, axis=0)   # t[y,x]=img[y+oy,x]
                if ox:
                    t = pltpu.roll(t, shift=(-ox) % W, axis=1)   # t[y,x]=img[y,x+ox]
                if rmask[oy] is not None:
                    t = jnp.where(rmask[oy], t, 0.0)
                if cmask[ox] is not None:
                    t = jnp.where(cmask[ox], t, 0.0)
                acc = acc + sp_ref[w0 + k] * t
                k += 1
        return acc

    ca_r = ca_r_ref[...]               # (4, mip): rows = [w1, b1, wh, ww]
    ca_c = ca_c_ref[...]               # (mip, 4): cols = [w1, b1, wh, ww]

    # ---- phase A: per-sample residual tensor + per-sample threshold --------
    xrs = []
    tsum = None
    for n in range(N):
        # pre_conv: 1x1 conv (cin -> 1) + folded BN + ReLU
        acc = jnp.zeros((H, W), jnp.float32)
        for ci in range(cin):
            acc = acc + sp_ref[off["pre_w"] + ci] * x_ref[n, ci].astype(jnp.float32)
        x0 = jnp.maximum(acc + sp_ref[off["pre_b"]], 0.0)

        # x = x + self.conv(x): two [3x3 conv + BN + ReLU] blocks
        c1 = jnp.maximum(conv3x3(x0, "c1_w", "c1_b"), 0.0)
        xr = x0 + jnp.maximum(conv3x3(c1, "c2_w", "c2_b"), 0.0)
        xrs.append(xr)                 # stays in registers for phase B

        # CoordAtt(1,1) (.detach() is a forward no-op), vectorized over mip
        xh = jnp.mean(xr, axis=1, keepdims=True)        # (H, 1)  pool over W
        xw = jnp.mean(xr, axis=0, keepdims=True)        # (1, W)  pool over H
        yh = ca_r[0:1, :] * xh + ca_r[1:2, :]           # (H, mip)  conv1+BN1
        yh = yh * jnp.clip(yh + 3.0, 0.0, 6.0) * (1.0 / 6.0)        # h_swish
        a_h = jax.nn.sigmoid(jnp.sum(ca_r[2:3, :] * yh, axis=1, keepdims=True)
                             + sp_ref[off["ca_bh"]])    # (H, 1)  conv_h
        yw = ca_c[:, 0:1] * xw + ca_c[:, 1:2]           # (mip, W)
        yw = yw * jnp.clip(yw + 3.0, 0.0, 6.0) * (1.0 / 6.0)
        a_w = jax.nn.sigmoid(jnp.sum(ca_c[:, 3:4] * yw, axis=0, keepdims=True)
                             + sp_ref[off["ca_bw"]])    # (1, W)  conv_w

        # squeeze (global avg pool) + threshold MLP -> per-sample (1,1) value
        sq = jnp.mean(xr * a_w * a_h, keepdims=True)    # (1, 1)
        t0 = off["t_mlp"]
        t = jax.nn.sigmoid(
            jnp.maximum(sq * sp_ref[t0] + sp_ref[t0 + 1], 0.0) * sp_ref[t0 + 2]
            + sp_ref[t0 + 3])
        tsum = t if tsum is None else tsum + t

    # threshold_up.mean().item(): batch mean, kept on-device in registers.
    thr = tsum * (1.0 / N)                              # (1, 1)

    # ---- phase B: clamp + post_conv (two 3x3 conv + BN + ReLU) -------------
    for n in range(N):
        # torch.clamp(x, 1e-6, thr): max first, then min (thr < 1e-6 -> thr).
        xc = jnp.minimum(jnp.maximum(xrs[n], 1e-6), thr)
        y1 = jnp.maximum(conv3x3(xc, "p1_w", "p1_b"), 0.0)
        y2 = jnp.maximum(conv3x3(y1, "p2_w", "p2_b"), 0.0)
        o_ref[n, 0] = y2


# ----------------------------------------------------------------------------
# Full forward: one pallas_call, one grid step.
# ----------------------------------------------------------------------------
def window_trunction(p, x):
    N, cin, H, W = x.shape
    mip = int(p["ca_w1"].shape[0])
    off, _ = _param_offsets(cin)
    sp, ca_r, ca_c = _pack_params(p)
    kernel = functools.partial(_fused_kernel, cin=cin, H=H, W=W, N=N, off=off)
    smem = pl.BlockSpec(memory_space=pltpu.MemorySpace.SMEM)
    return pl.pallas_call(
        kernel,
        out_shape=jax.ShapeDtypeStruct((N, 1, H, W), jnp.float32),
        grid=(1,),
        in_specs=[
            pl.BlockSpec((N, cin, H, W), lambda i: (0, 0, 0, 0)),   # x
            smem,                                                    # packed scalars
            pl.BlockSpec((4, mip), lambda i: (0, 0)),                # CoordAtt (rows)
            pl.BlockSpec((mip, 4), lambda i: (0, 0)),                # CoordAtt (cols)
        ],
        out_specs=pl.BlockSpec((N, 1, H, W), lambda i: (0, 0, 0, 0)),
        compiler_params=pltpu.CompilerParams(dimension_semantics=("arbitrary",)),
    )(x.astype(jnp.float32), sp, ca_r, ca_c)


if __name__ == "__main__":
    N, in_ch, out_ch, H, W = 2, 4, 1, 16, 16   # out_ch must be 1 (see header)
    key = jax.random.PRNGKey(0)
    kx, kp = jax.random.split(key)
    x = jax.random.normal(kx, (N, in_ch, H, W), jnp.float32)
    params = init_params(kp, in_ch, out_ch)

    fwd = jax.jit(window_trunction)
    y = fwd(params, x)
    jax.block_until_ready(y)

    assert y.shape == (N, out_ch, H, W) and y.dtype == jnp.float32
    assert bool(jnp.all(jnp.isfinite(y)))
    print("KERNEL_OK")
</pallas_src>

<mosaic_0001>
module attributes {stable_mosaic.version = 11 : i64} {
  func.func @_fused_kernel(%arg0: i32, %arg1: memref<2x4x16x16xf32, #tpu.memory_space<vmem>>, %arg2: memref<51xf32, #tpu.memory_space<smem>>, %arg3: memref<4x8xf32, #tpu.memory_space<vmem>>, %arg4: memref<8x4xf32, #tpu.memory_space<vmem>>, %arg5: memref<2x1x16x16xf32, #tpu.memory_space<vmem>>) attributes {dimension_semantics = [#tpu.dimension_semantics<arbitrary>], iteration_bounds = array<i64: 1>, scalar_prefetch = 0 : i64, scratch_operands = 0 : i64, tpu.core_type = #tpu.core_type<tc>, window_params = [{pipeline_mode = #tpu.pipeline_mode<synchronous>, transform_indices = @transform_0, window_bounds = array<i64: 2, 4, 16, 16>}, {transform_indices = @transform_1, window_bounds = array<i64: 51>}, {pipeline_mode = #tpu.pipeline_mode<synchronous>, transform_indices = @transform_2, window_bounds = array<i64: 4, 8>}, {pipeline_mode = #tpu.pipeline_mode<synchronous>, transform_indices = @transform_3, window_bounds = array<i64: 8, 4>}, {pipeline_mode = #tpu.pipeline_mode<synchronous>, transform_indices = @transform_4, window_bounds = array<i64: 2, 1, 16, 16>}]} {
    %0 = tpu.iota {dimensions = array<i32: 0>} : vector<16x16xi32>
    %1 = tpu.iota {dimensions = array<i32: 1>} : vector<16x16xi32>
    %c1_i32 = arith.constant 1 : i32
    %2 = vector.broadcast %c1_i32 : i32 to vector<16x16xi32>
    %3 = arith.cmpi sge, %0, %2 : vector<16x16xi32>
    %c14_i32 = arith.constant 14 : i32
    %4 = vector.broadcast %c14_i32 : i32 to vector<16x16xi32>
    %5 = arith.cmpi sle, %0, %4 : vector<16x16xi32>
    %c1_i32_0 = arith.constant 1 : i32
    %6 = vector.broadcast %c1_i32_0 : i32 to vector<16x16xi32>
    %7 = arith.cmpi sge, %1, %6 : vector<16x16xi32>
    %c14_i32_1 = arith.constant 14 : i32
    %8 = vector.broadcast %c14_i32_1 : i32 to vector<16x16xi32>
    %9 = arith.cmpi sle, %1, %8 : vector<16x16xi32>
    %c0 = arith.constant 0 : index
    %c0_2 = arith.constant 0 : index
    %10 = vector.load %arg3[%c0, %c0_2] : memref<4x8xf32, #tpu.memory_space<vmem>>, vector<4x8xf32>
    %c0_3 = arith.constant 0 : index
    %c0_4 = arith.constant 0 : index
    %11 = vector.load %arg4[%c0_3, %c0_4] : memref<8x4xf32, #tpu.memory_space<vmem>>, vector<8x4xf32>
    %cst = arith.constant 0.000000e+00 : f32
    %12 = vector.broadcast %cst : f32 to vector<16x16xf32>
    %c0_5 = arith.constant 0 : index
    %13 = memref.load %arg2[%c0_5] : memref<51xf32, #tpu.memory_space<smem>>
    %c0_6 = arith.constant 0 : index
    %c0_7 = arith.constant 0 : index
    %c0_8 = arith.constant 0 : index
    %c0_9 = arith.constant 0 : index
    %14 = vector.load %arg1[%c0_6, %c0_7, %c0_8, %c0_9] : memref<2x4x16x16xf32, #tpu.memory_space<vmem>>, vector<1x1x16x16xf32>
    %15 = vector.shape_cast %14 : vector<1x1x16x16xf32> to vector<16x16xf32>
    %16 = vector.broadcast %13 : f32 to vector<16x16xf32>
    %17 = arith.mulf %16, %15 : vector<16x16xf32>
    %18 = arith.addf %12, %17 : vector<16x16xf32>
    %c1 = arith.constant 1 : index
    %19 = memref.load %arg2[%c1] : memref<51xf32, #tpu.memory_space<smem>>
    %c0_10 = arith.constant 0 : index
    %c1_11 = arith.constant 1 : index
    %c0_12 = arith.constant 0 : index
    %c0_13 = arith.constant 0 : index
    %20 = vector.load %arg1[%c0_10, %c1_11, %c0_12, %c0_13] : memref<2x4x16x16xf32, #tpu.memory_space<vmem>>, vector<1x1x16x16xf32>
    %21 = vector.shape_cast %20 : vector<1x1x16x16xf32> to vector<16x16xf32>
    %22 = vector.broadcast %19 : f32 to vector<16x16xf32>
    %23 = arith.mulf %22, %21 : vector<16x16xf32>
    %24 = arith.addf %18, %23 : vector<16x16xf32>
    %c2 = arith.constant 2 : index
    %25 = memref.load %arg2[%c2] : memref<51xf32, #tpu.memory_space<smem>>
    %c0_14 = arith.constant 0 : index
    %c2_15 = arith.constant 2 : index
    %c0_16 = arith.constant 0 : index
    %c0_17 = arith.constant 0 : index
    %26 = vector.load %arg1[%c0_14, %c2_15, %c0_16, %c0_17] : memref<2x4x16x16xf32, #tpu.memory_space<vmem>>, vector<1x1x16x16xf32>
    %27 = vector.shape_cast %26 : vector<1x1x16x16xf32> to vector<16x16xf32>
    %28 = vector.broadcast %25 : f32 to vector<16x16xf32>
    %29 = arith.mulf %28, %27 : vector<16x16xf32>
    %30 = arith.addf %24, %29 : vector<16x16xf32>
    %c3 = arith.constant 3 : index
    %31 = memref.load %arg2[%c3] : memref<51xf32, #tpu.memory_space<smem>>
    %c0_18 = arith.constant 0 : index
    %c3_19 = arith.constant 3 : index
    %c0_20 = arith.constant 0 : index
    %c0_21 = arith.constant 0 : index
    %32 = vector.load %arg1[%c0_18, %c3_19, %c0_20, %c0_21] : memref<2x4x16x16xf32, #tpu.memory_space<vmem>>, vector<1x1x16x16xf32>
    %33 = vector.shape_cast %32 : vector<1x1x16x16xf32> to vector<16x16xf32>
    %34 = vector.broadcast %31 : f32 to vector<16x16xf32>
    %35 = arith.mulf %34, %33 : vector<16x16xf32>
    %36 = arith.addf %30, %35 : vector<16x16xf32>
    %c4 = arith.constant 4 : index
    %37 = memref.load %arg2[%c4] : memref<51xf32, #tpu.memory_space<smem>>
    %38 = vector.broadcast %37 : f32 to vector<16x16xf32>
    %39 = arith.addf %36, %38 : vector<16x16xf32>
    %cst_22 = arith.constant 0.000000e+00 : f32
    %40 = vector.broadcast %cst_22 : f32 to vector<16x16xf32>
    %41 = arith.maximumf %39, %40 : vector<16x16xf32>
    %c14 = arith.constant 14 : index
    %42 = memref.load %arg2[%c14] : memref<51xf32, #tpu.memory_space<smem>>
    %43 = vector.broadcast %42 : f32 to vector<16x16xf32>
    %c1_i32_23 = arith.constant 1 : i32
    %44 = tpu.dynamic_rotate %41 by %c1_i32_23 dim 0 : vector<16x16xf32>, i32 -> vector<16x16xf32>
    %c1_i32_24 = arith.constant 1 : i32
    %45 = tpu.dynamic_rotate %44 by %c1_i32_24 dim 1 : vector<16x16xf32>, i32 -> vector<16x16xf32>
    %cst_25 = arith.constant 0.000000e+00 : f32
    %46 = vector.broadcast %cst_25 : f32 to vector<16x16xf32>
    %47 = arith.select %3, %45, %46 : vector<16x16xi1>, vector<16x16xf32>
    %cst_26 = arith.constant 0.000000e+00 : f32
    %48 = vector.broadcast %cst_26 : f32 to vector<16x16xf32>
    %49 = arith.select %7, %47, %48 : vector<16x16xi1>, vector<16x16xf32>
    %c5 = arith.constant 5 : index
    %50 = memref.load %arg2[%c5] : memref<51xf32, #tpu.memory_space<smem>>
    %51 = vector.broadcast %50 : f32 to vector<16x16xf32>
    %52 = arith.mulf %51, %49 : vector<16x16xf32>
    %53 = arith.addf %43, %52 : vector<16x16xf32>
    %c1_i32_27 = arith.constant 1 : i32
    %54 = tpu.dynamic_rotate %41 by %c1_i32_27 dim 0 : vector<16x16xf32>, i32 -> vector<16x16xf32>
    %cst_28 = arith.constant 0.000000e+00 : f32
    %55 = vector.broadcast %cst_28 : f32 to vector<16x16xf32>
    %56 = arith.select %3, %54, %55 : vector<16x16xi1>, vector<16x16xf32>
    %c6 = arith.constant 6 : index
    %57 = memref.load %arg2[%c6] : memref<51xf32, #tpu.memory_space<smem>>
    %58 = vector.broadcast %57 : f32 to vector<16x16xf32>
    %59 = arith.mulf %58, %56 : vector<16x16xf32>
    %60 = arith.addf %53, %59 : vector<16x16xf32>
    %c1_i32_29 = arith.constant 1 : i32
    %61 = tpu.dynamic_rotate %41 by %c1_i32_29 dim 0 : vector<16x16xf32>, i32 -> vector<16x16xf32>
    %c15_i32 = arith.constant 15 : i32
    %62 = tpu.dynamic_rotate %61 by %c15_i32 dim 1 : vector<16x16xf32>, i32 -> vector<16x16xf32>
    %cst_30 = arith.constant 0.000000e+00 : f32
    %63 = vector.broadcast %cst_30 : f32 to vector<16x16xf32>
    %64 = arith.select %3, %62, %63 : vector<16x16xi1>, vector<16x16xf32>
    %cst_31 = arith.constant 0.000000e+00 : f32
    %65 = vector.broadcast %cst_31 : f32 to vector<16x16xf32>
    %66 = arith.select %9, %64, %65 : vector<16x16xi1>, vector<16x16xf32>
    %c7 = arith.constant 7 : index
    %67 = memref.load %arg2[%c7] : memref<51xf32, #tpu.memory_space<smem>>
    %68 = vector.broadcast %67 : f32 to vector<16x16xf32>
    %69 = arith.mulf %68, %66 : vector<16x16xf32>
    %70 = arith.addf %60, %69 : vector<16x16xf32>
    %c1_i32_32 = arith.constant 1 : i32
    %71 = tpu.dynamic_rotate %41 by %c1_i32_32 dim 1 : vector<16x16xf32>, i32 -> vector<16x16xf32>
    %cst_33 = arith.constant 0.000000e+00 : f32
    %72 = vector.broadcast %cst_33 : f32 to vector<16x16xf32>
    %73 = arith.select %7, %71, %72 : vector<16x16xi1>, vector<16x16xf32>
    %c8 = arith.constant 8 : index
    %74 = memref.load %arg2[%c8] : memref<51xf32, #tpu.memory_space<smem>>
    %75 = vector.broadcast %74 : f32 to vector<16x16xf32>
    %76 = arith.mulf %75, %73 : vector<16x16xf32>
    %77 = arith.addf %70, %76 : vector<16x16xf32>
    %c9 = arith.constant 9 : index
    %78 = memref.load %arg2[%c9] : memref<51xf32, #tpu.memory_space<smem>>
    %79 = vector.broadcast %78 : f32 to vector<16x16xf32>
    %80 = arith.mulf %79, %41 : vector<16x16xf32>
    %81 = arith.addf %77, %80 : vector<16x16xf32>
    %c15_i32_34 = arith.constant 15 : i32
    %82 = tpu.dynamic_rotate %41 by %c15_i32_34 dim 1 : vector<16x16xf32>, i32 -> vector<16x16xf32>
    %cst_35 = arith.constant 0.000000e+00 : f32
    %83 = vector.broadcast %cst_35 : f32 to vector<16x16xf32>
    %84 = arith.select %9, %82, %83 : vector<16x16xi1>, vector<16x16xf32>
    %c10 = arith.constant 10 : index
    %85 = memref.load %arg2[%c10] : memref<51xf32, #tpu.memory_space<smem>>
    %86 = vector.broadcast %85 : f32 to vector<16x16xf32>
    %87 = arith.mulf %86, %84 : vector<16x16xf32>
    %88 = arith.addf %81, %87 : vector<16x16xf32>
    %c15_i32_36 = arith.constant 15 : i32
    %89 = tpu.dynamic_rotate %41 by %c15_i32_36 dim 0 : vector<16x16xf32>, i32 -> vector<16x16xf32>
    %c1_i32_37 = arith.constant 1 : i32
    %90 = tpu.dynamic_rotate %89 by %c1_i32_37 dim 1 : vector<16x16xf32>, i32 -> vector<16x16xf32>
    %cst_38 = arith.constant 0.000000e+00 : f32
    %91 = vector.broadcast %cst_38 : f32 to vector<16x16xf32>
    %92 = arith.select %5, %90, %91 : vector<16x16xi1>, vector<16x16xf32>
    %cst_39 = arith.constant 0.000000e+00 : f32
    %93 = vector.broadcast %cst_39 : f32 to vector<16x16xf32>
    %94 = arith.select %7, %92, %93 : vector<16x16xi1>, vector<16x16xf32>
    %c11 = arith.constant 11 : index
    %95 = memref.load %arg2[%c11] : memref<51xf32, #tpu.memory_space<smem>>
    %96 = vector.broadcast %95 : f32 to vector<16x16xf32>
    %97 = arith.mulf %96, %94 : vector<16x16xf32>
    %98 = arith.addf %88, %97 : vector<16x16xf32>
    %c15_i32_40 = arith.constant 15 : i32
    %99 = tpu.dynamic_rotate %41 by %c15_i32_40 dim 0 : vector<16x16xf32>, i32 -> vector<16x16xf32>
    %cst_41 = arith.constant 0.000000e+00 : f32
    %100 = vector.broadcast %cst_41 : f32 to vector<16x16xf32>
    %101 = arith.select %5, %99, %100 : vector<16x16xi1>, vector<16x16xf32>
    %c12 = arith.constant 12 : index
    %102 = memref.load %arg2[%c12] : memref<51xf32, #tpu.memory_space<smem>>
    %103 = vector.broadcast %102 : f32 to vector<16x16xf32>
    %104 = arith.mulf %103, %101 : vector<16x16xf32>
    %105 = arith.addf %98, %104 : vector<16x16xf32>
    %c15_i32_42 = arith.constant 15 : i32
    %106 = tpu.dynamic_rotate %41 by %c15_i32_42 dim 0 : vector<16x16xf32>, i32 -> vector<16x16xf32>
    %c15_i32_43 = arith.constant 15 : i32
    %107 = tpu.dynamic_rotate %106 by %c15_i32_43 dim 1 : vector<16x16xf32>, i32 -> vector<16x16xf32>
    %cst_44 = arith.constant 0.000000e+00 : f32
    %108 = vector.broadcast %cst_44 : f32 to vector<16x16xf32>
    %109 = arith.select %5, %107, %108 : vector<16x16xi1>, vector<16x16xf32>
    %cst_45 = arith.constant 0.000000e+00 : f32
    %110 = vector.broadcast %cst_45 : f32 to vector<16x16xf32>
    %111 = arith.select %9, %109, %110 : vector<16x16xi1>, vector<16x16xf32>
    %c13 = arith.constant 13 : index
    %112 = memref.load %arg2[%c13] : memref<51xf32, #tpu.memory_space<smem>>
    %113 = vector.broadcast %112 : f32 to vector<16x16xf32>
    %114 = arith.mulf %113, %111 : vector<16x16xf32>
    %115 = arith.addf %105, %114 : vector<16x16xf32>
    %cst_46 = arith.constant 0.000000e+00 : f32
    %116 = vector.broadcast %cst_46 : f32 to vector<16x16xf32>
    %117 = arith.maximumf %115, %116 : vector<16x16xf32>
    %c24 = arith.constant 24 : index
    %118 = memref.load %arg2[%c24] : memref<51xf32, #tpu.memory_space<smem>>
    %119 = vector.broadcast %118 : f32 to vector<16x16xf32>
    %c1_i32_47 = arith.constant 1 : i32
    %120 = tpu.dynamic_rotate %117 by %c1_i32_47 dim 0 : vector<16x16xf32>, i32 -> vector<16x16xf32>
    %c1_i32_48 = arith.constant 1 : i32
    %121 = tpu.dynamic_rotate %120 by %c1_i32_48 dim 1 : vector<16x16xf32>, i32 -> vector<16x16xf32>
    %cst_49 = arith.constant 0.000000e+00 : f32
    %122 = vector.broadcast %cst_49 : f32 to vector<16x16xf32>
    %123 = arith.select %3, %121, %122 : vector<16x16xi1>, vector<16x16xf32>
    %cst_50 = arith.constant 0.000000e+00 : f32
    %124 = vector.broadcast %cst_50 : f32 to vector<16x16xf32>
    %125 = arith.select %7, %123, %124 : vector<16x16xi1>, vector<16x16xf32>
    %c15 = arith.constant 15 : index
    %126 = memref.load %arg2[%c15] : memref<51xf32, #tpu.memory_space<smem>>
    %127 = vector.broadcast %126 : f32 to vector<16x16xf32>
    %128 = arith.mulf %127, %125 : vector<16x16xf32>
    %129 = arith.addf %119, %128 : vector<16x16xf32>
    %c1_i32_51 = arith.constant 1 : i32
    %130 = tpu.dynamic_rotate %117 by %c1_i32_51 dim 0 : vector<16x16xf32>, i32 -> vector<16x16xf32>
    %cst_52 = arith.constant 0.000000e+00 : f32
    %131 = vector.broadcast %cst_52 : f32 to vector<16x16xf32>
    %132 = arith.select %3, %130, %131 : vector<16x16xi1>, vector<16x16xf32>
    %c16 = arith.constant 16 : index
    %133 = memref.load %arg2[%c16] : memref<51xf32, #tpu.memory_space<smem>>
    %134 = vector.broadcast %133 : f32 to vector<16x16xf32>
    %135 = arith.mulf %134, %132 : vector<16x16xf32>
    %136 = arith.addf %129, %135 : vector<16x16xf32>
    %c1_i32_53 = arith.constant 1 : i32
    %137 = tpu.dynamic_rotate %117 by %c1_i32_53 dim 0 : vector<16x16xf32>, i32 -> vector<16x16xf32>
    %c15_i32_54 = arith.constant 15 : i32
    %138 = tpu.dynamic_rotate %137 by %c15_i32_54 dim 1 : vector<16x16xf32>, i32 -> vector<16x16xf32>
    %cst_55 = arith.constant 0.000000e+00 : f32
    %139 = vector.broadcast %cst_55 : f32 to vector<16x16xf32>
    %140 = arith.select %3, %138, %139 : vector<16x16xi1>, vector<16x16xf32>
    %cst_56 = arith.constant 0.000000e+00 : f32
    %141 = vector.broadcast %cst_56 : f32 to vector<16x16xf32>
    %142 = arith.select %9, %140, %141 : vector<16x16xi1>, vector<16x16xf32>
    %c17 = arith.constant 17 : index
    %143 = memref.load %arg2[%c17] : memref<51xf32, #tpu.memory_space<smem>>
    %144 = vector.broadcast %143 : f32 to vector<16x16xf32>
    %145 = arith.mulf %144, %142 : vector<16x16xf32>
    %146 = arith.addf %136, %145 : vector<16x16xf32>
    %c1_i32_57 = arith.constant 1 : i32
    %147 = tpu.dynamic_rotate %117 by %c1_i32_57 dim 1 : vector<16x16xf32>, i32 -> vector<16x16xf32>
    %cst_58 = arith.constant 0.000000e+00 : f32
    %148 = vector.broadcast %cst_58 : f32 to vector<16x16xf32>
    %149 = arith.select %7, %147, %148 : vector<16x16xi1>, vector<16x16xf32>
    %c18 = arith.constant 18 : index
    %150 = memref.load %arg2[%c18] : memref<51xf32, #tpu.memory_space<smem>>
    %151 = vector.broadcast %150 : f32 to vector<16x16xf32>
    %152 = arith.mulf %151, %149 : vector<16x16xf32>
    %153 = arith.addf %146, %152 : vector<16x16xf32>
    %c19 = arith.constant 19 : index
    %154 = memref.load %arg2[%c19] : memref<51xf32, #tpu.memory_space<smem>>
    %155 = vector.broadcast %154 : f32 to vector<16x16xf32>
    %156 = arith.mulf %155, %117 : vector<16x16xf32>
    %157 = arith.addf %153, %156 : vector<16x16xf32>
    %c15_i32_59 = arith.constant 15 : i32
    %158 = tpu.dynamic_rotate %117 by %c15_i32_59 dim 1 : vector<16x16xf32>, i32 -> vector<16x16xf32>
    %cst_60 = arith.constant 0.000000e+00 : f32
    %159 = vector.broadcast %cst_60 : f32 to vector<16x16xf32>
    %160 = arith.select %9, %158, %159 : vector<16x16xi1>, vector<16x16xf32>
    %c20 = arith.constant 20 : index
    %161 = memref.load %arg2[%c20] : memref<51xf32, #tpu.memory_space<smem>>
    %162 = vector.broadcast %161 : f32 to vector<16x16xf32>
    %163 = arith.mulf %162, %160 : vector<16x16xf32>
    %164 = arith.addf %157, %163 : vector<16x16xf32>
    %c15_i32_61 = arith.constant 15 : i32
    %165 = tpu.dynamic_rotate %117 by %c15_i32_61 dim 0 : vector<16x16xf32>, i32 -> vector<16x16xf32>
    %c1_i32_62 = arith.constant 1 : i32
    %166 = tpu.dynamic_rotate %165 by %c1_i32_62 dim 1 : vector<16x16xf32>, i32 -> vector<16x16xf32>
    %cst_63 = arith.constant 0.000000e+00 : f32
    %167 = vector.broadcast %cst_63 : f32 to vector<16x16xf32>
    %168 = arith.select %5, %166, %167 : vector<16x16xi1>, vector<16x16xf32>
    %cst_64 = arith.constant 0.000000e+00 : f32
    %169 = vector.broadcast %cst_64 : f32 to vector<16x16xf32>
    %170 = arith.select %7, %168, %169 : vector<16x16xi1>, vector<16x16xf32>
    %c21 = arith.constant 21 : index
    %171 = memref.load %arg2[%c21] : memref<51xf32, #tpu.memory_space<smem>>
    %172 = vector.broadcast %171 : f32 to vector<16x16xf32>
    %173 = arith.mulf %172, %170 : vector<16x16xf32>
    %174 = arith.addf %164, %173 : vector<16x16xf32>
    %c15_i32_65 = arith.constant 15 : i32
    %175 = tpu.dynamic_rotate %117 by %c15_i32_65 dim 0 : vector<16x16xf32>, i32 -> vector<16x16xf32>
    %cst_66 = arith.constant 0.000000e+00 : f32
    %176 = vector.broadcast %cst_66 : f32 to vector<16x16xf32>
    %177 = arith.select %5, %175, %176 : vector<16x16xi1>, vector<16x16xf32>
    %c22 = arith.constant 22 : index
    %178 = memref.load %arg2[%c22] : memref<51xf32, #tpu.memory_space<smem>>
    %179 = vector.broadcast %178 : f32 to vector<16x16xf32>
    %180 = arith.mulf %179, %177 : vector<16x16xf32>
    %181 = arith.addf %174, %180 : vector<16x16xf32>
    %c15_i32_67 = arith.constant 15 : i32
    %182 = tpu.dynamic_rotate %117 by %c15_i32_67 dim 0 : vector<16x16xf32>, i32 -> vector<16x16xf32>
    %c15_i32_68 = arith.constant 15 : i32
    %183 = tpu.dynamic_rotate %182 by %c15_i32_68 dim 1 : vector<16x16xf32>, i32 -> vector<16x16xf32>
    %cst_69 = arith.constant 0.000000e+00 : f32
    %184 = vector.broadcast %cst_69 : f32 to vector<16x16xf32>
    %185 = arith.select %5, %183, %184 : vector<16x16xi1>, vector<16x16xf32>
    %cst_70 = arith.constant 0.000000e+00 : f32
    %186 = vector.broadcast %cst_70 : f32 to vector<16x16xf32>
    %187 = arith.select %9, %185, %186 : vector<16x16xi1>, vector<16x16xf32>
    %c23 = arith.constant 23 : index
    %188 = memref.load %arg2[%c23] : memref<51xf32, #tpu.memory_space<smem>>
    %189 = vector.broadcast %188 : f32 to vector<16x16xf32>
    %190 = arith.mulf %189, %187 : vector<16x16xf32>
    %191 = arith.addf %181, %190 : vector<16x16xf32>
    %cst_71 = arith.constant 0.000000e+00 : f32
    %192 = vector.broadcast %cst_71 : f32 to vector<16x16xf32>
    %193 = arith.maximumf %191, %192 : vector<16x16xf32>
    %194 = arith.addf %41, %193 : vector<16x16xf32>
    %cst_72 = arith.constant dense<0.000000e+00> : vector<16xf32>
    %195 = vector.multi_reduction <add>, %194, %cst_72 [1] : vector<16x16xf32> to vector<16xf32>
    %196 = vector.shape_cast %195 : vector<16xf32> to vector<16x1xf32>
    %cst_73 = arith.constant 1.600000e+01 : f32
    %197 = vector.broadcast %cst_73 : f32 to vector<16x1xf32>
    %198 = arith.divf %196, %197 : vector<16x1xf32>
    %cst_74 = arith.constant dense<0.000000e+00> : vector<16xf32>
    %199 = vector.multi_reduction <add>, %194, %cst_74 [0] : vector<16x16xf32> to vector<16xf32>
    %200 = vector.shape_cast %199 : vector<16xf32> to vector<1x16xf32>
    %cst_75 = arith.constant 1.600000e+01 : f32
    %201 = vector.broadcast %cst_75 : f32 to vector<1x16xf32>
    %202 = arith.divf %200, %201 : vector<1x16xf32>
    %203 = vector.extract_strided_slice %10 {offsets = [0, 0], sizes = [1, 8], strides = [1, 1]} : vector<4x8xf32> to vector<1x8xf32>
    %204 = vector.broadcast %203 : vector<1x8xf32> to vector<16x8xf32>
    %205 = vector.broadcast %198 : vector<16x1xf32> to vector<16x8xf32>
    %206 = arith.mulf %204, %205 : vector<16x8xf32>
    %207 = vector.extract_strided_slice %10 {offsets = [1, 0], sizes = [1, 8], strides = [1, 1]} : vector<4x8xf32> to vector<1x8xf32>
    %208 = vector.broadcast %207 : vector<1x8xf32> to vector<16x8xf32>
    %209 = arith.addf %206, %208 : vector<16x8xf32>
    %cst_76 = arith.constant 3.000000e+00 : f32
    %210 = vector.broadcast %cst_76 : f32 to vector<16x8xf32>
    %211 = arith.addf %209, %210 : vector<16x8xf32>
    %cst_77 = arith.constant 0.000000e+00 : f32
    %cst_78 = arith.constant 6.000000e+00 : f32
    %212 = vector.broadcast %cst_77 : f32 to vector<16x8xf32>
    %213 = arith.maximumf %212, %211 : vector<16x8xf32>
    %214 = vector.broadcast %cst_78 : f32 to vector<16x8xf32>
    %215 = arith.minimumf %214, %213 : vector<16x8xf32>
    %216 = arith.mulf %209, %215 : vector<16x8xf32>
    %cst_79 = arith.constant 0.166666672 : f32
    %217 = vector.broadcast %cst_79 : f32 to vector<16x8xf32>
    %218 = arith.mulf %216, %217 : vector<16x8xf32>
    %219 = vector.extract_strided_slice %10 {offsets = [2, 0], sizes = [1, 8], strides = [1, 1]} : vector<4x8xf32> to vector<1x8xf32>
    %220 = vector.broadcast %219 : vector<1x8xf32> to vector<16x8xf32>
    %221 = arith.mulf %220, %218 : vector<16x8xf32>
    %cst_80 = arith.constant dense<0.000000e+00> : vector<16xf32>
    %222 = vector.multi_reduction <add>, %221, %cst_80 [1] : vector<16x8xf32> to vector<16xf32>
    %223 = vector.shape_cast %222 : vector<16xf32> to vector<16x1xf32>
    %c25 = arith.constant 25 : index
    %224 = memref.load %arg2[%c25] : memref<51xf32, #tpu.memory_space<smem>>
    %225 = vector.broadcast %224 : f32 to vector<16x1xf32>
    %226 = arith.addf %223, %225 : vector<16x1xf32>
    %227 = arith.negf %226 : vector<16x1xf32>
    %228 = math.exp %227 : vector<16x1xf32>
    %cst_81 = arith.constant 1.000000e+00 : f32
    %229 = vector.broadcast %cst_81 : f32 to vector<16x1xf32>
    %230 = arith.addf %229, %228 : vector<16x1xf32>
    %231 = arith.divf %229, %230 : vector<16x1xf32>
    %232 = vector.extract_strided_slice %11 {offsets = [0, 0], sizes = [8, 1], strides = [1, 1]} : vector<8x4xf32> to vector<8x1xf32>
    %233 = vector.broadcast %232 : vector<8x1xf32> to vector<8x16xf32>
    %234 = vector.broadcast %202 : vector<1x16xf32> to vector<8x16xf32>
    %235 = arith.mulf %233, %234 : vector<8x16xf32>
    %236 = vector.extract_strided_slice %11 {offsets = [0, 1], sizes = [8, 1], strides = [1, 1]} : vector<8x4xf32> to vector<8x1xf32>
    %237 = vector.broadcast %236 : vector<8x1xf32> to vector<8x16xf32>
    %238 = arith.addf %235, %237 : vector<8x16xf32>
    %cst_82 = arith.constant 3.000000e+00 : f32
    %239 = vector.broadcast %cst_82 : f32 to vector<8x16xf32>
    %240 = arith.addf %238, %239 : vector<8x16xf32>
    %cst_83 = arith.constant 0.000000e+00 : f32
    %cst_84 = arith.constant 6.000000e+00 : f32
    %241 = vector.broadcast %cst_83 : f32 to vector<8x16xf32>
    %242 = arith.maximumf %241, %240 : vector<8x16xf32>
    %243 = vector.broadcast %cst_84 : f32 to vector<8x16xf32>
    %244 = arith.minimumf %243, %242 : vector<8x16xf32>
    %245 = arith.mulf %238, %244 : vector<8x16xf32>
    %cst_85 = arith.constant 0.166666672 : f32
    %246 = vector.broadcast %cst_85 : f32 to vector<8x16xf32>
    %247 = arith.mulf %245, %246 : vector<8x16xf32>
    %248 = vector.extract_strided_slice %11 {offsets = [0, 3], sizes = [8, 1], strides = [1, 1]} : vector<8x4xf32> to vector<8x1xf32>
    %249 = vector.broadcast %248 : vector<8x1xf32> to vector<8x16xf32>
    %250 = arith.mulf %249, %247 : vector<8x16xf32>
    %cst_86 = arith.constant dense<0.000000e+00> : vector<16xf32>
    %251 = vector.multi_reduction <add>, %250, %cst_86 [0] : vector<8x16xf32> to vector<16xf32>
    %252 = vector.shape_cast %251 : vector<16xf32> to vector<1x16xf32>
    %c26 = arith.constant 26 : index
    %253 = memref.load %arg2[%c26] : memref<51xf32, #tpu.memory_space<smem>>
    %254 = vector.broadcast %253 : f32 to vector<1x16xf32>
    %255 = arith.addf %252, %254 : vector<1x16xf32>
    %256 = arith.negf %255 : vector<1x16xf32>
    %257 = math.exp %256 : vector<1x16xf32>
    %cst_87 = arith.constant 1.000000e+00 : f32
    %258 = vector.broadcast %cst_87 : f32 to vector<1x16xf32>
    %259 = arith.addf %258, %257 : vector<1x16xf32>
    %260 = arith.divf %258, %259 : vector<1x16xf32>
    %261 = vector.broadcast %260 : vector<1x16xf32> to vector<16x16xf32>
    %262 = arith.mulf %194, %261 : vector<16x16xf32>
    %263 = vector.broadcast %231 : vector<16x1xf32> to vector<16x16xf32>
    %264 = arith.mulf %262, %263 : vector<16x16xf32>
    %265 = vector.shape_cast %264 : vector<16x16xf32> to vector<1x16x16xf32>
    %cst_88 = arith.constant dense<0.000000e+00> : vector<1xf32>
    %266 = vector.multi_reduction <add>, %265, %cst_88 [1, 2] : vector<1x16x16xf32> to vector<1xf32>
    %267 = vector.shape_cast %266 : vector<1xf32> to vector<1x1x1xf32>
    %268 = vector.extract %267[0, 0, 0] : f32 from vector<1x1x1xf32>
    %269 = vector.broadcast %268 : f32 to vector<1x1xf32>
    %cst_89 = arith.constant 2.560000e+02 : f32
    %270 = vector.broadcast %cst_89 : f32 to vector<1x1xf32>
    %271 = arith.divf %269, %270 : vector<1x1xf32>
    %c27 = arith.constant 27 : index
    %272 = memref.load %arg2[%c27] : memref<51xf32, #tpu.memory_space<smem>>
    %273 = vector.broadcast %272 : f32 to vector<1x1xf32>
    %274 = arith.mulf %271, %273 : vector<1x1xf32>
    %c28 = arith.constant 28 : index
    %275 = memref.load %arg2[%c28] : memref<51xf32, #tpu.memory_space<smem>>
    %276 = vector.broadcast %275 : f32 to vector<1x1xf32>
    %277 = arith.addf %274, %276 : vector<1x1xf32>
    %cst_90 = arith.constant 0.000000e+00 : f32
    %278 = vector.broadcast %cst_90 : f32 to vector<1x1xf32>
    %279 = arith.maximumf %277, %278 : vector<1x1xf32>
    %c29 = arith.constant 29 : index
    %280 = memref.load %arg2[%c29] : memref<51xf32, #tpu.memory_space<smem>>
    %281 = vector.broadcast %280 : f32 to vector<1x1xf32>
    %282 = arith.mulf %279, %281 : vector<1x1xf32>
    %c30 = arith.constant 30 : index
    %283 = memref.load %arg2[%c30] : memref<51xf32, #tpu.memory_space<smem>>
    %284 = vector.broadcast %283 : f32 to vector<1x1xf32>
    %285 = arith.addf %282, %284 : vector<1x1xf32>
    %286 = arith.negf %285 : vector<1x1xf32>
    %287 = math.exp %286 : vector<1x1xf32>
    %cst_91 = arith.constant 1.000000e+00 : f32
    %288 = vector.broadcast %cst_91 : f32 to vector<1x1xf32>
    %289 = arith.addf %288, %287 : vector<1x1xf32>
    %290 = arith.divf %288, %289 : vector<1x1xf32>
    %cst_92 = arith.constant 0.000000e+00 : f32
    %291 = vector.broadcast %cst_92 : f32 to vector<16x16xf32>
    %c0_93 = arith.constant 0 : index
    %292 = memref.load %arg2[%c0_93] : memref<51xf32, #tpu.memory_space<smem>>
    %c1_94 = arith.constant 1 : index
    %c0_95 = arith.constant 0 : index
    %c0_96 = arith.constant 0 : index
    %c0_97 = arith.constant 0 : index
    %293 = vector.load %arg1[%c1_94, %c0_95, %c0_96, %c0_97] : memref<2x4x16x16xf32, #tpu.memory_space<vmem>>, vector<1x1x16x16xf32>
    %294 = vector.shape_cast %293 : vector<1x1x16x16xf32> to vector<16x16xf32>
    %295 = vector.broadcast %292 : f32 to vector<16x16xf32>
    %296 = arith.mulf %295, %294 : vector<16x16xf32>
    %297 = arith.addf %291, %296 : vector<16x16xf32>
    %c1_98 = arith.constant 1 : index
    %298 = memref.load %arg2[%c1_98] : memref<51xf32, #tpu.memory_space<smem>>
    %c1_99 = arith.constant 1 : index
    %c1_100 = arith.constant 1 : index
    %c0_101 = arith.constant 0 : index
    %c0_102 = arith.constant 0 : index
    %299 = vector.load %arg1[%c1_99, %c1_100, %c0_101, %c0_102] : memref<2x4x16x16xf32, #tpu.memory_space<vmem>>, vector<1x1x16x16xf32>
    %300 = vector.shape_cast %299 : vector<1x1x16x16xf32> to vector<16x16xf32>
    %301 = vector.broadcast %298 : f32 to vector<16x16xf32>
    %302 = arith.mulf %301, %300 : vector<16x16xf32>
    %303 = arith.addf %297, %302 : vector<16x16xf32>
    %c2_103 = arith.constant 2 : index
    %304 = memref.load %arg2[%c2_103] : memref<51xf32, #tpu.memory_space<smem>>
    %c1_104 = arith.constant 1 : index
    %c2_105 = arith.constant 2 : index
    %c0_106 = arith.constant 0 : index
    %c0_107 = arith.constant 0 : index
    %305 = vector.load %arg1[%c1_104, %c2_105, %c0_106, %c0_107] : memref<2x4x16x16xf32, #tpu.memory_space<vmem>>, vector<1x1x16x16xf32>
    %306 = vector.shape_cast %305 : vector<1x1x16x16xf32> to vector<16x16xf32>
    %307 = vector.broadcast %304 : f32 to vector<16x16xf32>
    %308 = arith.mulf %307, %306 : vector<16x16xf32>
    %309 = arith.addf %303, %308 : vector<16x16xf32>
    %c3_108 = arith.constant 3 : index
    %310 = memref.load %arg2[%c3_108] : memref<51xf32, #tpu.memory_space<smem>>
    %c1_109 = arith.constant 1 : index
    %c3_110 = arith.constant 3 : index
    %c0_111 = arith.constant 0 : index
    %c0_112 = arith.constant 0 : index
    %311 = vector.load %arg1[%c1_109, %c3_110, %c0_111, %c0_112] : memref<2x4x16x16xf32, #tpu.memory_space<vmem>>, vector<1x1x16x16xf32>
    %312 = vector.shape_cast %311 : vector<1x1x16x16xf32> to vector<16x16xf32>
    %313 = vector.broadcast %310 : f32 to vector<16x16xf32>
    %314 = arith.mulf %313, %312 : vector<16x16xf32>
    %315 = arith.addf %309, %314 : vector<16x16xf32>
    %c4_113 = arith.constant 4 : index
    %316 = memref.load %arg2[%c4_113] : memref<51xf32, #tpu.memory_space<smem>>
    %317 = vector.broadcast %316 : f32 to vector<16x16xf32>
    %318 = arith.addf %315, %317 : vector<16x16xf32>
    %cst_114 = arith.constant 0.000000e+00 : f32
    %319 = vector.broadcast %cst_114 : f32 to vector<16x16xf32>
    %320 = arith.maximumf %318, %319 : vector<16x16xf32>
    %c14_115 = arith.constant 14 : index
    %321 = memref.load %arg2[%c14_115] : memref<51xf32, #tpu.memory_space<smem>>
    %322 = vector.broadcast %321 : f32 to vector<16x16xf32>
    %c1_i32_116 = arith.constant 1 : i32
    %323 = tpu.dynamic_rotate %320 by %c1_i32_116 dim 0 : vector<16x16xf32>, i32 -> vector<16x16xf32>
    %c1_i32_117 = arith.constant 1 : i32
    %324 = tpu.dynamic_rotate %323 by %c1_i32_117 dim 1 : vector<16x16xf32>, i32 -> vector<16x16xf32>
    %cst_118 = arith.constant 0.000000e+00 : f32
    %325 = vector.broadcast %cst_118 : f32 to vector<16x16xf32>
    %326 = arith.select %3, %324, %325 : vector<16x16xi1>, vector<16x16xf32>
    %cst_119 = arith.constant 0.000000e+00 : f32
    %327 = vector.broadcast %cst_119 : f32 to vector<16x16xf32>
    %328 = arith.select %7, %326, %327 : vector<16x16xi1>, vector<16x16xf32>
    %c5_120 = arith.constant 5 : index
    %329 = memref.load %arg2[%c5_120] : memref<51xf32, #tpu.memory_space<smem>>
    %330 = vector.broadcast %329 : f32 to vector<16x16xf32>
    %331 = arith.mulf %330, %328 : vector<16x16xf32>
    %332 = arith.addf %322, %331 : vector<16x16xf32>
    %c1_i32_121 = arith.constant 1 : i32
    %333 = tpu.dynamic_rotate %320 by %c1_i32_121 dim 0 : vector<16x16xf32>, i32 -> vector<16x16xf32>
    %cst_122 = arith.constant 0.000000e+00 : f32
    %334 = vector.broadcast %cst_122 : f32 to vector<16x16xf32>
    %335 = arith.select %3, %333, %334 : vector<16x16xi1>, vector<16x16xf32>
    %c6_123 = arith.constant 6 : index
    %336 = memref.load %arg2[%c6_123] : memref<51xf32, #tpu.memory_space<smem>>
    %337 = vector.broadcast %336 : f32 to vector<16x16xf32>
    %338 = arith.mulf %337, %335 : vector<16x16xf32>
    %339 = arith.addf %332, %338 : vector<16x16xf32>
    %c1_i32_124 = arith.constant 1 : i32
    %340 = tpu.dynamic_rotate %320 by %c1_i32_124 dim 0 : vector<16x16xf32>, i32 -> vector<16x16xf32>
    %c15_i32_125 = arith.constant 15 : i32
    %341 = tpu.dynamic_rotate %340 by %c15_i32_125 dim 1 : vector<16x16xf32>, i32 -> vector<16x16xf32>
    %cst_126 = arith.constant 0.000000e+00 : f32
    %342 = vector.broadcast %cst_126 : f32 to vector<16x16xf32>
    %343 = arith.select %3, %341, %342 : vector<16x16xi1>, vector<16x16xf32>
    %cst_127 = arith.constant 0.000000e+00 : f32
    %344 = vector.broadcast %cst_127 : f32 to vector<16x16xf32>
    %345 = arith.select %9, %343, %344 : vector<16x16xi1>, vector<16x16xf32>
    %c7_128 = arith.constant 7 : index
    %346 = memref.load %arg2[%c7_128] : memref<51xf32, #tpu.memory_space<smem>>
    %347 = vector.broadcast %346 : f32 to vector<16x16xf32>
    %348 = arith.mulf %347, %345 : vector<16x16xf32>
    %349 = arith.addf %339, %348 : vector<16x16xf32>
    %c1_i32_129 = arith.constant 1 : i32
    %350 = tpu.dynamic_rotate %320 by %c1_i32_129 dim 1 : vector<16x16xf32>, i32 -> vector<16x16xf32>
    %cst_130 = arith.constant 0.000000e+00 : f32
    %351 = vector.broadcast %cst_130 : f32 to vector<16x16xf32>
    %352 = arith.select %7, %350, %351 : vector<16x16xi1>, vector<16x16xf32>
    %c8_131 = arith.constant 8 : index
    %353 = memref.load %arg2[%c8_131] : memref<51xf32, #tpu.memory_space<smem>>
    %354 = vector.broadcast %353 : f32 to vector<16x16xf32>
    %355 = arith.mulf %354, %352 : vector<16x16xf32>
    %356 = arith.addf %349, %355 : vector<16x16xf32>
    %c9_132 = arith.constant 9 : index
    %357 = memref.load %arg2[%c9_132] : memref<51xf32, #tpu.memory_space<smem>>
    %358 = vector.broadcast %357 : f32 to vector<16x16xf32>
    %359 = arith.mulf %358, %320 : vector<16x16xf32>
    %360 = arith.addf %356, %359 : vector<16x16xf32>
    %c15_i32_133 = arith.constant 15 : i32
    %361 = tpu.dynamic_rotate %320 by %c15_i32_133 dim 1 : vector<16x16xf32>, i32 -> vector<16x16xf32>
    %cst_134 = arith.constant 0.000000e+00 : f32
    %362 = vector.broadcast %cst_134 : f32 to vector<16x16xf32>
    %363 = arith.select %9, %361, %362 : vector<16x16xi1>, vector<16x16xf32>
    %c10_135 = arith.constant 10 : index
    %364 = memref.load %arg2[%c10_135] : memref<51xf32, #tpu.memory_space<smem>>
    %365 = vector.broadcast %364 : f32 to vector<16x16xf32>
    %366 = arith.mulf %365, %363 : vector<16x16xf32>
    %367 = arith.addf %360, %366 : vector<16x16xf32>
    %c15_i32_136 = arith.constant 15 : i32
    %368 = tpu.dynamic_rotate %320 by %c15_i32_136 dim 0 : vector<16x16xf32>, i32 -> vector<16x16xf32>
    %c1_i32_137 = arith.constant 1 : i32
    %369 = tpu.dynamic_rotate %368 by %c1_i32_137 dim 1 : vector<16x16xf32>, i32 -> vector<16x16xf32>
    %cst_138 = arith.constant 0.000000e+00 : f32
    %370 = vector.broadcast %cst_138 : f32 to vector<16x16xf32>
    %371 = arith.select %5, %369, %370 : vector<16x16xi1>, vector<16x16xf32>
    %cst_139 = arith.constant 0.000000e+00 : f32
    %372 = vector.broadcast %cst_139 : f32 to vector<16x16xf32>
    %373 = arith.select %7, %371, %372 : vector<16x16xi1>, vector<16x16xf32>
    %c11_140 = arith.constant 11 : index
    %374 = memref.load %arg2[%c11_140] : memref<51xf32, #tpu.memory_space<smem>>
    %375 = vector.broadcast %374 : f32 to vector<16x16xf32>
    %376 = arith.mulf %375, %373 : vector<16x16xf32>
    %377 = arith.addf %367, %376 : vector<16x16xf32>
    %c15_i32_141 = arith.constant 15 : i32
    %378 = tpu.dynamic_rotate %320 by %c15_i32_141 dim 0 : vector<16x16xf32>, i32 -> vector<16x16xf32>
    %cst_142 = arith.constant 0.000000e+00 : f32
    %379 = vector.broadcast %cst_142 : f32 to vector<16x16xf32>
    %380 = arith.select %5, %378, %379 : vector<16x16xi1>, vector<16x16xf32>
    %c12_143 = arith.constant 12 : index
    %381 = memref.load %arg2[%c12_143] : memref<51xf32, #tpu.memory_space<smem>>
    %382 = vector.broadcast %381 : f32 to vector<16x16xf32>
    %383 = arith.mulf %382, %380 : vector<16x16xf32>
    %384 = arith.addf %377, %383 : vector<16x16xf32>
    %c15_i32_144 = arith.constant 15 : i32
    %385 = tpu.dynamic_rotate %320 by %c15_i32_144 dim 0 : vector<16x16xf32>, i32 -> vector<16x16xf32>
    %c15_i32_145 = arith.constant 15 : i32
    %386 = tpu.dynamic_rotate %385 by %c15_i32_145 dim 1 : vector<16x16xf32>, i32 -> vector<16x16xf32>
    %cst_146 = arith.constant 0.000000e+00 : f32
    %387 = vector.broadcast %cst_146 : f32 to vector<16x16xf32>
    %388 = arith.select %5, %386, %387 : vector<16x16xi1>, vector<16x16xf32>
    %cst_147 = arith.constant 0.000000e+00 : f32
    %389 = vector.broadcast %cst_147 : f32 to vector<16x16xf32>
    %390 = arith.select %9, %388, %389 : vector<16x16xi1>, vector<16x16xf32>
    %c13_148 = arith.constant 13 : index
    %391 = memref.load %arg2[%c13_148] : memref<51xf32, #tpu.memory_space<smem>>
    %392 = vector.broadcast %391 : f32 to vector<16x16xf32>
    %393 = arith.mulf %392, %390 : vector<16x16xf32>
    %394 = arith.addf %384, %393 : vector<16x16xf32>
    %cst_149 = arith.constant 0.000000e+00 : f32
    %395 = vector.broadcast %cst_149 : f32 to vector<16x16xf32>
    %396 = arith.maximumf %394, %395 : vector<16x16xf32>
    %c24_150 = arith.constant 24 : index
    %397 = memref.load %arg2[%c24_150] : memref<51xf32, #tpu.memory_space<smem>>
    %398 = vector.broadcast %397 : f32 to vector<16x16xf32>
    %c1_i32_151 = arith.constant 1 : i32
    %399 = tpu.dynamic_rotate %396 by %c1_i32_151 dim 0 : vector<16x16xf32>, i32 -> vector<16x16xf32>
    %c1_i32_152 = arith.constant 1 : i32
    %400 = tpu.dynamic_rotate %399 by %c1_i32_152 dim 1 : vector<16x16xf32>, i32 -> vector<16x16xf32>
    %cst_153 = arith.constant 0.000000e+00 : f32
    %401 = vector.broadcast %cst_153 : f32 to vector<16x16xf32>
    %402 = arith.select %3, %400, %401 : vector<16x16xi1>, vector<16x16xf32>
    %cst_154 = arith.constant 0.000000e+00 : f32
    %403 = vector.broadcast %cst_154 : f32 to vector<16x16xf32>
    %404 = arith.select %7, %402, %403 : vector<16x16xi1>, vector<16x16xf32>
    %c15_155 = arith.constant 15 : index
    %405 = memref.load %arg2[%c15_155] : memref<51xf32, #tpu.memory_space<smem>>
    %406 = vector.broadcast %405 : f32 to vector<16x16xf32>
    %407 = arith.mulf %406, %404 : vector<16x16xf32>
    %408 = arith.addf %398, %407 : vector<16x16xf32>
    %c1_i32_156 = arith.constant 1 : i32
    %409 = tpu.dynamic_rotate %396 by %c1_i32_156 dim 0 : vector<16x16xf32>, i32 -> vector<16x16xf32>
    %cst_157 = arith.constant 0.000000e+00 : f32
    %410 = vector.broadcast %cst_157 : f32 to vector<16x16xf32>
    %411 = arith.select %3, %409, %410 : vector<16x16xi1>, vector<16x16xf32>
    %c16_158 = arith.constant 16 : index
    %412 = memref.load %arg2[%c16_158] : memref<51xf32, #tpu.memory_space<smem>>
    %413 = vector.broadcast %412 : f32 to vector<16x16xf32>
    %414 = arith.mulf %413, %411 : vector<16x16xf32>
    %415 = arith.addf %408, %414 : vector<16x16xf32>
    %c1_i32_159 = arith.constant 1 : i32
    %416 = tpu.dynamic_rotate %396 by %c1_i32_159 dim 0 : vector<16x16xf32>, i32 -> vector<16x16xf32>
    %c15_i32_160 = arith.constant 15 : i32
    %417 = tpu.dynamic_rotate %416 by %c15_i32_160 dim 1 : vector<16x16xf32>, i32 -> vector<16x16xf32>
    %cst_161 = arith.constant 0.000000e+00 : f32
    %418 = vector.broadcast %cst_161 : f32 to vector<16x16xf32>
    %419 = arith.select %3, %417, %418 : vector<16x16xi1>, vector<16x16xf32>
    %cst_162 = arith.constant 0.000000e+00 : f32
    %420 = vector.broadcast %cst_162 : f32 to vector<16x16xf32>
    %421 = arith.select %9, %419, %420 : vector<16x16xi1>, vector<16x16xf32>
    %c17_163 = arith.constant 17 : index
    %422 = memref.load %arg2[%c17_163] : memref<51xf32, #tpu.memory_space<smem>>
    %423 = vector.broadcast %422 : f32 to vector<16x16xf32>
    %424 = arith.mulf %423, %421 : vector<16x16xf32>
    %425 = arith.addf %415, %424 : vector<16x16xf32>
    %c1_i32_164 = arith.constant 1 : i32
    %426 = tpu.dynamic_rotate %396 by %c1_i32_164 dim 1 : vector<16x16xf32>, i32 -> vector<16x16xf32>
    %cst_165 = arith.constant 0.000000e+00 : f32
    %427 = vector.broadcast %cst_165 : f32 to vector<16x16xf32>
    %428 = arith.select %7, %426, %427 : vector<16x16xi1>, vector<16x16xf32>
    %c18_166 = arith.constant 18 : index
    %429 = memref.load %arg2[%c18_166] : memref<51xf32, #tpu.memory_space<smem>>
    %430 = vector.broadcast %429 : f32 to vector<16x16xf32>
    %431 = arith.mulf %430, %428 : vector<16x16xf32>
    %432 = arith.addf %425, %431 : vector<16x16xf32>
    %c19_167 = arith.constant 19 : index
    %433 = memref.load %arg2[%c19_167] : memref<51xf32, #tpu.memory_space<smem>>
    %434 = vector.broadcast %433 : f32 to vector<16x16xf32>
    %435 = arith.mulf %434, %396 : vector<16x16xf32>
    %436 = arith.addf %432, %435 : vector<16x16xf32>
    %c15_i32_168 = arith.constant 15 : i32
    %437 = tpu.dynamic_rotate %396 by %c15_i32_168 dim 1 : vector<16x16xf32>, i32 -> vector<16x16xf32>
    %cst_169 = arith.constant 0.000000e+00 : f32
    %438 = vector.broadcast %cst_169 : f32 to vector<16x16xf32>
    %439 = arith.select %9, %437, %438 : vector<16x16xi1>, vector<16x16xf32>
    %c20_170 = arith.constant 20 : index
    %440 = memref.load %arg2[%c20_170] : memref<51xf32, #tpu.memory_space<smem>>
    %441 = vector.broadcast %440 : f32 to vector<16x16xf32>
    %442 = arith.mulf %441, %439 : vector<16x16xf32>
    %443 = arith.addf %436, %442 : vector<16x16xf32>
    %c15_i32_171 = arith.constant 15 : i32
    %444 = tpu.dynamic_rotate %396 by %c15_i32_171 dim 0 : vector<16x16xf32>, i32 -> vector<16x16xf32>
    %c1_i32_172 = arith.constant 1 : i32
    %445 = tpu.dynamic_rotate %444 by %c1_i32_172 dim 1 : vector<16x16xf32>, i32 -> vector<16x16xf32>
    %cst_173 = arith.constant 0.000000e+00 : f32
    %446 = vector.broadcast %cst_173 : f32 to vector<16x16xf32>
    %447 = arith.select %5, %445, %446 : vector<16x16xi1>, vector<16x16xf32>
    %cst_174 = arith.constant 0.000000e+00 : f32
    %448 = vector.broadcast %cst_174 : f32 to vector<16x16xf32>
    %449 = arith.select %7, %447, %448 : vector<16x16xi1>, vector<16x16xf32>
    %c21_175 = arith.constant 21 : index
    %450 = memref.load %arg2[%c21_175] : memref<51xf32, #tpu.memory_space<smem>>
    %451 = vector.broadcast %450 : f32 to vector<16x16xf32>
    %452 = arith.mulf %451, %449 : vector<16x16xf32>
    %453 = arith.addf %443, %452 : vector<16x16xf32>
    %c15_i32_176 = arith.constant 15 : i32
    %454 = tpu.dynamic_rotate %396 by %c15_i32_176 dim 0 : vector<16x16xf32>, i32 -> vector<16x16xf32>
    %cst_177 = arith.constant 0.000000e+00 : f32
    %455 = vector.broadcast %cst_177 : f32 to vector<16x16xf32>
    %456 = arith.select %5, %454, %455 : vector<16x16xi1>, vector<16x16xf32>
    %c22_178 = arith.constant 22 : index
    %457 = memref.load %arg2[%c22_178] : memref<51xf32, #tpu.memory_space<smem>>
    %458 = vector.broadcast %457 : f32 to vector<16x16xf32>
    %459 = arith.mulf %458, %456 : vector<16x16xf32>
    %460 = arith.addf %453, %459 : vector<16x16xf32>
    %c15_i32_179 = arith.constant 15 : i32
    %461 = tpu.dynamic_rotate %396 by %c15_i32_179 dim 0 : vector<16x16xf32>, i32 -> vector<16x16xf32>
    %c15_i32_180 = arith.constant 15 : i32
    %462 = tpu.dynamic_rotate %461 by %c15_i32_180 dim 1 : vector<16x16xf32>, i32 -> vector<16x16xf32>
    %cst_181 = arith.constant 0.000000e+00 : f32
    %463 = vector.broadcast %cst_181 : f32 to vector<16x16xf32>
    %464 = arith.select %5, %462, %463 : vector<16x16xi1>, vector<16x16xf32>
    %cst_182 = arith.constant 0.000000e+00 : f32
    %465 = vector.broadcast %cst_182 : f32 to vector<16x16xf32>
    %466 = arith.select %9, %464, %465 : vector<16x16xi1>, vector<16x16xf32>
    %c23_183 = arith.constant 23 : index
    %467 = memref.load %arg2[%c23_183] : memref<51xf32, #tpu.memory_space<smem>>
    %468 = vector.broadcast %467 : f32 to vector<16x16xf32>
    %469 = arith.mulf %468, %466 : vector<16x16xf32>
    %470 = arith.addf %460, %469 : vector<16x16xf32>
    %cst_184 = arith.constant 0.000000e+00 : f32
    %471 = vector.broadcast %cst_184 : f32 to vector<16x16xf32>
    %472 = arith.maximumf %470, %471 : vector<16x16xf32>
    %473 = arith.addf %320, %472 : vector<16x16xf32>
    %cst_185 = arith.constant dense<0.000000e+00> : vector<16xf32>
    %474 = vector.multi_reduction <add>, %473, %cst_185 [1] : vector<16x16xf32> to vector<16xf32>
    %475 = vector.shape_cast %474 : vector<16xf32> to vector<16x1xf32>
    %cst_186 = arith.constant 1.600000e+01 : f32
    %476 = vector.broadcast %cst_186 : f32 to vector<16x1xf32>
    %477 = arith.divf %475, %476 : vector<16x1xf32>
    %cst_187 = arith.constant dense<0.000000e+00> : vector<16xf32>
    %478 = vector.multi_reduction <add>, %473, %cst_187 [0] : vector<16x16xf32> to vector<16xf32>
    %479 = vector.shape_cast %478 : vector<16xf32> to vector<1x16xf32>
    %cst_188 = arith.constant 1.600000e+01 : f32
    %480 = vector.broadcast %cst_188 : f32 to vector<1x16xf32>
    %481 = arith.divf %479, %480 : vector<1x16xf32>
    %482 = vector.extract_strided_slice %10 {offsets = [0, 0], sizes = [1, 8], strides = [1, 1]} : vector<4x8xf32> to vector<1x8xf32>
    %483 = vector.broadcast %482 : vector<1x8xf32> to vector<16x8xf32>
    %484 = vector.broadcast %477 : vector<16x1xf32> to vector<16x8xf32>
    %485 = arith.mulf %483, %484 : vector<16x8xf32>
    %486 = vector.extract_strided_slice %10 {offsets = [1, 0], sizes = [1, 8], strides = [1, 1]} : vector<4x8xf32> to vector<1x8xf32>
    %487 = vector.broadcast %486 : vector<1x8xf32> to vector<16x8xf32>
    %488 = arith.addf %485, %487 : vector<16x8xf32>
    %cst_189 = arith.constant 3.000000e+00 : f32
    %489 = vector.broadcast %cst_189 : f32 to vector<16x8xf32>
    %490 = arith.addf %488, %489 : vector<16x8xf32>
    %cst_190 = arith.constant 0.000000e+00 : f32
    %cst_191 = arith.constant 6.000000e+00 : f32
    %491 = vector.broadcast %cst_190 : f32 to vector<16x8xf32>
    %492 = arith.maximumf %491, %490 : vector<16x8xf32>
    %493 = vector.broadcast %cst_191 : f32 to vector<16x8xf32>
    %494 = arith.minimumf %493, %492 : vector<16x8xf32>
    %495 = arith.mulf %488, %494 : vector<16x8xf32>
    %cst_192 = arith.constant 0.166666672 : f32
    %496 = vector.broadcast %cst_192 : f32 to vector<16x8xf32>
    %497 = arith.mulf %495, %496 : vector<16x8xf32>
    %498 = vector.extract_strided_slice %10 {offsets = [2, 0], sizes = [1, 8], strides = [1, 1]} : vector<4x8xf32> to vector<1x8xf32>
    %499 = vector.broadcast %498 : vector<1x8xf32> to vector<16x8xf32>
    %500 = arith.mulf %499, %497 : vector<16x8xf32>
    %cst_193 = arith.constant dense<0.000000e+00> : vector<16xf32>
    %501 = vector.multi_reduction <add>, %500, %cst_193 [1] : vector<16x8xf32> to vector<16xf32>
    %502 = vector.shape_cast %501 : vector<16xf32> to vector<16x1xf32>
    %c25_194 = arith.constant 25 : index
    %503 = memref.load %arg2[%c25_194] : memref<51xf32, #tpu.memory_space<smem>>
    %504 = vector.broadcast %503 : f32 to vector<16x1xf32>
    %505 = arith.addf %502, %504 : vector<16x1xf32>
    %506 = arith.negf %505 : vector<16x1xf32>
    %507 = math.exp %506 : vector<16x1xf32>
    %cst_195 = arith.constant 1.000000e+00 : f32
    %508 = vector.broadcast %cst_195 : f32 to vector<16x1xf32>
    %509 = arith.addf %508, %507 : vector<16x1xf32>
    %510 = arith.divf %508, %509 : vector<16x1xf32>
    %511 = vector.extract_strided_slice %11 {offsets = [0, 0], sizes = [8, 1], strides = [1, 1]} : vector<8x4xf32> to vector<8x1xf32>
    %512 = vector.broadcast %511 : vector<8x1xf32> to vector<8x16xf32>
    %513 = vector.broadcast %481 : vector<1x16xf32> to vector<8x16xf32>
    %514 = arith.mulf %512, %513 : vector<8x16xf32>
    %515 = vector.extract_strided_slice %11 {offsets = [0, 1], sizes = [8, 1], strides = [1, 1]} : vector<8x4xf32> to vector<8x1xf32>
    %516 = vector.broadcast %515 : vector<8x1xf32> to vector<8x16xf32>
    %517 = arith.addf %514, %516 : vector<8x16xf32>
    %cst_196 = arith.constant 3.000000e+00 : f32
    %518 = vector.broadcast %cst_196 : f32 to vector<8x16xf32>
    %519 = arith.addf %517, %518 : vector<8x16xf32>
    %cst_197 = arith.constant 0.000000e+00 : f32
    %cst_198 = arith.constant 6.000000e+00 : f32
    %520 = vector.broadcast %cst_197 : f32 to vector<8x16xf32>
    %521 = arith.maximumf %520, %519 : vector<8x16xf32>
    %522 = vector.broadcast %cst_198 : f32 to vector<8x16xf32>
    %523 = arith.minimumf %522, %521 : vector<8x16xf32>
    %524 = arith.mulf %517, %523 : vector<8x16xf32>
    %cst_199 = arith.constant 0.166666672 : f32
    %525 = vector.broadcast %cst_199 : f32 to vector<8x16xf32>
    %526 = arith.mulf %524, %525 : vector<8x16xf32>
    %527 = vector.extract_strided_slice %11 {offsets = [0, 3], sizes = [8, 1], strides = [1, 1]} : vector<8x4xf32> to vector<8x1xf32>
    %528 = vector.broadcast %527 : vector<8x1xf32> to vector<8x16xf32>
    %529 = arith.mulf %528, %526 : vector<8x16xf32>
    %cst_200 = arith.constant dense<0.000000e+00> : vector<16xf32>
    %530 = vector.multi_reduction <add>, %529, %cst_200 [0] : vector<8x16xf32> to vector<16xf32>
    %531 = vector.shape_cast %530 : vector<16xf32> to vector<1x16xf32>
    %c26_201 = arith.constant 26 : index
    %532 = memref.load %arg2[%c26_201] : memref<51xf32, #tpu.memory_space<smem>>
    %533 = vector.broadcast %532 : f32 to vector<1x16xf32>
    %534 = arith.addf %531, %533 : vector<1x16xf32>
    %535 = arith.negf %534 : vector<1x16xf32>
    %536 = math.exp %535 : vector<1x16xf32>
    %cst_202 = arith.constant 1.000000e+00 : f32
    %537 = vector.broadcast %cst_202 : f32 to vector<1x16xf32>
    %538 = arith.addf %537, %536 : vector<1x16xf32>
    %539 = arith.divf %537, %538 : vector<1x16xf32>
    %540 = vector.broadcast %539 : vector<1x16xf32> to vector<16x16xf32>
    %541 = arith.mulf %473, %540 : vector<16x16xf32>
    %542 = vector.broadcast %510 : vector<16x1xf32> to vector<16x16xf32>
    %543 = arith.mulf %541, %542 : vector<16x16xf32>
    %544 = vector.shape_cast %543 : vector<16x16xf32> to vector<1x16x16xf32>
    %cst_203 = arith.constant dense<0.000000e+00> : vector<1xf32>
    %545 = vector.multi_reduction <add>, %544, %cst_203 [1, 2] : vector<1x16x16xf32> to vector<1xf32>
    %546 = vector.shape_cast %545 : vector<1xf32> to vector<1x1x1xf32>
    %547 = vector.extract %546[0, 0, 0] : f32 from vector<1x1x1xf32>
    %548 = vector.broadcast %547 : f32 to vector<1x1xf32>
    %cst_204 = arith.constant 2.560000e+02 : f32
    %549 = vector.broadcast %cst_204 : f32 to vector<1x1xf32>
    %550 = arith.divf %548, %549 : vector<1x1xf32>
    %c27_205 = arith.constant 27 : index
    %551 = memref.load %arg2[%c27_205] : memref<51xf32, #tpu.memory_space<smem>>
    %552 = vector.broadcast %551 : f32 to vector<1x1xf32>
    %553 = arith.mulf %550, %552 : vector<1x1xf32>
    %c28_206 = arith.constant 28 : index
    %554 = memref.load %arg2[%c28_206] : memref<51xf32, #tpu.memory_space<smem>>
    %555 = vector.broadcast %554 : f32 to vector<1x1xf32>
    %556 = arith.addf %553, %555 : vector<1x1xf32>
    %cst_207 = arith.constant 0.000000e+00 : f32
    %557 = vector.broadcast %cst_207 : f32 to vector<1x1xf32>
    %558 = arith.maximumf %556, %557 : vector<1x1xf32>
    %c29_208 = arith.constant 29 : index
    %559 = memref.load %arg2[%c29_208] : memref<51xf32, #tpu.memory_space<smem>>
    %560 = vector.broadcast %559 : f32 to vector<1x1xf32>
    %561 = arith.mulf %558, %560 : vector<1x1xf32>
    %c30_209 = arith.constant 30 : index
    %562 = memref.load %arg2[%c30_209] : memref<51xf32, #tpu.memory_space<smem>>
    %563 = vector.broadcast %562 : f32 to vector<1x1xf32>
    %564 = arith.addf %561, %563 : vector<1x1xf32>
    %565 = arith.negf %564 : vector<1x1xf32>
    %566 = math.exp %565 : vector<1x1xf32>
    %cst_210 = arith.constant 1.000000e+00 : f32
    %567 = vector.broadcast %cst_210 : f32 to vector<1x1xf32>
    %568 = arith.addf %567, %566 : vector<1x1xf32>
    %569 = arith.divf %567, %568 : vector<1x1xf32>
    %570 = arith.addf %290, %569 : vector<1x1xf32>
    %cst_211 = arith.constant 5.000000e-01 : f32
    %571 = vector.broadcast %cst_211 : f32 to vector<1x1xf32>
    %572 = arith.mulf %570, %571 : vector<1x1xf32>
    %cst_212 = arith.constant 9.99999997E-7 : f32
    %573 = vector.broadcast %cst_212 : f32 to vector<16x16xf32>
    %574 = arith.maximumf %194, %573 : vector<16x16xf32>
    %575 = vector.broadcast %572 : vector<1x1xf32> to vector<16x16xf32>
    %576 = arith.minimumf %574, %575 : vector<16x16xf32>
    %c40 = arith.constant 40 : index
    %577 = memref.load %arg2[%c40] : memref<51xf32, #tpu.memory_space<smem>>
    %578 = vector.broadcast %577 : f32 to vector<16x16xf32>
    %c1_i32_213 = arith.constant 1 : i32
    %579 = tpu.dynamic_rotate %576 by %c1_i32_213 dim 0 : vector<16x16xf32>, i32 -> vector<16x16xf32>
    %c1_i32_214 = arith.constant 1 : i32
    %580 = tpu.dynamic_rotate %579 by %c1_i32_214 dim 1 : vector<16x16xf32>, i32 -> vector<16x16xf32>
    %cst_215 = arith.constant 0.000000e+00 : f32
    %581 = vector.broadcast %cst_215 : f32 to vector<16x16xf32>
    %582 = arith.select %3, %580, %581 : vector<16x16xi1>, vector<16x16xf32>
    %cst_216 = arith.constant 0.000000e+00 : f32
    %583 = vector.broadcast %cst_216 : f32 to vector<16x16xf32>
    %584 = arith.select %7, %582, %583 : vector<16x16xi1>, vector<16x16xf32>
    %c31 = arith.constant 31 : index
    %585 = memref.load %arg2[%c31] : memref<51xf32, #tpu.memory_space<smem>>
    %586 = vector.broadcast %585 : f32 to vector<16x16xf32>
    %587 = arith.mulf %586, %584 : vector<16x16xf32>
    %588 = arith.addf %578, %587 : vector<16x16xf32>
    %c1_i32_217 = arith.constant 1 : i32
    %589 = tpu.dynamic_rotate %576 by %c1_i32_217 dim 0 : vector<16x16xf32>, i32 -> vector<16x16xf32>
    %cst_218 = arith.constant 0.000000e+00 : f32
    %590 = vector.broadcast %cst_218 : f32 to vector<16x16xf32>
    %591 = arith.select %3, %589, %590 : vector<16x16xi1>, vector<16x16xf32>
    %c32 = arith.constant 32 : index
    %592 = memref.load %arg2[%c32] : memref<51xf32, #tpu.memory_space<smem>>
    %593 = vector.broadcast %592 : f32 to vector<16x16xf32>
    %594 = arith.mulf %593, %591 : vector<16x16xf32>
    %595 = arith.addf %588, %594 : vector<16x16xf32>
    %c1_i32_219 = arith.constant 1 : i32
    %596 = tpu.dynamic_rotate %576 by %c1_i32_219 dim 0 : vector<16x16xf32>, i32 -> vector<16x16xf32>
    %c15_i32_220 = arith.constant 15 : i32
    %597 = tpu.dynamic_rotate %596 by %c15_i32_220 dim 1 : vector<16x16xf32>, i32 -> vector<16x16xf32>
    %cst_221 = arith.constant 0.000000e+00 : f32
    %598 = vector.broadcast %cst_221 : f32 to vector<16x16xf32>
    %599 = arith.select %3, %597, %598 : vector<16x16xi1>, vector<16x16xf32>
    %cst_222 = arith.constant 0.000000e+00 : f32
    %600 = vector.broadcast %cst_222 : f32 to vector<16x16xf32>
    %601 = arith.select %9, %599, %600 : vector<16x16xi1>, vector<16x16xf32>
    %c33 = arith.constant 33 : index
    %602 = memref.load %arg2[%c33] : memref<51xf32, #tpu.memory_space<smem>>
    %603 = vector.broadcast %602 : f32 to vector<16x16xf32>
    %604 = arith.mulf %603, %601 : vector<16x16xf32>
    %605 = arith.addf %595, %604 : vector<16x16xf32>
    %c1_i32_223 = arith.constant 1 : i32
    %606 = tpu.dynamic_rotate %576 by %c1_i32_223 dim 1 : vector<16x16xf32>, i32 -> vector<16x16xf32>
    %cst_224 = arith.constant 0.000000e+00 : f32
    %607 = vector.broadcast %cst_224 : f32 to vector<16x16xf32>
    %608 = arith.select %7, %606, %607 : vector<16x16xi1>, vector<16x16xf32>
    %c34 = arith.constant 34 : index
    %609 = memref.load %arg2[%c34] : memref<51xf32, #tpu.memory_space<smem>>
    %610 = vector.broadcast %609 : f32 to vector<16x16xf32>
    %611 = arith.mulf %610, %608 : vector<16x16xf32>
    %612 = arith.addf %605, %611 : vector<16x16xf32>
    %c35 = arith.constant 35 : index
    %613 = memref.load %arg2[%c35] : memref<51xf32, #tpu.memory_space<smem>>
    %614 = vector.broadcast %613 : f32 to vector<16x16xf32>
    %615 = arith.mulf %614, %576 : vector<16x16xf32>
    %616 = arith.addf %612, %615 : vector<16x16xf32>
    %c15_i32_225 = arith.constant 15 : i32
    %617 = tpu.dynamic_rotate %576 by %c15_i32_225 dim 1 : vector<16x16xf32>, i32 -> vector<16x16xf32>
    %cst_226 = arith.constant 0.000000e+00 : f32
    %618 = vector.broadcast %cst_226 : f32 to vector<16x16xf32>
    %619 = arith.select %9, %617, %618 : vector<16x16xi1>, vector<16x16xf32>
    %c36 = arith.constant 36 : index
    %620 = memref.load %arg2[%c36] : memref<51xf32, #tpu.memory_space<smem>>
    %621 = vector.broadcast %620 : f32 to vector<16x16xf32>
    %622 = arith.mulf %621, %619 : vector<16x16xf32>
    %623 = arith.addf %616, %622 : vector<16x16xf32>
    %c15_i32_227 = arith.constant 15 : i32
    %624 = tpu.dynamic_rotate %576 by %c15_i32_227 dim 0 : vector<16x16xf32>, i32 -> vector<16x16xf32>
    %c1_i32_228 = arith.constant 1 : i32
    %625 = tpu.dynamic_rotate %624 by %c1_i32_228 dim 1 : vector<16x16xf32>, i32 -> vector<16x16xf32>
    %cst_229 = arith.constant 0.000000e+00 : f32
    %626 = vector.broadcast %cst_229 : f32 to vector<16x16xf32>
    %627 = arith.select %5, %625, %626 : vector<16x16xi1>, vector<16x16xf32>
    %cst_230 = arith.constant 0.000000e+00 : f32
    %628 = vector.broadcast %cst_230 : f32 to vector<16x16xf32>
    %629 = arith.select %7, %627, %628 : vector<16x16xi1>, vector<16x16xf32>
    %c37 = arith.constant 37 : index
    %630 = memref.load %arg2[%c37] : memref<51xf32, #tpu.memory_space<smem>>
    %631 = vector.broadcast %630 : f32 to vector<16x16xf32>
    %632 = arith.mulf %631, %629 : vector<16x16xf32>
    %633 = arith.addf %623, %632 : vector<16x16xf32>
    %c15_i32_231 = arith.constant 15 : i32
    %634 = tpu.dynamic_rotate %576 by %c15_i32_231 dim 0 : vector<16x16xf32>, i32 -> vector<16x16xf32>
    %cst_232 = arith.constant 0.000000e+00 : f32
    %635 = vector.broadcast %cst_232 : f32 to vector<16x16xf32>
    %636 = arith.select %5, %634, %635 : vector<16x16xi1>, vector<16x16xf32>
    %c38 = arith.constant 38 : index
    %637 = memref.load %arg2[%c38] : memref<51xf32, #tpu.memory_space<smem>>
    %638 = vector.broadcast %637 : f32 to vector<16x16xf32>
    %639 = arith.mulf %638, %636 : vector<16x16xf32>
    %640 = arith.addf %633, %639 : vector<16x16xf32>
    %c15_i32_233 = arith.constant 15 : i32
    %641 = tpu.dynamic_rotate %576 by %c15_i32_233 dim 0 : vector<16x16xf32>, i32 -> vector<16x16xf32>
    %c15_i32_234 = arith.constant 15 : i32
    %642 = tpu.dynamic_rotate %641 by %c15_i32_234 dim 1 : vector<16x16xf32>, i32 -> vector<16x16xf32>
    %cst_235 = arith.constant 0.000000e+00 : f32
    %643 = vector.broadcast %cst_235 : f32 to vector<16x16xf32>
    %644 = arith.select %5, %642, %643 : vector<16x16xi1>, vector<16x16xf32>
    %cst_236 = arith.constant 0.000000e+00 : f32
    %645 = vector.broadcast %cst_236 : f32 to vector<16x16xf32>
    %646 = arith.select %9, %644, %645 : vector<16x16xi1>, vector<16x16xf32>
    %c39 = arith.constant 39 : index
    %647 = memref.load %arg2[%c39] : memref<51xf32, #tpu.memory_space<smem>>
    %648 = vector.broadcast %647 : f32 to vector<16x16xf32>
    %649 = arith.mulf %648, %646 : vector<16x16xf32>
    %650 = arith.addf %640, %649 : vector<16x16xf32>
    %cst_237 = arith.constant 0.000000e+00 : f32
    %651 = vector.broadcast %cst_237 : f32 to vector<16x16xf32>
    %652 = arith.maximumf %650, %651 : vector<16x16xf32>
    %c50 = arith.constant 50 : index
    %653 = memref.load %arg2[%c50] : memref<51xf32, #tpu.memory_space<smem>>
    %654 = vector.broadcast %653 : f32 to vector<16x16xf32>
    %c1_i32_238 = arith.constant 1 : i32
    %655 = tpu.dynamic_rotate %652 by %c1_i32_238 dim 0 : vector<16x16xf32>, i32 -> vector<16x16xf32>
    %c1_i32_239 = arith.constant 1 : i32
    %656 = tpu.dynamic_rotate %655 by %c1_i32_239 dim 1 : vector<16x16xf32>, i32 -> vector<16x16xf32>
    %cst_240 = arith.constant 0.000000e+00 : f32
    %657 = vector.broadcast %cst_240 : f32 to vector<16x16xf32>
    %658 = arith.select %3, %656, %657 : vector<16x16xi1>, vector<16x16xf32>
    %cst_241 = arith.constant 0.000000e+00 : f32
    %659 = vector.broadcast %cst_241 : f32 to vector<16x16xf32>
    %660 = arith.select %7, %658, %659 : vector<16x16xi1>, vector<16x16xf32>
    %c41 = arith.constant 41 : index
    %661 = memref.load %arg2[%c41] : memref<51xf32, #tpu.memory_space<smem>>
    %662 = vector.broadcast %661 : f32 to vector<16x16xf32>
    %663 = arith.mulf %662, %660 : vector<16x16xf32>
    %664 = arith.addf %654, %663 : vector<16x16xf32>
    %c1_i32_242 = arith.constant 1 : i32
    %665 = tpu.dynamic_rotate %652 by %c1_i32_242 dim 0 : vector<16x16xf32>, i32 -> vector<16x16xf32>
    %cst_243 = arith.constant 0.000000e+00 : f32
    %666 = vector.broadcast %cst_243 : f32 to vector<16x16xf32>
    %667 = arith.select %3, %665, %666 : vector<16x16xi1>, vector<16x16xf32>
    %c42 = arith.constant 42 : index
    %668 = memref.load %arg2[%c42] : memref<51xf32, #tpu.memory_space<smem>>
    %669 = vector.broadcast %668 : f32 to vector<16x16xf32>
    %670 = arith.mulf %669, %667 : vector<16x16xf32>
    %671 = arith.addf %664, %670 : vector<16x16xf32>
    %c1_i32_244 = arith.constant 1 : i32
    %672 = tpu.dynamic_rotate %652 by %c1_i32_244 dim 0 : vector<16x16xf32>, i32 -> vector<16x16xf32>
    %c15_i32_245 = arith.constant 15 : i32
    %673 = tpu.dynamic_rotate %672 by %c15_i32_245 dim 1 : vector<16x16xf32>, i32 -> vector<16x16xf32>
    %cst_246 = arith.constant 0.000000e+00 : f32
    %674 = vector.broadcast %cst_246 : f32 to vector<16x16xf32>
    %675 = arith.select %3, %673, %674 : vector<16x16xi1>, vector<16x16xf32>
    %cst_247 = arith.constant 0.000000e+00 : f32
    %676 = vector.broadcast %cst_247 : f32 to vector<16x16xf32>
    %677 = arith.select %9, %675, %676 : vector<16x16xi1>, vector<16x16xf32>
    %c43 = arith.constant 43 : index
    %678 = memref.load %arg2[%c43] : memref<51xf32, #tpu.memory_space<smem>>
    %679 = vector.broadcast %678 : f32 to vector<16x16xf32>
    %680 = arith.mulf %679, %677 : vector<16x16xf32>
    %681 = arith.addf %671, %680 : vector<16x16xf32>
    %c1_i32_248 = arith.constant 1 : i32
    %682 = tpu.dynamic_rotate %652 by %c1_i32_248 dim 1 : vector<16x16xf32>, i32 -> vector<16x16xf32>
    %cst_249 = arith.constant 0.000000e+00 : f32
    %683 = vector.broadcast %cst_249 : f32 to vector<16x16xf32>
    %684 = arith.select %7, %682, %683 : vector<16x16xi1>, vector<16x16xf32>
    %c44 = arith.constant 44 : index
    %685 = memref.load %arg2[%c44] : memref<51xf32, #tpu.memory_space<smem>>
    %686 = vector.broadcast %685 : f32 to vector<16x16xf32>
    %687 = arith.mulf %686, %684 : vector<16x16xf32>
    %688 = arith.addf %681, %687 : vector<16x16xf32>
    %c45 = arith.constant 45 : index
    %689 = memref.load %arg2[%c45] : memref<51xf32, #tpu.memory_space<smem>>
    %690 = vector.broadcast %689 : f32 to vector<16x16xf32>
    %691 = arith.mulf %690, %652 : vector<16x16xf32>
    %692 = arith.addf %688, %691 : vector<16x16xf32>
    %c15_i32_250 = arith.constant 15 : i32
    %693 = tpu.dynamic_rotate %652 by %c15_i32_250 dim 1 : vector<16x16xf32>, i32 -> vector<16x16xf32>
    %cst_251 = arith.constant 0.000000e+00 : f32
    %694 = vector.broadcast %cst_251 : f32 to vector<16x16xf32>
    %695 = arith.select %9, %693, %694 : vector<16x16xi1>, vector<16x16xf32>
    %c46 = arith.constant 46 : index
    %696 = memref.load %arg2[%c46] : memref<51xf32, #tpu.memory_space<smem>>
    %697 = vector.broadcast %696 : f32 to vector<16x16xf32>
    %698 = arith.mulf %697, %695 : vector<16x16xf32>
    %699 = arith.addf %692, %698 : vector<16x16xf32>
    %c15_i32_252 = arith.constant 15 : i32
    %700 = tpu.dynamic_rotate %652 by %c15_i32_252 dim 0 : vector<16x16xf32>, i32 -> vector<16x16xf32>
    %c1_i32_253 = arith.constant 1 : i32
    %701 = tpu.dynamic_rotate %700 by %c1_i32_253 dim 1 : vector<16x16xf32>, i32 -> vector<16x16xf32>
    %cst_254 = arith.constant 0.000000e+00 : f32
    %702 = vector.broadcast %cst_254 : f32 to vector<16x16xf32>
    %703 = arith.select %5, %701, %702 : vector<16x16xi1>, vector<16x16xf32>
    %cst_255 = arith.constant 0.000000e+00 : f32
    %704 = vector.broadcast %cst_255 : f32 to vector<16x16xf32>
    %705 = arith.select %7, %703, %704 : vector<16x16xi1>, vector<16x16xf32>
    %c47 = arith.constant 47 : index
    %706 = memref.load %arg2[%c47] : memref<51xf32, #tpu.memory_space<smem>>
    %707 = vector.broadcast %706 : f32 to vector<16x16xf32>
    %708 = arith.mulf %707, %705 : vector<16x16xf32>
    %709 = arith.addf %699, %708 : vector<16x16xf32>
    %c15_i32_256 = arith.constant 15 : i32
    %710 = tpu.dynamic_rotate %652 by %c15_i32_256 dim 0 : vector<16x16xf32>, i32 -> vector<16x16xf32>
    %cst_257 = arith.constant 0.000000e+00 : f32
    %711 = vector.broadcast %cst_257 : f32 to vector<16x16xf32>
    %712 = arith.select %5, %710, %711 : vector<16x16xi1>, vector<16x16xf32>
    %c48 = arith.constant 48 : index
    %713 = memref.load %arg2[%c48] : memref<51xf32, #tpu.memory_space<smem>>
    %714 = vector.broadcast %713 : f32 to vector<16x16xf32>
    %715 = arith.mulf %714, %712 : vector<16x16xf32>
    %716 = arith.addf %709, %715 : vector<16x16xf32>
    %c15_i32_258 = arith.constant 15 : i32
    %717 = tpu.dynamic_rotate %652 by %c15_i32_258 dim 0 : vector<16x16xf32>, i32 -> vector<16x16xf32>
    %c15_i32_259 = arith.constant 15 : i32
    %718 = tpu.dynamic_rotate %717 by %c15_i32_259 dim 1 : vector<16x16xf32>, i32 -> vector<16x16xf32>
    %cst_260 = arith.constant 0.000000e+00 : f32
    %719 = vector.broadcast %cst_260 : f32 to vector<16x16xf32>
    %720 = arith.select %5, %718, %719 : vector<16x16xi1>, vector<16x16xf32>
    %cst_261 = arith.constant 0.000000e+00 : f32
    %721 = vector.broadcast %cst_261 : f32 to vector<16x16xf32>
    %722 = arith.select %9, %720, %721 : vector<16x16xi1>, vector<16x16xf32>
    %c49 = arith.constant 49 : index
    %723 = memref.load %arg2[%c49] : memref<51xf32, #tpu.memory_space<smem>>
    %724 = vector.broadcast %723 : f32 to vector<16x16xf32>
    %725 = arith.mulf %724, %722 : vector<16x16xf32>
    %726 = arith.addf %716, %725 : vector<16x16xf32>
    %cst_262 = arith.constant 0.000000e+00 : f32
    %727 = vector.broadcast %cst_262 : f32 to vector<16x16xf32>
    %728 = arith.maximumf %726, %727 : vector<16x16xf32>
    %c0_263 = arith.constant 0 : index
    %c0_264 = arith.constant 0 : index
    %c0_265 = arith.constant 0 : index
    %c0_266 = arith.constant 0 : index
    %729 = vector.load %arg5[%c0_263, %c0_264, %c0_265, %c0_266] : memref<2x1x16x16xf32, #tpu.memory_space<vmem>>, vector<1x1x16x16xf32>
    %730 = vector.shape_cast %729 : vector<1x1x16x16xf32> to vector<16x16xf32>
    %731 = vector.shape_cast %728 : vector<16x16xf32> to vector<1x1x16x16xf32>
    tpu.vector_store %arg5[%c0_263, %c0_264, %c0_265, %c0_266], %731 {strides = array<i32>} : memref<2x1x16x16xf32, #tpu.memory_space<vmem>>, vector<1x1x16x16xf32>,
    %cst_267 = arith.constant 9.99999997E-7 : f32
    %732 = vector.broadcast %cst_267 : f32 to vector<16x16xf32>
    %733 = arith.maximumf %473, %732 : vector<16x16xf32>
    %734 = vector.broadcast %572 : vector<1x1xf32> to vector<16x16xf32>
    %735 = arith.minimumf %733, %734 : vector<16x16xf32>
    %c40_268 = arith.constant 40 : index
    %736 = memref.load %arg2[%c40_268] : memref<51xf32, #tpu.memory_space<smem>>
    %737 = vector.broadcast %736 : f32 to vector<16x16xf32>
    %c1_i32_269 = arith.constant 1 : i32
    %738 = tpu.dynamic_rotate %735 by %c1_i32_269 dim 0 : vector<16x16xf32>, i32 -> vector<16x16xf32>
    %c1_i32_270 = arith.constant 1 : i32
    %739 = tpu.dynamic_rotate %738 by %c1_i32_270 dim 1 : vector<16x16xf32>, i32 -> vector<16x16xf32>
    %cst_271 = arith.constant 0.000000e+00 : f32
    %740 = vector.broadcast %cst_271 : f32 to vector<16x16xf32>
    %741 = arith.select %3, %739, %740 : vector<16x16xi1>, vector<16x16xf32>
    %cst_272 = arith.constant 0.000000e+00 : f32
    %742 = vector.broadcast %cst_272 : f32 to vector<16x16xf32>
    %743 = arith.select %7, %741, %742 : vector<16x16xi1>, vector<16x16xf32>
    %c31_273 = arith.constant 31 : index
    %744 = memref.load %arg2[%c31_273] : memref<51xf32, #tpu.memory_space<smem>>
    %745 = vector.broadcast %744 : f32 to vector<16x16xf32>
    %746 = arith.mulf %745, %743 : vector<16x16xf32>
    %747 = arith.addf %737, %746 : vector<16x16xf32>
    %c1_i32_274 = arith.constant 1 : i32
    %748 = tpu.dynamic_rotate %735 by %c1_i32_274 dim 0 : vector<16x16xf32>, i32 -> vector<16x16xf32>
    %cst_275 = arith.constant 0.000000e+00 : f32
    %749 = vector.broadcast %cst_275 : f32 to vector<16x16xf32>
    %750 = arith.select %3, %748, %749 : vector<16x16xi1>, vector<16x16xf32>
    %c32_276 = arith.constant 32 : index
    %751 = memref.load %arg2[%c32_276] : memref<51xf32, #tpu.memory_space<smem>>
    %752 = vector.broadcast %751 : f32 to vector<16x16xf32>
    %753 = arith.mulf %752, %750 : vector<16x16xf32>
    %754 = arith.addf %747, %753 : vector<16x16xf32>
    %c1_i32_277 = arith.constant 1 : i32
    %755 = tpu.dynamic_rotate %735 by %c1_i32_277 dim 0 : vector<16x16xf32>, i32 -> vector<16x16xf32>
    %c15_i32_278 = arith.constant 15 : i32
    %756 = tpu.dynamic_rotate %755 by %c15_i32_278 dim 1 : vector<16x16xf32>, i32 -> vector<16x16xf32>
    %cst_279 = arith.constant 0.000000e+00 : f32
    %757 = vector.broadcast %cst_279 : f32 to vector<16x16xf32>
    %758 = arith.select %3, %756, %757 : vector<16x16xi1>, vector<16x16xf32>
    %cst_280 = arith.constant 0.000000e+00 : f32
    %759 = vector.broadcast %cst_280 : f32 to vector<16x16xf32>
    %760 = arith.select %9, %758, %759 : vector<16x16xi1>, vector<16x16xf32>
    %c33_281 = arith.constant 33 : index
    %761 = memref.load %arg2[%c33_281] : memref<51xf32, #tpu.memory_space<smem>>
    %762 = vector.broadcast %761 : f32 to vector<16x16xf32>
    %763 = arith.mulf %762, %760 : vector<16x16xf32>
    %764 = arith.addf %754, %763 : vector<16x16xf32>
    %c1_i32_282 = arith.constant 1 : i32
    %765 = tpu.dynamic_rotate %735 by %c1_i32_282 dim 1 : vector<16x16xf32>, i32 -> vector<16x16xf32>
    %cst_283 = arith.constant 0.000000e+00 : f32
    %766 = vector.broadcast %cst_283 : f32 to vector<16x16xf32>
    %767 = arith.select %7, %765, %766 : vector<16x16xi1>, vector<16x16xf32>
    %c34_284 = arith.constant 34 : index
    %768 = memref.load %arg2[%c34_284] : memref<51xf32, #tpu.memory_space<smem>>
    %769 = vector.broadcast %768 : f32 to vector<16x16xf32>
    %770 = arith.mulf %769, %767 : vector<16x16xf32>
    %771 = arith.addf %764, %770 : vector<16x16xf32>
    %c35_285 = arith.constant 35 : index
    %772 = memref.load %arg2[%c35_285] : memref<51xf32, #tpu.memory_space<smem>>
    %773 = vector.broadcast %772 : f32 to vector<16x16xf32>
    %774 = arith.mulf %773, %735 : vector<16x16xf32>
    %775 = arith.addf %771, %774 : vector<16x16xf32>
    %c15_i32_286 = arith.constant 15 : i32
    %776 = tpu.dynamic_rotate %735 by %c15_i32_286 dim 1 : vector<16x16xf32>, i32 -> vector<16x16xf32>
    %cst_287 = arith.constant 0.000000e+00 : f32
    %777 = vector.broadcast %cst_287 : f32 to vector<16x16xf32>
    %778 = arith.select %9, %776, %777 : vector<16x16xi1>, vector<16x16xf32>
    %c36_288 = arith.constant 36 : index
    %779 = memref.load %arg2[%c36_288] : memref<51xf32, #tpu.memory_space<smem>>
    %780 = vector.broadcast %779 : f32 to vector<16x16xf32>
    %781 = arith.mulf %780, %778 : vector<16x16xf32>
    %782 = arith.addf %775, %781 : vector<16x16xf32>
    %c15_i32_289 = arith.constant 15 : i32
    %783 = tpu.dynamic_rotate %735 by %c15_i32_289 dim 0 : vector<16x16xf32>, i32 -> vector<16x16xf32>
    %c1_i32_290 = arith.constant 1 : i32
    %784 = tpu.dynamic_rotate %783 by %c1_i32_290 dim 1 : vector<16x16xf32>, i32 -> vector<16x16xf32>
    %cst_291 = arith.constant 0.000000e+00 : f32
    %785 = vector.broadcast %cst_291 : f32 to vector<16x16xf32>
    %786 = arith.select %5, %784, %785 : vector<16x16xi1>, vector<16x16xf32>
    %cst_292 = arith.constant 0.000000e+00 : f32
    %787 = vector.broadcast %cst_292 : f32 to vector<16x16xf32>
    %788 = arith.select %7, %786, %787 : vector<16x16xi1>, vector<16x16xf32>
    %c37_293 = arith.constant 37 : index
    %789 = memref.load %arg2[%c37_293] : memref<51xf32, #tpu.memory_space<smem>>
    %790 = vector.broadcast %789 : f32 to vector<16x16xf32>
    %791 = arith.mulf %790, %788 : vector<16x16xf32>
    %792 = arith.addf %782, %791 : vector<16x16xf32>
    %c15_i32_294 = arith.constant 15 : i32
    %793 = tpu.dynamic_rotate %735 by %c15_i32_294 dim 0 : vector<16x16xf32>, i32 -> vector<16x16xf32>
    %cst_295 = arith.constant 0.000000e+00 : f32
    %794 = vector.broadcast %cst_295 : f32 to vector<16x16xf32>
    %795 = arith.select %5, %793, %794 : vector<16x16xi1>, vector<16x16xf32>
    %c38_296 = arith.constant 38 : index
    %796 = memref.load %arg2[%c38_296] : memref<51xf32, #tpu.memory_space<smem>>
    %797 = vector.broadcast %796 : f32 to vector<16x16xf32>
    %798 = arith.mulf %797, %795 : vector<16x16xf32>
    %799 = arith.addf %792, %798 : vector<16x16xf32>
    %c15_i32_297 = arith.constant 15 : i32
    %800 = tpu.dynamic_rotate %735 by %c15_i32_297 dim 0 : vector<16x16xf32>, i32 -> vector<16x16xf32>
    %c15_i32_298 = arith.constant 15 : i32
    %801 = tpu.dynamic_rotate %800 by %c15_i32_298 dim 1 : vector<16x16xf32>, i32 -> vector<16x16xf32>
    %cst_299 = arith.constant 0.000000e+00 : f32
    %802 = vector.broadcast %cst_299 : f32 to vector<16x16xf32>
    %803 = arith.select %5, %801, %802 : vector<16x16xi1>, vector<16x16xf32>
    %cst_300 = arith.constant 0.000000e+00 : f32
    %804 = vector.broadcast %cst_300 : f32 to vector<16x16xf32>
    %805 = arith.select %9, %803, %804 : vector<16x16xi1>, vector<16x16xf32>
    %c39_301 = arith.constant 39 : index
    %806 = memref.load %arg2[%c39_301] : memref<51xf32, #tpu.memory_space<smem>>
    %807 = vector.broadcast %806 : f32 to vector<16x16xf32>
    %808 = arith.mulf %807, %805 : vector<16x16xf32>
    %809 = arith.addf %799, %808 : vector<16x16xf32>
    %cst_302 = arith.constant 0.000000e+00 : f32
    %810 = vector.broadcast %cst_302 : f32 to vector<16x16xf32>
    %811 = arith.maximumf %809, %810 : vector<16x16xf32>
    %c50_303 = arith.constant 50 : index
    %812 = memref.load %arg2[%c50_303] : memref<51xf32, #tpu.memory_space<smem>>
    %813 = vector.broadcast %812 : f32 to vector<16x16xf32>
    %c1_i32_304 = arith.constant 1 : i32
    %814 = tpu.dynamic_rotate %811 by %c1_i32_304 dim 0 : vector<16x16xf32>, i32 -> vector<16x16xf32>
    %c1_i32_305 = arith.constant 1 : i32
    %815 = tpu.dynamic_rotate %814 by %c1_i32_305 dim 1 : vector<16x16xf32>, i32 -> vector<16x16xf32>
    %cst_306 = arith.constant 0.000000e+00 : f32
    %816 = vector.broadcast %cst_306 : f32 to vector<16x16xf32>
    %817 = arith.select %3, %815, %816 : vector<16x16xi1>, vector<16x16xf32>
    %cst_307 = arith.constant 0.000000e+00 : f32
    %818 = vector.broadcast %cst_307 : f32 to vector<16x16xf32>
    %819 = arith.select %7, %817, %818 : vector<16x16xi1>, vector<16x16xf32>
    %c41_308 = arith.constant 41 : index
    %820 = memref.load %arg2[%c41_308] : memref<51xf32, #tpu.memory_space<smem>>
    %821 = vector.broadcast %820 : f32 to vector<16x16xf32>
    %822 = arith.mulf %821, %819 : vector<16x16xf32>
    %823 = arith.addf %813, %822 : vector<16x16xf32>
    %c1_i32_309 = arith.constant 1 : i32
    %824 = tpu.dynamic_rotate %811 by %c1_i32_309 dim 0 : vector<16x16xf32>, i32 -> vector<16x16xf32>
    %cst_310 = arith.constant 0.000000e+00 : f32
    %825 = vector.broadcast %cst_310 : f32 to vector<16x16xf32>
    %826 = arith.select %3, %824, %825 : vector<16x16xi1>, vector<16x16xf32>
    %c42_311 = arith.constant 42 : index
    %827 = memref.load %arg2[%c42_311] : memref<51xf32, #tpu.memory_space<smem>>
    %828 = vector.broadcast %827 : f32 to vector<16x16xf32>
    %829 = arith.mulf %828, %826 : vector<16x16xf32>
    %830 = arith.addf %823, %829 : vector<16x16xf32>
    %c1_i32_312 = arith.constant 1 : i32
    %831 = tpu.dynamic_rotate %811 by %c1_i32_312 dim 0 : vector<16x16xf32>, i32 -> vector<16x16xf32>
    %c15_i32_313 = arith.constant 15 : i32
    %832 = tpu.dynamic_rotate %831 by %c15_i32_313 dim 1 : vector<16x16xf32>, i32 -> vector<16x16xf32>
    %cst_314 = arith.constant 0.000000e+00 : f32
    %833 = vector.broadcast %cst_314 : f32 to vector<16x16xf32>
    %834 = arith.select %3, %832, %833 : vector<16x16xi1>, vector<16x16xf32>
    %cst_315 = arith.constant 0.000000e+00 : f32
    %835 = vector.broadcast %cst_315 : f32 to vector<16x16xf32>
    %836 = arith.select %9, %834, %835 : vector<16x16xi1>, vector<16x16xf32>
    %c43_316 = arith.constant 43 : index
    %837 = memref.load %arg2[%c43_316] : memref<51xf32, #tpu.memory_space<smem>>
    %838 = vector.broadcast %837 : f32 to vector<16x16xf32>
    %839 = arith.mulf %838, %836 : vector<16x16xf32>
    %840 = arith.addf %830, %839 : vector<16x16xf32>
    %c1_i32_317 = arith.constant 1 : i32
    %841 = tpu.dynamic_rotate %811 by %c1_i32_317 dim 1 : vector<16x16xf32>, i32 -> vector<16x16xf32>
    %cst_318 = arith.constant 0.000000e+00 : f32
    %842 = vector.broadcast %cst_318 : f32 to vector<16x16xf32>
    %843 = arith.select %7, %841, %842 : vector<16x16xi1>, vector<16x16xf32>
    %c44_319 = arith.constant 44 : index
    %844 = memref.load %arg2[%c44_319] : memref<51xf32, #tpu.memory_space<smem>>
    %845 = vector.broadcast %844 : f32 to vector<16x16xf32>
    %846 = arith.mulf %845, %843 : vector<16x16xf32>
    %847 = arith.addf %840, %846 : vector<16x16xf32>
    %c45_320 = arith.constant 45 : index
    %848 = memref.load %arg2[%c45_320] : memref<51xf32, #tpu.memory_space<smem>>
    %849 = vector.broadcast %848 : f32 to vector<16x16xf32>
    %850 = arith.mulf %849, %811 : vector<16x16xf32>
    %851 = arith.addf %847, %850 : vector<16x16xf32>
    %c15_i32_321 = arith.constant 15 : i32
    %852 = tpu.dynamic_rotate %811 by %c15_i32_321 dim 1 : vector<16x16xf32>, i32 -> vector<16x16xf32>
    %cst_322 = arith.constant 0.000000e+00 : f32
    %853 = vector.broadcast %cst_322 : f32 to vector<16x16xf32>
    %854 = arith.select %9, %852, %853 : vector<16x16xi1>, vector<16x16xf32>
    %c46_323 = arith.constant 46 : index
    %855 = memref.load %arg2[%c46_323] : memref<51xf32, #tpu.memory_space<smem>>
    %856 = vector.broadcast %855 : f32 to vector<16x16xf32>
    %857 = arith.mulf %856, %854 : vector<16x16xf32>
    %858 = arith.addf %851, %857 : vector<16x16xf32>
    %c15_i32_324 = arith.constant 15 : i32
    %859 = tpu.dynamic_rotate %811 by %c15_i32_324 dim 0 : vector<16x16xf32>, i32 -> vector<16x16xf32>
    %c1_i32_325 = arith.constant 1 : i32
    %860 = tpu.dynamic_rotate %859 by %c1_i32_325 dim 1 : vector<16x16xf32>, i32 -> vector<16x16xf32>
    %cst_326 = arith.constant 0.000000e+00 : f32
    %861 = vector.broadcast %cst_326 : f32 to vector<16x16xf32>
    %862 = arith.select %5, %860, %861 : vector<16x16xi1>, vector<16x16xf32>
    %cst_327 = arith.constant 0.000000e+00 : f32
    %863 = vector.broadcast %cst_327 : f32 to vector<16x16xf32>
    %864 = arith.select %7, %862, %863 : vector<16x16xi1>, vector<16x16xf32>
    %c47_328 = arith.constant 47 : index
    %865 = memref.load %arg2[%c47_328] : memref<51xf32, #tpu.memory_space<smem>>
    %866 = vector.broadcast %865 : f32 to vector<16x16xf32>
    %867 = arith.mulf %866, %864 : vector<16x16xf32>
    %868 = arith.addf %858, %867 : vector<16x16xf32>
    %c15_i32_329 = arith.constant 15 : i32
    %869 = tpu.dynamic_rotate %811 by %c15_i32_329 dim 0 : vector<16x16xf32>, i32 -> vector<16x16xf32>
    %cst_330 = arith.constant 0.000000e+00 : f32
    %870 = vector.broadcast %cst_330 : f32 to vector<16x16xf32>
    %871 = arith.select %5, %869, %870 : vector<16x16xi1>, vector<16x16xf32>
    %c48_331 = arith.constant 48 : index
    %872 = memref.load %arg2[%c48_331] : memref<51xf32, #tpu.memory_space<smem>>
    %873 = vector.broadcast %872 : f32 to vector<16x16xf32>
    %874 = arith.mulf %873, %871 : vector<16x16xf32>
    %875 = arith.addf %868, %874 : vector<16x16xf32>
    %c15_i32_332 = arith.constant 15 : i32
    %876 = tpu.dynamic_rotate %811 by %c15_i32_332 dim 0 : vector<16x16xf32>, i32 -> vector<16x16xf32>
    %c15_i32_333 = arith.constant 15 : i32
    %877 = tpu.dynamic_rotate %876 by %c15_i32_333 dim 1 : vector<16x16xf32>, i32 -> vector<16x16xf32>
    %cst_334 = arith.constant 0.000000e+00 : f32
    %878 = vector.broadcast %cst_334 : f32 to vector<16x16xf32>
    %879 = arith.select %5, %877, %878 : vector<16x16xi1>, vector<16x16xf32>
    %cst_335 = arith.constant 0.000000e+00 : f32
    %880 = vector.broadcast %cst_335 : f32 to vector<16x16xf32>
    %881 = arith.select %9, %879, %880 : vector<16x16xi1>, vector<16x16xf32>
    %c49_336 = arith.constant 49 : index
    %882 = memref.load %arg2[%c49_336] : memref<51xf32, #tpu.memory_space<smem>>
    %883 = vector.broadcast %882 : f32 to vector<16x16xf32>
    %884 = arith.mulf %883, %881 : vector<16x16xf32>
    %885 = arith.addf %875, %884 : vector<16x16xf32>
    %cst_337 = arith.constant 0.000000e+00 : f32
    %886 = vector.broadcast %cst_337 : f32 to vector<16x16xf32>
    %887 = arith.maximumf %885, %886 : vector<16x16xf32>
    %c1_338 = arith.constant 1 : index
    %c0_339 = arith.constant 0 : index
    %c0_340 = arith.constant 0 : index
    %c0_341 = arith.constant 0 : index
    %888 = vector.load %arg5[%c1_338, %c0_339, %c0_340, %c0_341] : memref<2x1x16x16xf32, #tpu.memory_space<vmem>>, vector<1x1x16x16xf32>
    %889 = vector.shape_cast %888 : vector<1x1x16x16xf32> to vector<16x16xf32>
    %890 = vector.shape_cast %887 : vector<16x16xf32> to vector<1x1x16x16xf32>
    tpu.vector_store %arg5[%c1_338, %c0_339, %c0_340, %c0_341], %890 {strides = array<i32>} : memref<2x1x16x16xf32, #tpu.memory_space<vmem>>, vector<1x1x16x16xf32>,
    return
  }
  func.func @transform_0(%arg0: i32) -> (i32, i32, i32, i32) {
    %c0_i32 = arith.constant 0 : i32
    %c0_i32_0 = arith.constant 0 : i32
    %c0_i32_1 = arith.constant 0 : i32
    %c0_i32_2 = arith.constant 0 : i32
    %c0_i32_3 = arith.constant 0 : i32
    return %c0_i32, %c0_i32_0, %c0_i32_1, %c0_i32_2 : i32, i32, i32, i32
  }
  func.func @transform_1(%arg0: i32) -> i32 {
    %c0_i32 = arith.constant 0 : i32
    %c0_i32_0 = arith.constant 0 : i32
    return %c0_i32 : i32
  }
  func.func @transform_2(%arg0: i32) -> (i32, i32) {
    %c0_i32 = arith.constant 0 : i32
    %c0_i32_0 = arith.constant 0 : i32
    %c0_i32_1 = arith.constant 0 : i32
    return %c0_i32, %c0_i32_0 : i32, i32
  }
  func.func @transform_3(%arg0: i32) -> (i32, i32) {
    %c0_i32 = arith.constant 0 : i32
    %c0_i32_0 = arith.constant 0 : i32
    %c0_i32_1 = arith.constant 0 : i32
    return %c0_i32, %c0_i32_0 : i32, i32
  }
  func.func @transform_4(%arg0: i32) -> (i32, i32, i32, i32) {
    %c0_i32 = arith.constant 0 : i32
    %c0_i32_0 = arith.constant 0 : i32
    %c0_i32_1 = arith.constant 0 : i32
    %c0_i32_2 = arith.constant 0 : i32
    %c0_i32_3 = arith.constant 0 : i32
    return %c0_i32, %c0_i32_0, %c0_i32_1, %c0_i32_2 : i32, i32, i32, i32
  }
}

</mosaic_0001>

<bundles_post_ra>
// kernel: window_trunction.1
= control target key start
LH: loop header
LB: loop body
LE: loop exit
PB: predicated region body
PF: predicated region fallthrough
CT: control target
= control target key end

     0   :  { %9 = vsyncpa [#allocation4], 0  ;;  %s3183_s0 = inlined_call_operand.vmem [shape: f32[2,4,16,16], index: 0, kind: input, shape index: {}]   ;;  %s3184_s1 = inlined_call_operand.vmem [shape: f32[51], index: 1, kind: input, shape index: {}]   ;;  %s3185_s2 = inlined_call_operand.vmem [shape: f32[4,8], index: 2, kind: input, shape index: {}]   ;;  %s3186_s3 = inlined_call_operand.vmem [shape: f32[8,4], index: 3, kind: input, shape index: {}]   ;;  %s3187_s4 = inlined_call_operand.hbm [shape: f32[2,1,16,16], index: 4, kind: output, shape index: {}]  }
   0x1   :  { %10 = vsyncpa [#allocation3], 0  ;;  %s19_s17 = sshll.u32 %s3184_s1, 4  ;;  %s20_s17 = int_to_ptr.vmem [resolvable:$true] %s19_s17 }
   0x2   :  { %s1817_s18 = scalar_lea.vmem %s20_s17, 16  ;;  %p1822_p1 = scmp.lt.s32.totalorder %s20_s17, %s20_s17 }
   0x3   :  { %p1818_p0 = scmp.ne.s32.totalorder %s20_s17, %s1817_s18  ;;  %p1823_p2 = scmp.lt.s32.totalorder %s1817_s18, %s1817_s18 }
   0x5   :  { %p1824_p3 = por %p1823_p2, %p1822_p1 }
   0x7   :  { %p1825_p4 = pnand %p1824_p3, %p1818_p0 }
   0x9   :  { %1828 = shalt.err (!%p1825_p4)
}
   0xa   :  { %s1855_s19 = smov [#allocation2]  }
   0xb   :  { %22 = dma.vmem_to_smem %s20_s17, 16, %s1855_s19, [#allocation4]  }
   0xc   :  { %1851 = dma.done.wait [#allocation4], 16  }
   0xd   :  { %1852 = vsyncadd [#allocation4], 4294967280 }
   0xe   :  { %30 = sfence }
   0xf   :  { %s44_s20 = sld [smem:[#allocation2]]  ;;  %s1675_s21 = sld [smem:[#allocation2 + $0x1]]  ;;  %v46_v0 = vld [vmem:[%s3183_s0 + $0x8] sm:$0xff]  ;;  %v1676_v1 = vld [vmem:[%s3183_s0 + $0x10] sm:$0xff]  ;;  %v1677_v2 = vld [vmem:[%s3183_s0 + $0x18] sm:$0xff]  ;;  %v31_v46 = vlaneseq  ;;  %vm92_vm2 = vcmask 1047680  }
  0x10   :  { %s1678_s22 = sld [smem:[#allocation2 + $0x2]]  ;;  %s1681_s23 = sld [smem:[#allocation2 + $0x3]]  ;;  %v1679_v3 = vld [vmem:[%s3183_s0 + $0x20] sm:$0xff]  ;;  %v1680_v4 = vld [vmem:[%s3183_s0 + $0x28] sm:$0xff]  ;;  %v1683_v8 = vld [vmem:[%s3183_s0 + $0x38] sm:$0xff]  ;;  %vm418_vm7 = vcmask 130048  }
  0x11   :  { %s1893_s24 = sld [smem:[#allocation2 + $0x4]]  ;;  %v1715_v5 = vld [vmem:[%s3183_s0 + $0x40] sm:$0xff]  ;;  %v1716_v9 = vld [vmem:[%s3183_s0 + $0x48] sm:$0xff]  ;;  %v1717_v13 = vld [vmem:[%s3183_s0 + $0x50] sm:$0xff]  ;;  %v1949_v54 = vshrl.u32 %v31_v46, 7  ;;  %s1858_s30 = smov 127  }
  0x12   :  { %v1718_v14 = vld [vmem:[%s3183_s0 + $0x58] sm:$0xff]  ;;  %v1719_v15 = vld [vmem:[%s3183_s0 + $0x60] sm:$0xff]  ;;  %v1720_v19 = vld [vmem:[%s3183_s0 + $0x68] sm:$0xff]  ;;  %s1686_s5 = sld [smem:[#allocation2 + $0x5]]  ;;  %s1687_s6 = sld [smem:[#allocation2 + $0x6]]  ;;  %vm464_vm8 = vcmask 64512  }
  0x13   :  { %v1721_v20 = vld [vmem:[%s3183_s0 + $0x70] sm:$0xff]  ;;  %v45_v21 = vld [vmem:[%s3183_s0] sm:$0xff]  ;;  %v1722_v26 = vld [vmem:[%s3183_s0 + $0x78] sm:$0xff]  ;;  %vm89_vm0 = vcmp.lt.s32.totalorder %v1949_v54, 1  ;;  %vm195_vm1 = vcmp.lt.s32.totalorder %v1949_v54, 7  ;;  %vm36_vm3 = vcmp.ge.s32.totalorder %v1949_v54, 1 }
  0x14   :  { %v1682_v32 = vld [vmem:[%s3183_s0 + $0x30] sm:$0xff]  ;;  %s1856_s0 = smov 16   ;;  %s1685_s7 = sld [smem:[#allocation2 + $0xe]] }
  0x15   :  { %v47_v6 = vstv %s44_s20  ;;  %v56_v7 = vstv %s1675_s21  ;;  %s1688_s8 = sld [smem:[#allocation2 + $0x7]]  ;;  %s1689_s9 = sld [smem:[#allocation2 + $0x8]] }
  0x16   :  { %v49_v10 = vmul.f32 %v47_v6, %v46_v0  ;;  %v58_v11 = vmul.f32 %v1677_v2, %v56_v7  ;;  %v65_v12 = vstv %s1678_s22  ;;  %v74_v17 = vstv %s1681_s23  ;;  %s1690_s10 = sld [smem:[#allocation2 + $0x9]]  ;;  %s1693_s11 = sld [smem:[#allocation2 + $0xc]] }
  0x17   :  { %v67_v16 = vmul.f32 %v1680_v4, %v65_v12  ;;  %v565_v18 = vmul.f32 %v1715_v5, %v47_v6  ;;  %v57_v22 = vmul.f32 %v1676_v1, %v56_v7  ;;  %v66_v24 = vmul.f32 %v1679_v3, %v65_v12  ;;  %s1691_s12 = sld [smem:[#allocation2 + $0xa]]  ;;  %s2142_s13 = sld [smem:[#allocation2 + $0xb]] }
  0x18   :  { %v60_v23 = vadd.f32 %v58_v11, %v49_v10  ;;  %v76_v25 = vmul.f32 %v1683_v8, %v74_v17  ;;  %v566_v27 = vmul.f32 %v1716_v9, %v47_v6  ;;  %v572_v28 = vmul.f32 %v1717_v13, %v56_v7  ;;  %s1694_s14 = sld [smem:[#allocation2 + $0xd]]  ;;  %s1696_s15 = sld [smem:[#allocation2 + $0xf]] }
  0x19   :  { %v573_v29 = vmul.f32 %v1718_v14, %v56_v7  ;;  %v579_v30 = vmul.f32 %v1719_v15, %v65_v12  ;;  %v80_v33 = vstv %s1893_s24  ;;  %v580_v34 = vmul.f32 %v1720_v19, %v65_v12  ;;  %s1857_s24 = smov 113   ;;  %s1700_s16 = sld [smem:[#allocation2 + $0x13]] }
  0x1a   :  { %v69_v31 = vadd.f32 %v67_v16, %v60_v23  ;;  %v586_v35 = vmul.f32 %v1721_v20, %v74_v17  ;;  %v574_v36 = vadd.f32 %v572_v28, %v565_v18  ;;  %v587_v38 = vmul.f32 %v1722_v26, %v74_v17  ;;  %s1697_s17 = sld [smem:[#allocation2 + $0x10]]  ;;  %s1703_s18 = sld [smem:[#allocation2 + $0x16]] }
  0x1b   :  { %v575_v37 = vadd.f32 %v573_v29, %v566_v27  ;;  %v48_v39 = vmul.f32 %v47_v6, %v45_v21  ;;  %v75_v41 = vmul.f32 %v1682_v32, %v74_v17  ;;  %s1695_s19 = sld [smem:[#allocation2 + $0x18]]  ;;  %s2429_s20 = sld [smem:[#allocation2 + $0x12]] }
  0x1c   :  { %v78_v40 = vadd.f32 %v76_v25, %v69_v31  ;;  %v581_v42 = vadd.f32 %v579_v30, %v574_v36  ;;  %s2431_s21 = sld [smem:[#allocation2 + $0x11]]  ;;  %s2435_s22 = sld [smem:[#allocation2 + $0x14]] }
  0x1d   :  { %v582_v43 = vadd.f32 %v580_v34, %v575_v37  ;;  %v59_v44 = vadd.f32 %v57_v22, %v48_v39  ;;  %s2437_s1 = sld [smem:[#allocation2 + $0x15]]  ;;  %s2492_s25 = sld [smem:[#allocation2 + $0x17]] }
  0x1e   :  { %v82_v45 = vadd.f32 %v80_v33, %v78_v40  ;;  %v588_v47 = vadd.f32 %v586_v35, %v581_v42  ;;  %s1710_s29 = sld [smem:[#allocation2 + $0x1b]]  ;;  %s3060_s26 = sld [smem:[#allocation2 + $0x2f]] }
  0x1f   :  { %v589_v48 = vadd.f32 %v587_v38, %v582_v43  ;;  %v68_v49 = vadd.f32 %v66_v24, %v59_v44  ;;  %s3116_s27 = sld [smem:[#allocation2 + $0x31]]  ;;  %s1862_s23 = smov [#allocation5]  }
  0x20   :  { %v1944_v50 = vmax.f32 %v82_v45, 0.0  ;;  %v590_v51 = vadd.f32 %v588_v47, %v80_v33  ;;  %s1663_s28 = sshll.u32 %s1862_s23, 4  ;;  %s1664_s28 = int_to_ptr.vmem [resolvable:$true] %s1663_s28 }
  0x21   :  { %v591_v52 = vadd.f32 %v589_v48, %v80_v33  ;;  %v77_v53 = vadd.f32 %v75_v41, %v68_v49  ;;  %p1834_p6 = scmp.lt.s32.totalorder %s1664_s28, %s1664_s28 }
  0x22   :  { %148 = vrot.lane.b32.xlu1 %v1944_v50, %s1856_s0  ;;  %v1951_v56 = vmax.f32 %v590_v51, 0.0  ;;  %v88_v59 = vrot.slane %v1944_v50, 7  ;;  %v194_v6 = vrot.slane %v1944_v50, 1 }
  0x23   :  { %v81_v55 = vadd.f32 %v80_v33, %v77_v53  ;;  %v1953_v57 = vmax.f32 %v591_v52, 0.0 }
  0x24   :  { %v594_v61 = vrot.slane %v1951_v56, 7  ;;  %v686_v3 = vrot.slane %v1951_v56, 1 }
  0x25   :  { %v1955_v58 = vmax.f32 %v81_v55, 0.0  ;;  %v595_v62 = vrot.slane %v1953_v57, 7  ;;  %v687_v4 = vrot.slane %v1953_v57, 1  ;;  %v2082_v55 = vadd.s32 8, %v1949_v54 }
  0x27   :  { %v87_v60 = vrot.slane %v1955_v58, 7  ;;  %v1976_v1 = vsel %vm89_vm0, %v595_v62, %v594_v61  ;;  %v1980_v2 = vsel %vm89_vm0, %v594_v61, %v595_v62  ;;  %v193_v5 = vrot.slane %v1955_v58, 1 }
  0x28   :  { %v1997_v7 = vsel %vm195_vm1, %v687_v4, %v686_v3  ;;  %v2009_v9 = vsel %vm195_vm1, %v686_v3, %v687_v4  ;;  %vm39_vm4 = vcmp.le.s32.totalorder %v2082_v55, 14 }
  0x29   :  { %v1964_v63 = vsel %vm89_vm0, %v88_v59, %v87_v60  ;;  %v1968_v0 = vsel %vm89_vm0, %v87_v60, %v88_v59  ;;  %v2005_v8 = vsel %vm195_vm1, %v194_v6, %v193_v5  ;;  %v2017_v10 = vsel %vm195_vm1, %v193_v5, %v194_v6 }
  0x2a   :  { %93 = vrot.lane.b32.xlu0 %v1964_v63, %s1856_s0  ;;  %96 = vrot.lane.b32.xlu1 %v1968_v0, %s1856_s0 }
  0x2e   :  { %598 = vrot.lane.b32.xlu0 %v1976_v1, %s1856_s0  ;;  %601 = vrot.lane.b32.xlu1 %v1980_v2, %s1856_s0 }
  0x32   :  { %145 = vrot.lane.b32.xlu0 %v1955_v58, %s1856_s0  ;;  %647 = vrot.lane.b32.xlu1 %v1953_v57, %s1856_s0 }
  0x36   :  { %644 = vrot.lane.b32.xlu0 %v1951_v56, %s1856_s0  ;;  %693 = vrot.lane.b32.xlu1 %v1997_v7, %s1856_s0 }
  0x3a   :  { %201 = vrot.lane.b32.xlu0 %v2005_v8, %s1856_s0  ;;  %690 = vrot.lane.b32.xlu1 %v2009_v9, %s1856_s0 }
  0x3e   :  { %198 = vrot.lane.b32.xlu0 %v2017_v10, %s1856_s0 }
  0x94   :  { %v149_v11 = vpop.permute.xlu1 %148 }
  0x95   :  { %v150_v12 = vsel %vm92_vm2, %v149_v11, %v1944_v50 }
  0x96   :  { %153 = vrot.lane.b32.xlu1 %v150_v12, %s1856_s0 }
  0x9c   :  { %v94_v13 = vpop.permute.xlu0 %93  ;;  %v97_v14 = vpop.permute.xlu1 %96 }
  0x9d   :  { %v95_v24 = vsel %vm92_vm2, %v94_v13, %v1964_v63  ;;  %v98_v28 = vsel %vm92_vm2, %v97_v14, %v1968_v0 }
  0xa0   :  { %v599_v15 = vpop.permute.xlu0 %598  ;;  %v602_v16 = vpop.permute.xlu1 %601 }
  0xa1   :  { %v600_v17 = vsel %vm92_vm2, %v599_v15, %v1976_v1  ;;  %v603_v18 = vsel %vm92_vm2, %v602_v16, %v1980_v2 }
  0xa2   :  { %604 = vrot.lane.b32.xlu1 %v600_v17, %s1856_s0 }
  0xa4   :  { %v146_v19 = vpop.permute.xlu0 %145  ;;  %v648_v20 = vpop.permute.xlu1 %647 }
  0xa5   :  { %v147_v21 = vsel %vm92_vm2, %v146_v19, %v1955_v58  ;;  %v649_v22 = vsel %vm92_vm2, %v648_v20, %v1953_v57 }
  0xa6   :  { %151 = vrot.lane.b32.xlu0 %v147_v21, %s1856_s0  ;;  %606 = vrot.lane.b32.xlu1 %v603_v18, %s1856_s0  ;;  %v2121_v18 = vand.u32 127, %v31_v46  ;;  %v2125_v21 = vstv %s1686_s5  ;;  %v126_v46 = vstv %s1687_s6  ;;  %s1711_s5 = sld [smem:[#allocation2 + $0x1c]]  ;;  %s1712_s6 = sld [smem:[#allocation2 + $0x1d]] }
  0xa8   :  { %v694_v23 = vpop.permute.xlu1 %693  ;;  %v645_v25 = vpop.permute.xlu0 %644  ;;  %vm40_vm5 = vcmp.ge.s32.totalorder %v2121_v18, 1  ;;  %vm41_vm6 = vcmp.le.s32.totalorder %v2121_v18, 14 }
  0xa9   :  { %v695_v26 = vsel %vm92_vm2, %v694_v23, %v1997_v7  ;;  %v646_v30 = vsel %vm92_vm2, %v645_v25, %v1951_v56 }
  0xaa   :  { %99 = vrot.lane.b32.xlu0 %v95_v24, %s1856_s0  ;;  %652 = vrot.lane.b32.xlu1 %v649_v22, %s1856_s0 }
  0xac   :  { %v691_v27 = vpop.permute.xlu1 %690  ;;  %v202_v29 = vpop.permute.xlu0 %201 }
  0xad   :  { %v692_v31 = vsel %vm92_vm2, %v691_v27, %v2009_v9  ;;  %v203_v32 = vsel %vm92_vm2, %v202_v29, %v2005_v8 }
  0xae   :  { %101 = vrot.lane.b32.xlu0 %v98_v28, %s1856_s0  ;;  %698 = vrot.lane.b32.xlu1 %v695_v26, %s1856_s0  ;;  %v2133_v26 = vstv %s1685_s7 }
  0xb0   :  { %v199_v33 = vpop.permute.xlu0 %198 }
  0xb1   :  { %v200_v34 = vsel %vm92_vm2, %v199_v33, %v2017_v10  ;;  %v2144_v33 = vstv %s1688_s8  ;;  %s1713_s8 = sld [smem:[#allocation2 + $0x1e]] }
  0xb2   :  { %650 = vrot.lane.b32.xlu0 %v646_v30, %s1856_s0  ;;  %696 = vrot.lane.b32.xlu1 %v692_v31, %s1856_s0  ;;  %v128_v30 = vmul.f32 %v126_v46, %v1968_v0 }
  0xb6   :  { %206 = vrot.lane.b32.xlu0 %v203_v32, %s1856_s0 }
  0xba   :  { %204 = vrot.lane.b32.xlu0 %v200_v34, %s1856_s0 }
 0x108   :  { %v154_v35 = vpop.permute.xlu1 %153 }
 0x109   :  { %v156_v36 = vsel %vm92_vm2, %v154_v35, %v1944_v50 }
 0x10a   :  { %161 = vrot.lane.b32.xlu1 %v156_v36, %s1857_s24 }
 0x114   :  { %v605_v37 = vpop.permute.xlu1 %604 }
 0x115   :  { %v608_v62 = vsel %vm92_vm2, %v605_v37, %v1976_v1 }
 0x116   :  { %v610_v5 = vsel %vm36_vm3, %v608_v62, 0.0 }
 0x118   :  { %v152_v38 = vpop.permute.xlu0 %151  ;;  %v607_v39 = vpop.permute.xlu1 %606 }
 0x119   :  { %v155_v40 = vsel %vm92_vm2, %v152_v38, %v1955_v58  ;;  %v609_v52 = vsel %vm92_vm2, %v607_v39, %v1980_v2  ;;  %v2155_v38 = vstv %s1690_s10  ;;  %v629_v39 = vmul.f32 %v1980_v2, %v126_v46  ;;  %s1728_s10 = sld [smem:[#allocation2 + $0x1f]] }
 0x11a   :  { %159 = vrot.lane.b32.xlu0 %v155_v40, %s1857_s24 }
 0x11c   :  { %v100_v41 = vpop.permute.xlu0 %99  ;;  %v653_v42 = vpop.permute.xlu1 %652 }
 0x11d   :  { %v655_v43 = vsel %vm92_vm2, %v653_v42, %v1953_v57  ;;  %v103_v59 = vsel %vm92_vm2, %v100_v41, %v1964_v63 }
 0x11e   :  { %660 = vrot.lane.b32.xlu1 %v655_v43, %s1857_s24  ;;  %v105_v60 = vsel %vm36_vm3, %v103_v59, 0.0 }
 0x120   :  { %v102_v44 = vpop.permute.xlu0 %101  ;;  %v699_v61 = vpop.permute.xlu1 %698 }
 0x121   :  { %v104_v49 = vsel %vm92_vm2, %v102_v44, %v1968_v0  ;;  %v701_v4 = vsel %vm92_vm2, %v699_v61, %v1997_v7  ;;  %v626_v44 = vsel %vm36_vm3, %v1976_v1, 0.0 }
 0x122   :  { %181 = vrot.lane.b32.xlu1 %v156_v36, %s1858_s30  ;;  %v703_v11 = vsel %vm39_vm4, %v701_v4, 0.0  ;;  %v2149_v36 = vstv %s1689_s9 }
 0x124   :  { %v651_v45 = vpop.permute.xlu0 %650  ;;  %v697_v12 = vpop.permute.xlu1 %696 }
 0x125   :  { %v654_v47 = vsel %vm92_vm2, %v651_v45, %v1951_v56  ;;  %v700_v13 = vsel %vm92_vm2, %v697_v12, %v2009_v9  ;;  %v2166_v45 = vstv %s1693_s11  ;;  %s1729_s11 = sld [smem:[#allocation2 + $0x20]] }
 0x126   :  { %658 = vrot.lane.b32.xlu0 %v654_v47, %s1857_s24  ;;  %676 = vrot.lane.b32.xlu1 %v655_v43, %s1858_s30  ;;  %v123_v43 = vsel %vm36_vm3, %v1964_v63, 0.0 }
 0x127   :  { %v127_v4 = vmul.f32 %v126_v46, %v123_v43 }
 0x128   :  { %v207_v48 = vpop.permute.xlu0 %206 }
 0x129   :  { %v209_v3 = vsel %vm92_vm2, %v207_v48, %v2005_v8  ;;  %v2169_v48 = vstv %s1691_s12  ;;  %s1732_s12 = sld [smem:[#allocation2 + $0x23]] }
 0x12a   :  { %179 = vrot.lane.b32.xlu0 %v155_v40, %s1858_s30  ;;  %111 = vrot.lane.b32.xlu1 %v104_v49, %s1857_s24  ;;  %v211_v6 = vsel %vm39_vm4, %v209_v3, 0.0 }
 0x12c   :  { %v205_v51 = vpop.permute.xlu0 %204 }
 0x12d   :  { %v208_v53 = vsel %vm92_vm2, %v205_v51, %v2017_v10 }
 0x12e   :  { %674 = vrot.lane.b32.xlu0 %v654_v47, %s1858_s30  ;;  %616 = vrot.lane.b32.xlu1 %v609_v52, %s1857_s24 }
 0x132   :  { %214 = vrot.lane.b32.xlu0 %v208_v53, %s1857_s24  ;;  %133 = vrot.lane.b32.xlu1 %v104_v49, %s1858_s30 }
 0x136   :  { %634 = vrot.lane.b32.xlu1 %v609_v52, %s1858_s30  ;;  %109 = vrot.lane.b32.xlu0 %v105_v60, %s1857_s24  ;;  %v176_v52 = vmul.f32 %v2155_v38, %v1944_v50 }
 0x13a   :  { %614 = vrot.lane.b32.xlu0 %v610_v5, %s1857_s24  ;;  %216 = vrot.lane.b32.xlu1 %v211_v6, %s1857_s24 }
 0x13e   :  { %131 = vrot.lane.b32.xlu0 %v105_v60, %s1858_s30  ;;  %708 = vrot.lane.b32.xlu1 %v703_v11, %s1857_s24 }
 0x142   :  { %632 = vrot.lane.b32.xlu0 %v610_v5, %s1858_s30  ;;  %238 = vrot.lane.b32.xlu1 %v211_v6, %s1858_s30  ;;  %v229_v5 = vsel %vm39_vm4, %v2005_v8, 0.0  ;;  %v2187_v6 = vstv %s2142_s13  ;;  %s1727_s13 = sld [smem:[#allocation2 + $0x28]] }
 0x146   :  { %706 = vrot.lane.b32.xlu0 %v700_v13, %s1857_s24  ;;  %726 = vrot.lane.b32.xlu1 %v703_v11, %s1858_s30  ;;  %v671_v11 = vmul.f32 %v1953_v57, %v2155_v38 }
 0x14a   :  { %236 = vrot.lane.b32.xlu0 %v208_v53, %s1858_s30 }
 0x14e   :  { %724 = vrot.lane.b32.xlu0 %v700_v13, %s1858_s30 }
 0x17c   :  { %v162_v14 = vpop.permute.xlu1 %161 }
 0x17d   :  { %v166_v37 = vsel %vm40_vm5, %v162_v14, 0.0 }
 0x17e   :  { %v170_v47 = vmul.f32 %v2149_v36, %v166_v37 }
 0x18c   :  { %v2118_v16 = vpop.permute.xlu0 %159 }
 0x18d   :  { %v165_v37 = vsel %vm40_vm5, %v2118_v16, 0.0 }
 0x18e   :  { %v169_v16 = vmul.f32 %v2149_v36, %v165_v37 }
 0x190   :  { %v661_v15 = vpop.permute.xlu1 %660 }
 0x191   :  { %v665_v63 = vsel %vm40_vm5, %v661_v15, 0.0 }
 0x192   :  { %v667_v12 = vmul.f32 %v665_v63, %v2149_v36 }
 0x194   :  { %v182_v17 = vpop.permute.xlu1 %181 }
 0x195   :  { %v186_v53 = vsel %vm41_vm6, %v182_v17, 0.0 }
 0x196   :  { %v190_v13 = vmul.f32 %v2169_v48, %v186_v53 }
 0x198   :  { %v2123_v19 = vpop.permute.xlu0 %658  ;;  %v677_v20 = vpop.permute.xlu1 %676 }
 0x19c   :  { %v2128_v22 = vpop.permute.xlu0 %179  ;;  %v112_v23 = vpop.permute.xlu1 %111 }
 0x19d   :  { %v116_v24 = vsel %vm40_vm5, %v112_v23, 0.0 }
 0x19e   :  { %v120_v25 = vmul.f32 %v2125_v21, %v116_v24  ;;  %v681_v24 = vsel %vm41_vm6, %v677_v20, 0.0 }
 0x1a0   :  { %v2135_v27 = vpop.permute.xlu0 %674  ;;  %v617_v28 = vpop.permute.xlu1 %616  ;;  %v122_v31 = vadd.f32 %v120_v25, %v2133_v26 }
 0x1a1   :  { %v621_v29 = vsel %vm40_vm5, %v617_v28, 0.0 }
 0x1a2   :  { %v623_v32 = vmul.f32 %v621_v29, %v2125_v21  ;;  %v130_v41 = vadd.f32 %v128_v30, %v122_v31 }
 0x1a4   :  { %v2147_v34 = vpop.permute.xlu0 %214  ;;  %v134_v35 = vpop.permute.xlu1 %133  ;;  %v625_v40 = vadd.f32 %v623_v32, %v2133_v26 }
 0x1a5   :  { %v138_v0 = vsel %vm41_vm6, %v134_v35, 0.0  ;;  %v628_v35 = vmul.f32 %v626_v44, %v126_v46 }
 0x1a6   :  { %v142_v42 = vmul.f32 %v2144_v33, %v138_v0  ;;  %v631_v61 = vadd.f32 %v629_v39, %v625_v40  ;;  %v233_v40 = vmul.f32 %v2166_v45, %v229_v5 }
 0x1a8   :  { %v144_v2 = vadd.f32 %v142_v42, %v130_v41  ;;  %v635_v49 = vpop.permute.xlu1 %634  ;;  %v110_v51 = vpop.permute.xlu0 %109  ;;  %v683_v41 = vmul.f32 %v681_v24, %v2169_v48 }
 0x1a9   :  { %v639_v1 = vsel %vm41_vm6, %v635_v49, 0.0  ;;  %v115_v59 = vsel %vm40_vm5, %v110_v51, 0.0  ;;  %v245_v49 = vstv %s1694_s14  ;;  %v185_v51 = vsel %vm41_vm6, %v2128_v22, 0.0  ;;  %s1735_s14 = sld [smem:[#allocation2 + $0x26]] }
 0x1aa   :  { %v172_v60 = vadd.f32 %v170_v47, %v144_v2  ;;  %v641_v62 = vmul.f32 %v639_v1, %v2144_v33  ;;  %v119_v3 = vmul.f32 %v2125_v21, %v115_v59  ;;  %v175_v2 = vmul.f32 %v2155_v38, %v1955_v58 }
 0x1ab   :  { %v719_v22 = vsel %vm39_vm4, %v1997_v7, 0.0  ;;  %v189_v24 = vmul.f32 %v2169_v48, %v185_v51  ;;  %v680_v7 = vsel %vm41_vm6, %v2135_v27, 0.0 }
 0x1ac   :  { %v643_v14 = vadd.f32 %v641_v62, %v631_v61  ;;  %v615_v15 = vpop.permute.xlu0 %614  ;;  %v178_v17 = vadd.f32 %v176_v52, %v172_v60  ;;  %v217_v23 = vpop.permute.xlu1 %216  ;;  %v121_v25 = vadd.f32 %v119_v3, %v2133_v26  ;;  %v682_v27 = vmul.f32 %v680_v7, %v2169_v48 }
 0x1ad   :  { %v620_v8 = vsel %vm40_vm5, %v615_v15, 0.0  ;;  %v221_v28 = vsel %vm40_vm5, %v217_v23, 0.0 }
 0x1ae   :  { %v669_v29 = vadd.f32 %v667_v12, %v643_v14  ;;  %v622_v30 = vmul.f32 %v620_v8, %v2125_v21  ;;  %v192_v31 = vadd.f32 %v190_v13, %v178_v17  ;;  %v225_v32 = vmul.f32 %v2187_v6, %v221_v28 }
 0x1af   :  { %v129_v47 = vadd.f32 %v127_v4, %v121_v25  ;;  %v670_v12 = vmul.f32 %v1951_v56, %v2155_v38  ;;  %v220_v13 = vsel %vm40_vm5, %v2147_v34, 0.0  ;;  %v721_v38 = vmul.f32 %v719_v22, %v2166_v45 }
 0x1b0   :  { %v132_v20 = vpop.permute.xlu0 %131  ;;  %v673_v0 = vadd.f32 %v671_v11, %v669_v29  ;;  %v709_v39 = vpop.permute.xlu1 %708  ;;  %v624_v42 = vadd.f32 %v622_v30, %v2133_v26  ;;  %v227_v43 = vadd.f32 %v225_v32, %v192_v31  ;;  %v664_v26 = vsel %vm40_vm5, %v2123_v19, 0.0 }
 0x1b1   :  { %v137_v21 = vsel %vm41_vm6, %v132_v20, 0.0  ;;  %v713_v44 = vsel %vm40_vm5, %v709_v39, 0.0  ;;  %v666_v11 = vmul.f32 %v664_v26, %v2149_v36  ;;  %v232_v34 = vmul.f32 %v2166_v45, %v2017_v10 }
 0x1b2   :  { %v141_v46 = vmul.f32 %v2144_v33, %v137_v21  ;;  %v685_v63 = vadd.f32 %v683_v41, %v673_v0  ;;  %v715_v59 = vmul.f32 %v713_v44, %v2187_v6  ;;  %v630_v60 = vadd.f32 %v628_v35, %v624_v42 }
 0x1b3   :  { %v235_v4 = vadd.f32 %v233_v40, %v227_v43  ;;  %v224_v29 = vmul.f32 %v2187_v6, %v220_v13  ;;  %v720_v20 = vmul.f32 %v2009_v9, %v2166_v45 }
 0x1b4   :  { %v143_v52 = vadd.f32 %v141_v46, %v129_v47  ;;  %v633_v53 = vpop.permute.xlu0 %632  ;;  %v239_v1 = vpop.permute.xlu1 %238  ;;  %v717_v25 = vadd.f32 %v715_v59, %v685_v63 }
 0x1b5   :  { %v638_v61 = vsel %vm41_vm6, %v633_v53, 0.0  ;;  %v243_v62 = vsel %vm41_vm6, %v239_v1, 0.0 }
 0x1b6   :  { %v171_v3 = vadd.f32 %v169_v16, %v143_v52  ;;  %v640_v19 = vmul.f32 %v638_v61, %v2144_v33  ;;  %v247_v5 = vmul.f32 %v245_v49, %v243_v62  ;;  %v723_v41 = vadd.f32 %v721_v38, %v717_v25 }
 0x1b8   :  { %v177_v14 = vadd.f32 %v175_v2, %v171_v3  ;;  %v642_v15 = vadd.f32 %v640_v19, %v630_v60  ;;  %v249_v17 = vadd.f32 %v247_v5, %v235_v4  ;;  %v707_v23 = vpop.permute.xlu0 %706  ;;  %v727_v33 = vpop.permute.xlu1 %726 }
 0x1b9   :  { %v731_v36 = vsel %vm41_vm6, %v727_v33, 0.0  ;;  %v712_v30 = vsel %vm40_vm5, %v707_v23, 0.0 }
 0x1ba   :  { %v668_v8 = vadd.f32 %v666_v11, %v642_v15  ;;  %v2244_v28 = vmax.f32 %v249_v17, 0.0  ;;  %v191_v31 = vadd.f32 %v189_v24, %v177_v14  ;;  %v733_v35 = vmul.f32 %v731_v36, %v245_v49 }
 0x1bb   :  { %v714_v40 = vmul.f32 %v712_v30, %v2187_v6 }
 0x1bc   :  { %v672_v32 = vadd.f32 %v670_v12, %v668_v8  ;;  %v237_v37 = vpop.permute.xlu0 %236  ;;  %313 = vrot.lane.b32.xlu1 %v2244_v28, %s1856_s0  ;;  %v226_v0 = vadd.f32 %v224_v29, %v191_v31  ;;  %v735_v43 = vadd.f32 %v733_v35, %v723_v41  ;;  %v255_v51 = vrot.slane %v2244_v28, 7 }
 0x1bd   :  { %v242_v10 = vsel %vm41_vm6, %v237_v37, 0.0  ;;  %v359_v62 = vrot.slane %v2244_v28, 1 }
 0x1be   :  { %v684_v39 = vadd.f32 %v682_v27, %v672_v32  ;;  %v246_v42 = vmul.f32 %v245_v49, %v242_v10  ;;  %v234_v21 = vadd.f32 %v232_v34, %v226_v0  ;;  %v2263_v45 = vmax.f32 %v735_v43, 0.0 }
 0x1c0   :  { %v716_v48 = vadd.f32 %v714_v40, %v684_v39  ;;  %v725_v47 = vpop.permute.xlu0 %724  ;;  %v248_v46 = vadd.f32 %v246_v42, %v234_v21  ;;  %v739_v53 = vrot.slane %v2263_v45, 7  ;;  %v831_v4 = vrot.slane %v2263_v45, 1 }
 0x1c1   :  { %v730_v44 = vsel %vm41_vm6, %v725_v47, 0.0 }
 0x1c2   :  { %v722_v16 = vadd.f32 %v720_v20, %v716_v48  ;;  %v732_v2 = vmul.f32 %v730_v44, %v245_v49  ;;  %v2261_v9 = vmax.f32 %v248_v46, 0.0 }
 0x1c4   :  { %v734_v26 = vadd.f32 %v732_v2, %v722_v16  ;;  %310 = vrot.lane.b32.xlu0 %v2261_v9, %s1856_s0  ;;  %v254_v6 = vrot.slane %v2261_v9, 7  ;;  %v358_v61 = vrot.slane %v2261_v9, 1 }
 0x1c6   :  { %v2269_v52 = vmax.f32 %v734_v26, 0.0  ;;  %v2273_v63 = vsel %vm89_vm0, %v255_v51, %v254_v6  ;;  %v2287_v59 = vsel %vm89_vm0, %v254_v6, %v255_v51  ;;  %v2306_v19 = vsel %vm195_vm1, %v359_v62, %v358_v61 }
 0x1c7   :  { %v2319_v22 = vsel %vm195_vm1, %v358_v61, %v359_v62 }
 0x1c8   :  { %v738_v49 = vrot.slane %v2269_v52, 7  ;;  %258 = vrot.lane.b32.xlu0 %v2273_v63, %s1856_s0  ;;  %v830_v3 = vrot.slane %v2269_v52, 1 }
 0x1ca   :  { %v2281_v1 = vsel %vm89_vm0, %v739_v53, %v738_v49  ;;  %v2293_v60 = vsel %vm89_vm0, %v738_v49, %v739_v53  ;;  %v2313_v5 = vsel %vm195_vm1, %v831_v4, %v830_v3  ;;  %v2325_v11 = vsel %vm195_vm1, %v830_v3, %v831_v4 }
 0x1cb   :  { %742 = vrot.lane.b32.xlu1 %v2281_v1, %s1856_s0 }
 0x1cc   :  { %261 = vrot.lane.b32.xlu0 %v2287_v59, %s1856_s0 }
 0x1cf   :  { %745 = vrot.lane.b32.xlu1 %v2293_v60, %s1856_s0 }
 0x1d0   :  { %788 = vrot.lane.b32.xlu0 %v2269_v52, %s1856_s0 }
 0x1d3   :  { %791 = vrot.lane.b32.xlu1 %v2263_v45, %s1856_s0 }
 0x1d4   :  { %365 = vrot.lane.b32.xlu0 %v2306_v19, %s1856_s0 }
 0x1d7   :  { %837 = vrot.lane.b32.xlu1 %v2313_v5, %s1856_s0 }
 0x1d8   :  { %362 = vrot.lane.b32.xlu0 %v2319_v22, %s1856_s0 }
 0x1db   :  { %834 = vrot.lane.b32.xlu1 %v2325_v11, %s1856_s0 }
 0x22e   :  { %v314_v12 = vpop.permute.xlu1 %313 }
 0x22f   :  { %v315_v13 = vsel %vm92_vm2, %v314_v12, %v2244_v28 }
 0x230   :  { %318 = vrot.lane.b32.xlu1 %v315_v13, %s1856_s0 }
 0x236   :  { %v311_v14 = vpop.permute.xlu0 %310 }
 0x237   :  { %v312_v15 = vsel %vm92_vm2, %v311_v14, %v2261_v9 }
 0x238   :  { %316 = vrot.lane.b32.xlu0 %v312_v15, %s1856_s0 }
 0x23a   :  { %v259_v17 = vpop.permute.xlu0 %258 }
 0x23b   :  { %v260_v23 = vsel %vm92_vm2, %v259_v17, %v2273_v63 }
 0x23c   :  { %264 = vrot.lane.b32.xlu0 %v260_v23, %s1856_s0 }
 0x23d   :  { %v743_v33 = vpop.permute.xlu1 %742 }
 0x23e   :  { %v744_v24 = vsel %vm92_vm2, %v743_v33, %v2281_v1  ;;  %v262_v7 = vpop.permute.xlu0 %261 }
 0x23f   :  { %748 = vrot.lane.b32.xlu1 %v744_v24, %s1856_s0  ;;  %v263_v36 = vsel %vm92_vm2, %v262_v7, %v2287_v59  ;;  %v1859_v24 = vmov 0   ;;  %v1860_v7 = vmov 1  }
 0x240   :  { %266 = vrot.lane.b32.xlu0 %v263_v36, %s1856_s0  ;;  %1781 = vset.pattern.permute.xlu1 %v1859_v24 }
 0x241   :  { %v746_v38 = vpop.permute.xlu1 %745  ;;  %1782 = vset.pattern.permute.xlu0 %v1860_v7 }
 0x242   :  { %v747_v25 = vsel %vm92_vm2, %v746_v38, %v2293_v60  ;;  %v789_v8 = vpop.permute.xlu0 %788 }
 0x243   :  { %750 = vrot.lane.b32.xlu1 %v747_v25, %s1856_s0  ;;  %v790_v34 = vsel %vm92_vm2, %v789_v8, %v2269_v52 }
 0x244   :  { %794 = vrot.lane.b32.xlu0 %v790_v34, %s1856_s0 }
 0x245   :  { %v792_v29 = vpop.permute.xlu1 %791 }
 0x246   :  { %v793_v30 = vsel %vm92_vm2, %v792_v29, %v2263_v45  ;;  %v366_v31 = vpop.permute.xlu0 %365 }
 0x247   :  { %796 = vrot.lane.b32.xlu1 %v793_v30, %s1856_s0  ;;  %v367_v27 = vsel %vm92_vm2, %v366_v31, %v2306_v19 }
 0x248   :  { %370 = vrot.lane.b32.xlu0 %v367_v27, %s1856_s0 }
 0x249   :  { %v838_v32 = vpop.permute.xlu1 %837 }
 0x24a   :  { %v839_v35 = vsel %vm92_vm2, %v838_v32, %v2313_v5  ;;  %v363_v37 = vpop.permute.xlu0 %362  ;;  %v283_v32 = vstv %s1696_s15  ;;  %s2772_s15 = sld [smem:[#allocation2 + $0x22]] }
 0x24b   :  { %842 = vrot.lane.b32.xlu1 %v839_v35, %s1856_s0  ;;  %v364_v20 = vsel %vm92_vm2, %v363_v37, %v2319_v22  ;;  %v2433_v37 = vstv %s1700_s16  ;;  %s2774_s16 = sld [smem:[#allocation2 + $0x21]] }
 0x24c   :  { %368 = vrot.lane.b32.xlu0 %v364_v20, %s1856_s0 }
 0x24d   :  { %v835_v0 = vpop.permute.xlu1 %834 }
 0x24e   :  { %v836_v10 = vsel %vm92_vm2, %v835_v0, %v2325_v11  ;;  %v291_v0 = vstv %s1697_s17  ;;  %s2776_s17 = sld [smem:[#allocation2 + $0x24]] }
 0x24f   :  { %840 = vrot.lane.b32.xlu1 %v836_v10, %s1856_s0  ;;  %v288_v10 = vsel %vm36_vm3, %v2273_v63, 0.0 }
 0x2a2   :  { %v319_v39 = vpop.permute.xlu1 %318 }
 0x2a3   :  { %v321_v40 = vsel %vm92_vm2, %v319_v39, %v2244_v28 }
 0x2a4   :  { %326 = vrot.lane.b32.xlu1 %v321_v40, %s1857_s24 }
 0x2aa   :  { %v317_v41 = vpop.permute.xlu0 %316 }
 0x2ab   :  { %v320_v42 = vsel %vm92_vm2, %v317_v41, %v2261_v9  ;;  %v2444_v41 = vstv %s1703_s18  ;;  %s2778_s18 = sld [smem:[#allocation2 + $0x25]] }
 0x2ac   :  { %324 = vrot.lane.b32.xlu0 %v320_v42, %s1857_s24 }
 0x2ae   :  { %v265_v21 = vpop.permute.xlu0 %264 }
 0x2af   :  { %v268_v49 = vsel %vm92_vm2, %v265_v21, %v2273_v63  ;;  %v340_v63 = vmul.f32 %v2433_v37, %v2261_v9  ;;  %v2470_v9 = vmul.f32 %v2444_v41, %v2319_v22 }
 0x2b0   :  { %v270_v61 = vsel %vm36_vm3, %v268_v49, 0.0  ;;  %v333_v49 = vstv %s2429_s20  ;;  %s1742_s20 = sld [smem:[#allocation2 + $0x2d]] }
 0x2b1   :  { %v749_v48 = vpop.permute.xlu1 %748 }
 0x2b2   :  { %v267_v43 = vpop.permute.xlu0 %266  ;;  %v752_v62 = vsel %vm92_vm2, %v749_v48, %v2281_v1  ;;  %v341_v48 = vmul.f32 %v2433_v37, %v2244_v28  ;;  %v2463_v28 = vsel %vm39_vm4, %v2306_v19, 0.0 }
 0x2b3   :  { %v269_v53 = vsel %vm92_vm2, %v267_v43, %v2287_v59  ;;  %v754_v4 = vsel %vm36_vm3, %v752_v62, 0.0  ;;  %v770_v43 = vsel %vm36_vm3, %v2281_v1, 0.0 }
 0x2b5   :  { %v751_v47 = vpop.permute.xlu1 %750 }
 0x2b6   :  { %v795_v46 = vpop.permute.xlu0 %794  ;;  %v753_v3 = vsel %vm92_vm2, %v751_v47, %v2293_v60 }
 0x2b7   :  { %v798_v44 = vsel %vm92_vm2, %v795_v46, %v2269_v52 }
 0x2b8   :  { %802 = vrot.lane.b32.xlu0 %v798_v44, %s1857_s24 }
 0x2b9   :  { %v797_v16 = vpop.permute.xlu1 %796 }
 0x2ba   :  { %v799_v2 = vsel %vm92_vm2, %v797_v16, %v2263_v45  ;;  %v371_v26 = vpop.permute.xlu0 %370  ;;  %v292_v16 = vmul.f32 %v291_v0, %v288_v10 }
 0x2bb   :  { %804 = vrot.lane.b32.xlu1 %v799_v2, %s1857_s24  ;;  %v373_v13 = vsel %vm92_vm2, %v371_v26, %v2306_v19  ;;  %v773_v26 = vmul.f32 %v2293_v60, %v291_v0 }
 0x2bc   :  { %344 = vrot.lane.b32.xlu0 %v320_v42, %s1858_s30  ;;  %v375_v15 = vsel %vm39_vm4, %v373_v13, 0.0  ;;  %v253_v42 = vstv %s1695_s19  ;;  %v2484_v13 = vstv %s2437_s1  ;;  %s2830_s19 = sld [smem:[#allocation2 + $0x27]]  ;;  %s3056_s1 = sld [smem:[#allocation2 + $0x2e]] }
 0x2bd   :  { %v843_v12 = vpop.permute.xlu1 %842 }
 0x2be   :  { %v369_v6 = vpop.permute.xlu0 %368  ;;  %v845_v17 = vsel %vm92_vm2, %v843_v12, %v2313_v5  ;;  %v353_v12 = vstv %s2435_s22  ;;  %s1737_s22 = sld [smem:[#allocation2 + $0x32]] }
 0x2bf   :  { %346 = vrot.lane.b32.xlu1 %v321_v40, %s1858_s30  ;;  %v372_v51 = vsel %vm92_vm2, %v369_v6, %v2319_v22  ;;  %v847_v33 = vsel %vm39_vm4, %v845_v17, 0.0 }
 0x2c0   :  { %818 = vrot.lane.b32.xlu0 %v798_v44, %s1858_s30  ;;  %v2457_v44 = vmul.f32 %v2263_v45, %v2433_v37 }
 0x2c1   :  { %v841_v14 = vpop.permute.xlu1 %840 }
 0x2c2   :  { %v844_v23 = vsel %vm92_vm2, %v841_v14, %v2325_v11 }
 0x2c3   :  { %820 = vrot.lane.b32.xlu1 %v799_v2, %s1858_s30  ;;  %v293_v2 = vmul.f32 %v291_v0, %v2287_v59  ;;  %v772_v59 = vmul.f32 %v770_v43, %v291_v0 }
 0x2c4   :  { %378 = vrot.lane.b32.xlu0 %v372_v51, %s1857_s24 }
 0x2c7   :  { %276 = vrot.lane.b32.xlu1 %v269_v53, %s1857_s24 }
 0x2c8   :  { %274 = vrot.lane.b32.xlu0 %v270_v61, %s1857_s24 }
 0x2cb   :  { %760 = vrot.lane.b32.xlu1 %v753_v3, %s1857_s24 }
 0x2cc   :  { %758 = vrot.lane.b32.xlu0 %v754_v4, %s1857_s24 }
 0x2cf   :  { %298 = vrot.lane.b32.xlu1 %v269_v53, %s1858_s30  ;;  %v305_v53 = vstv %s2431_s21  ;;  %s1745_s21 = sld [smem:[#allocation2 + $0x30]] }
 0x2d0   :  { %296 = vrot.lane.b32.xlu0 %v270_v61, %s1858_s30 }
 0x2d3   :  { %778 = vrot.lane.b32.xlu1 %v753_v3, %s1858_s30 }
 0x2d4   :  { %776 = vrot.lane.b32.xlu0 %v754_v4, %s1858_s30 }
 0x2d7   :  { %380 = vrot.lane.b32.xlu1 %v375_v15, %s1857_s24 }
 0x2d8   :  { %850 = vrot.lane.b32.xlu0 %v844_v23, %s1857_s24 }
 0x2db   :  { %852 = vrot.lane.b32.xlu1 %v847_v33, %s1857_s24 }
 0x2dc   :  { %400 = vrot.lane.b32.xlu0 %v372_v51, %s1858_s30 }
 0x2df   :  { %402 = vrot.lane.b32.xlu1 %v375_v15, %s1858_s30 }
 0x2e0   :  { %868 = vrot.lane.b32.xlu0 %v844_v23, %s1858_s30 }
 0x2e3   :  { %870 = vrot.lane.b32.xlu1 %v847_v33, %s1858_s30 }
 0x316   :  { %v327_v38 = vpop.permute.xlu1 %326 }
 0x317   :  { %v331_v61 = vsel %vm40_vm5, %v327_v38, 0.0 }
 0x318   :  { %v335_v7 = vmul.f32 %v333_v49, %v331_v61 }
 0x31e   :  { %v325_v36 = vpop.permute.xlu0 %324 }
 0x31f   :  { %v330_v60 = vsel %vm40_vm5, %v325_v36, 0.0 }
 0x320   :  { %v334_v36 = vmul.f32 %v333_v49, %v330_v60 }
 0x32a   :  { %v803_v25 = vpop.permute.xlu0 %802 }
 0x32b   :  { %v808_v22 = vsel %vm40_vm5, %v803_v25, 0.0 }
 0x32d   :  { %v805_v8 = vpop.permute.xlu1 %804 }
 0x32e   :  { %v2421_v34 = vpop.permute.xlu0 %344  ;;  %v809_v15 = vsel %vm40_vm5, %v805_v8, 0.0  ;;  %v810_v8 = vmul.f32 %v808_v22, %v333_v49 }
 0x331   :  { %v347_v29 = vpop.permute.xlu1 %346 }
 0x332   :  { %v2423_v30 = vpop.permute.xlu0 %818  ;;  %v351_v25 = vsel %vm41_vm6, %v347_v29, 0.0 }
 0x335   :  { %v2425_v31 = vpop.permute.xlu1 %820 }
 0x336   :  { %v2427_v27 = vpop.permute.xlu0 %378  ;;  %v825_v29 = vsel %vm41_vm6, %v2425_v31, 0.0 }
 0x337   :  { %v384_v60 = vsel %vm40_vm5, %v2427_v27, 0.0 }
 0x339   :  { %v277_v35 = vpop.permute.xlu1 %276 }
 0x33a   :  { %v281_v20 = vsel %vm40_vm5, %v277_v35, 0.0  ;;  %v275_v40 = vpop.permute.xlu0 %274 }
 0x33b   :  { %v285_v39 = vmul.f32 %v283_v32, %v281_v20  ;;  %v280_v21 = vsel %vm40_vm5, %v275_v40, 0.0  ;;  %v350_v40 = vsel %vm41_vm6, %v2421_v34, 0.0 }
 0x33c   :  { %v284_v47 = vmul.f32 %v283_v32, %v280_v21  ;;  %v354_v61 = vmul.f32 %v353_v12, %v350_v40  ;;  %v864_v40 = vmul.f32 %v2325_v11, %v2444_v41 }
 0x33d   :  { %v761_v46 = vpop.permute.xlu1 %760  ;;  %v287_v45 = vadd.f32 %v285_v39, %v253_v42  ;;  %v811_v39 = vmul.f32 %v809_v15, %v333_v49  ;;  %v409_v15 = vstv %s2492_s25  ;;  %s3058_s25 = sld [smem:[#allocation2 + $0x2b]] }
 0x33e   :  { %v765_v1 = vsel %vm40_vm5, %v761_v46, 0.0  ;;  %v759_v51 = vpop.permute.xlu0 %758  ;;  %v286_v62 = vadd.f32 %v284_v47, %v253_v42 }
 0x33f   :  { %v767_v6 = vmul.f32 %v765_v1, %v283_v32  ;;  %v764_v19 = vsel %vm40_vm5, %v759_v51, 0.0  ;;  %v295_v23 = vadd.f32 %v293_v2, %v287_v45  ;;  %v355_v1 = vmul.f32 %v353_v12, %v351_v25 }
 0x340   :  { %v766_v3 = vmul.f32 %v764_v19, %v283_v32  ;;  %v294_v20 = vadd.f32 %v292_v16, %v286_v62 }
 0x341   :  { %v299_v4 = vpop.permute.xlu1 %298  ;;  %v769_v17 = vadd.f32 %v767_v6, %v253_v42 }
 0x342   :  { %v303_v14 = vsel %vm41_vm6, %v299_v4, 0.0  ;;  %v297_v24 = vpop.permute.xlu0 %296  ;;  %v768_v38 = vadd.f32 %v766_v3, %v253_v42 }
 0x343   :  { %v307_v33 = vmul.f32 %v305_v53, %v303_v14  ;;  %v302_v32 = vsel %vm41_vm6, %v297_v24, 0.0  ;;  %v775_v47 = vadd.f32 %v773_v26, %v769_v17  ;;  %v824_v26 = vsel %vm41_vm6, %v2423_v30, 0.0 }
 0x344   :  { %v306_v0 = vmul.f32 %v305_v53, %v302_v32  ;;  %v774_v16 = vadd.f32 %v772_v59, %v768_v38  ;;  %v814_v14 = vmul.f32 %v2269_v52, %v2433_v37  ;;  %v388_v30 = vmul.f32 %v2484_v13, %v384_v60 }
 0x345   :  { %v309_v35 = vadd.f32 %v307_v33, %v295_v23  ;;  %v779_v10 = vpop.permute.xlu1 %778  ;;  %v826_v24 = vmul.f32 %v824_v26, %v353_v12 }
 0x346   :  { %v783_v42 = vsel %vm41_vm6, %v779_v10, 0.0  ;;  %v308_v43 = vadd.f32 %v306_v0, %v294_v20  ;;  %v777_v2 = vpop.permute.xlu0 %776 }
 0x347   :  { %v337_v21 = vadd.f32 %v335_v7, %v309_v35  ;;  %v785_v46 = vmul.f32 %v783_v42, %v305_v53  ;;  %v782_v45 = vsel %vm41_vm6, %v777_v2, 0.0  ;;  %v397_v35 = vmul.f32 %v2444_v41, %v2463_v28 }
 0x348   :  { %v336_v6 = vadd.f32 %v334_v36, %v308_v43  ;;  %v784_v34 = vmul.f32 %v782_v45, %v305_v53  ;;  %v827_v53 = vmul.f32 %v825_v29, %v353_v12 }
 0x349   :  { %v787_v51 = vadd.f32 %v785_v46, %v775_v47  ;;  %v343_v49 = vadd.f32 %v341_v48, %v337_v21  ;;  %v381_v19 = vpop.permute.xlu1 %380 }
 0x34a   :  { %v385_v31 = vsel %vm40_vm5, %v381_v19, 0.0  ;;  %v342_v59 = vadd.f32 %v340_v63, %v336_v6  ;;  %v786_v3 = vadd.f32 %v784_v34, %v774_v16  ;;  %v851_v22 = vpop.permute.xlu0 %850 }
 0x34b   :  { %v813_v62 = vadd.f32 %v811_v39, %v787_v51  ;;  %v357_v4 = vadd.f32 %v355_v1, %v343_v49  ;;  %v389_v48 = vmul.f32 %v2484_v13, %v385_v31  ;;  %v856_v7 = vsel %vm40_vm5, %v851_v22, 0.0 }
 0x34c   :  { %v812_v17 = vadd.f32 %v810_v8, %v786_v3  ;;  %v356_v33 = vadd.f32 %v354_v61, %v342_v59  ;;  %v858_v0 = vmul.f32 %v856_v7, %v2484_v13 }
 0x34d   :  { %v817_v27 = vadd.f32 %v2457_v44, %v813_v62  ;;  %v853_v23 = vpop.permute.xlu1 %852  ;;  %v391_v63 = vadd.f32 %v389_v48, %v357_v4  ;;  %v863_v44 = vsel %vm39_vm4, %v2313_v5, 0.0  ;;  %v42_v48 = vld [vmem:[%s3185_s2] sm:$0xf]  ;;  %s1708_s2 = sld [smem:[#allocation2 + $0x1a]] }
 0x34e   :  { %v857_v36 = vsel %vm40_vm5, %v853_v23, 0.0  ;;  %v816_v38 = vadd.f32 %v814_v14, %v812_v17  ;;  %v390_v37 = vadd.f32 %v388_v30, %v356_v33  ;;  %v401_v25 = vpop.permute.xlu0 %400  ;;  %v865_v2 = vmul.f32 %v863_v44, %v2444_v41 }
 0x34f   :  { %v829_v32 = vadd.f32 %v827_v53, %v817_v27  ;;  %v859_v52 = vmul.f32 %v857_v36, %v2484_v13  ;;  %v406_v12 = vsel %vm41_vm6, %v401_v25, 0.0  ;;  %v399_v5 = vadd.f32 %v397_v35, %v391_v63 }
 0x350   :  { %v828_v20 = vadd.f32 %v826_v24, %v816_v38  ;;  %v398_v10 = vadd.f32 %v2470_v9, %v390_v37  ;;  %v410_v8 = vmul.f32 %v409_v15, %v406_v12  ;;  %v1861_v53 = vmov 3  }
 0x351   :  { %v403_v39 = vpop.permute.xlu1 %402  ;;  %v861_v42 = vadd.f32 %v859_v52, %v829_v32  ;;  %v444_v14 = vsub.s32 1, %v1949_v54 }
 0x352   :  { %v407_v28 = vsel %vm41_vm6, %v403_v39, 0.0  ;;  %v860_v21 = vadd.f32 %v858_v0, %v828_v20  ;;  %v412_v43 = vadd.f32 %v410_v8, %v398_v10  ;;  %v869_v46 = vpop.permute.xlu0 %868  ;;  %v460_v20 = vsub.s32 2, %v1949_v54 }
 0x353   :  { %v411_v47 = vmul.f32 %v409_v15, %v407_v28  ;;  %v874_v13 = vsel %vm41_vm6, %v869_v46, 0.0  ;;  %v867_v11 = vadd.f32 %v865_v2, %v861_v42  ;;  %v445_v17 = vrot.slane %v42_v48, %v444_v14 }
 0x354   :  { %v414_v9 = vmax.f32 %v412_v43, 0.0  ;;  %v866_v29 = vadd.f32 %v864_v40, %v860_v21  ;;  %v876_v16 = vmul.f32 %v874_v13, %v409_v15  ;;  %v461_v43 = vrot.slane %v42_v48, %v460_v20 }
 0x355   :  { %v413_v1 = vadd.f32 %v411_v47, %v399_v5  ;;  %v871_v45 = vpop.permute.xlu1 %870 }
 0x356   :  { %v875_v6 = vsel %vm41_vm6, %v871_v45, 0.0  ;;  %v878_v34 = vadd.f32 %v876_v16, %v866_v29  ;;  %v2544_v19 = vadd.f32 %v414_v9, %v1955_v58 }
 0x357   :  { %v415_v51 = vmax.f32 %v413_v1, 0.0  ;;  %v877_v49 = vmul.f32 %v875_v6, %v409_v15 }
 0x358   :  { %v880_v41 = vmax.f32 %v878_v34, 0.0  ;;  %v419_v26 = vsel %vm418_vm7, %v2544_v19, 0.0 }
 0x359   :  { %v879_v61 = vadd.f32 %v877_v49, %v867_v11  ;;  %420 = vadd.xlane.f32.xlu0 %v419_v26  ;;  %v2549_v60 = vadd.f32 %v415_v51, %v1944_v50 }
 0x35a   :  { %v2552_v59 = vadd.f32 %v880_v41, %v1951_v56  ;;  %v43_v56 = vld [vmem:[%s3186_s3] sm:$0xff]  ;;  %s1705_s3 = sld [smem:[#allocation2 + $0x19]] }
 0x35b   :  { %v881_v31 = vmax.f32 %v879_v61, 0.0  ;;  %v422_v62 = vsel %vm418_vm7, %v2549_v60, 0.0 }
 0x35c   :  { %423 = vadd.xlane.f32.xlu1 %v422_v62  ;;  %v2556_v3 = vadd.f32 %v422_v62, %v419_v26  ;;  %v884_v58 = vsel %vm418_vm7, %v2552_v59, 0.0 }
 0x35d   :  { %v2561_v4 = vadd.f32 %v881_v31, %v1953_v57  ;;  %885 = vadd.xlane.f32.xlu0 %v884_v58  ;;  %v438_v57 = vsub.s32 0, %v1949_v54 }
 0x35f   :  { %v887_v50 = vsel %vm418_vm7, %v2561_v4, 0.0  ;;  %v439_v15 = vrot.slane %v42_v48, %v438_v57 }
 0x360   :  { %v2565_v22 = vadd.f32 %v887_v50, %v884_v58  ;;  %v429_v58 = vrot.slane %v2556_v3, 4 }
 0x361   :  { %888 = vadd.xlane.f32.xlu0 %v887_v50 }
 0x362   :  { %v430_v50 = vadd.f32 %v429_v58, %v2556_v3 }
 0x36d   :  { %489 = vperm.xlu1 %1781, %v43_v56  }
 0x371   :  { %1783 = vset.pattern.permute.xlu1 %v1861_v53 }
 0x372   :  { %504 = vperm.xlu1 %1783, %v43_v56  }
 0x377   :  { %494 = vperm.xlu0 %1782, %v43_v56   ;;  %v893_v56 = vrot.slane %v2565_v22, 4 }
 0x379   :  { %v894_v57 = vadd.f32 %v893_v56, %v2565_v22 }
 0x37b   :  { %1784 = vset.pattern.permute.xlu0 %v1861_v53  ;;  %v431_v53 = vrot.slane %v430_v50, 2  ;;  %v895_v14 = vrot.slane %v894_v57, 2 }
 0x37d   :  { %v432_v48 = vadd.f32 %v431_v53, %v430_v50 }
 0x3e6   :  { %v421_v30 = vpop.xlane.xlu0 %420 }
 0x3e7   :  { %v426_v27 = vmul.f32 0.0625, %v421_v30  ;;  %v896_v30 = vadd.f32 %v895_v14, %v894_v57 }
 0x3e9   :  { %v440_v23 = vmul.f32 %v439_v15, %v426_v27  ;;  %v424_v33 = vpop.xlane.xlu1 %423  ;;  %v897_v27 = vrot.slane %v896_v30, 1 }
 0x3ea   :  { %v427_v24 = vmul.f32 0.0625, %v424_v33  ;;  %v886_v63 = vpop.xlane.xlu0 %885 }
 0x3eb   :  { %v446_v7 = vadd.f32 %v445_v17, %v440_v23  ;;  %v890_v36 = vmul.f32 0.0625, %v886_v63 }
 0x3ec   :  { %v441_v38 = vmul.f32 %v439_v15, %v427_v24  ;;  %v898_v24 = vadd.f32 %v897_v27, %v896_v30 }
 0x3ed   :  { %v448_v32 = vadd.f32 3.0, %v446_v7  ;;  %v900_v52 = vmul.f32 %v890_v36, %v439_v15  ;;  %v490_v23 = vpop.permute.xlu1 %489 }
 0x3ee   :  { %v447_v37 = vadd.f32 %v445_v17, %v441_v38  ;;  %v889_v25 = vpop.xlane.xlu0 %888  ;;  %v899_v38 = vmul.f32 0.0625, %v898_v24 }
 0x3ef   :  { %v450_v35 = vmax.f32 %v448_v32, 0.0  ;;  %v902_v44 = vadd.f32 %v900_v52, %v445_v17  ;;  %v891_v12 = vmul.f32 0.0625, %v889_v25 }
 0x3f0   :  { %v449_v0 = vadd.f32 3.0, %v447_v37  ;;  %v936_v32 = vmul.f32 %v899_v38, %v490_v23 }
 0x3f1   :  { %v904_v10 = vadd.f32 3.0, %v902_v44  ;;  %v901_v8 = vmul.f32 %v891_v12, %v439_v15  ;;  %v452_v39 = vmin.f32 %v450_v35, 6.0  ;;  %v433_v15 = vrot.slane %v432_v48, 1 }
 0x3f2   :  { %v451_v40 = vmax.f32 %v449_v0, 0.0 }
 0x3f3   :  { %v906_v42 = vmax.f32 %v904_v10, 0.0  ;;  %v903_v28 = vadd.f32 %v901_v8, %v445_v17  ;;  %v454_v21 = vmul.f32 %v452_v39, %v446_v7  ;;  %v434_v17 = vadd.f32 %v433_v15, %v432_v48  ;;  %v505_v10 = vpop.permute.xlu1 %504 }
 0x3f4   :  { %v453_v5 = vmin.f32 %v451_v40, 6.0 }
 0x3f5   :  { %v905_v47 = vadd.f32 3.0, %v903_v28  ;;  %v456_v46 = vmul.f32 0.16666667, %v454_v21  ;;  %v908_v2 = vmin.f32 %v906_v42, 6.0  ;;  %v435_v33 = vmul.f32 0.0625, %v434_v17 }
 0x3f6   :  { %v455_v13 = vmul.f32 %v453_v5, %v447_v37  ;;  %v495_v63 = vpop.permute.xlu0 %494 }
 0x3f7   :  { %v907_v9 = vmax.f32 %v905_v47, 0.0  ;;  %v462_v1 = vmul.f32 %v461_v43, %v456_v46  ;;  %v910_v16 = vmul.f32 %v908_v2, %v902_v44  ;;  %v492_v7 = vmul.f32 %v490_v23, %v435_v33 }
 0x3f8   :  { %v457_v29 = vmul.f32 0.16666667, %v455_v13  ;;  %v937_v52 = vadd.f32 %v936_v32, %v495_v63 }
 0x3f9   :  { %v465_v45 = vsel %vm464_vm8, %v462_v1, 0.0  ;;  %v909_v11 = vmin.f32 %v907_v9, 6.0  ;;  %v912_v51 = vmul.f32 0.16666667, %v910_v16  ;;  %v497_v36 = vadd.f32 %v495_v63, %v492_v7 }
 0x3fa   :  { %466 = vadd.xlane.f32.xlu1 %v465_v45  ;;  %v463_v6 = vmul.f32 %v461_v43, %v457_v29  ;;  %v938_v25 = vadd.f32 3.0, %v937_v52  ;;  %v516_v16 = vstv %s1708_s2  ;;  %s1829_s2 = scalar_lea.vmem %s1664_s28, 512 }
 0x3fb   :  { %v911_v34 = vmul.f32 %v909_v11, %v903_v28  ;;  %v914_v41 = vmul.f32 %v912_v51, %v461_v43  ;;  %v498_v3 = vadd.f32 3.0, %v497_v36  ;;  %p1830_p5 = scmp.ne.s32.totalorder %s1664_s28, %s1829_s2  ;;  %p1835_p7 = scmp.lt.s32.totalorder %s1829_s2, %s1829_s2 }
 0x3fc   :  { %v468_v49 = vsel %vm464_vm8, %v463_v6, 0.0  ;;  %v939_v22 = vmax.f32 %v938_v25, 0.0 }
 0x3fd   :  { %469 = vadd.xlane.f32.xlu0 %v468_v49  ;;  %v913_v61 = vmul.f32 0.16666667, %v911_v34  ;;  %v916_v26 = vsel %vm464_vm8, %v914_v41, 0.0  ;;  %v499_v37 = vmax.f32 %v498_v3, 0.0  ;;  %v472_v49 = vstv %s1705_s3  ;;  %p1836_p8 = por %p1835_p7, %p1834_p6 }
 0x3fe   :  { %917 = vadd.xlane.f32.xlu1 %v916_v26  ;;  %v940_v12 = vmin.f32 %v939_v22, 6.0 }
 0x3ff   :  { %v915_v31 = vmul.f32 %v913_v61, %v461_v43  ;;  %v500_v35 = vmin.f32 %v499_v37, 6.0  ;;  %p1837_p9 = pnand %p1836_p8, %p1830_p5 }
 0x400   :  { %v941_v0 = vmul.f32 %v940_v12, %v937_v52 }
 0x401   :  { %v919_v62 = vsel %vm464_vm8, %v915_v31, 0.0  ;;  %v501_v44 = vmul.f32 %v500_v35, %v497_v36 }
 0x402   :  { %920 = vadd.xlane.f32.xlu1 %v919_v62  ;;  %v942_v39 = vmul.f32 0.16666667, %v941_v0 }
 0x403   :  { %v502_v20 = vmul.f32 0.16666667, %v501_v44 }
 0x404   :  { %v943_v42 = vmul.f32 %v942_v39, %v505_v10 }
 0x405   :  { %v507_v8 = vmul.f32 %v505_v10, %v502_v20 }
 0x406   :  { %v944_v21 = vsel %vm418_vm7, %v943_v42, 0.0 }
 0x407   :  { %v508_v40 = vsel %vm418_vm7, %v507_v8, 0.0  ;;  %v945_v5 = vrot.slane %v944_v21, 4 }
 0x408   :  { %v509_v28 = vrot.slane %v508_v40, 4 }
 0x409   :  { %v946_v46 = vadd.f32 %v945_v5, %v944_v21 }
 0x40a   :  { %v510_v43 = vadd.f32 %v509_v28, %v508_v40 }
 0x40b   :  { %v947_v13 = vrot.slane %v946_v46, 2 }
 0x40c   :  { %v511_v47 = vrot.slane %v510_v43, 2 }
 0x40d   :  { %v948_v1 = vadd.f32 %v947_v13, %v946_v46 }
 0x40e   :  { %v512_v2 = vadd.f32 %v511_v47, %v510_v43 }
 0x40f   :  { %v949_v45 = vrot.slane %v948_v1, 1 }
 0x410   :  { %v513_v9 = vrot.slane %v512_v2, 1 }
 0x411   :  { %v950_v6 = vadd.f32 %v949_v45, %v948_v1 }
 0x412   :  { %v514_v29 = vadd.f32 %v513_v9, %v512_v2 }
 0x413   :  { %v951_v34 = vadd.f32 %v950_v6, %v516_v16 }
 0x414   :  { %v517_v11 = vadd.f32 %v516_v16, %v514_v29 }
 0x415   :  { %v1725_v41 = vmul.f32 -1.442695, %v951_v34 }
 0x416   :  { %v1709_v51 = vmul.f32 -1.442695, %v517_v11 }
 0x418   :  { %1785 = vpow2.f32 %v1709_v51 }
 0x419   :  { %1787 = vpow2.f32 %v1725_v41 }
 0x422   :  { %v1786_v57 = vpop.eup %1785 }
 0x423   :  { %v521_v30 = vadd.f32 1.0, %v1786_v57  ;;  %v1788_v27 = vpop.eup %1787 }
 0x424   :  { %v955_v33 = vadd.f32 1.0, %v1788_v27 }
 0x487   :  { %v467_v61 = vpop.xlane.xlu1 %466 }
 0x488   :  { %v473_v26 = vadd.f32 %v472_v49, %v467_v61 }
 0x48a   :  { %v1706_v31 = vmul.f32 -1.442695, %v473_v26  ;;  %v470_v62 = vpop.xlane.xlu0 %469 }
 0x48b   :  { %v474_v58 = vadd.f32 %v472_v49, %v470_v62  ;;  %v918_v50 = vpop.xlane.xlu1 %917 }
 0x48c   :  { %1789 = vpow2.f32 %v1706_v31  ;;  %v922_v53 = vadd.f32 %v918_v50, %v472_v49  ;;  %v544_v31 = vstv %s1710_s29 }
 0x48d   :  { %v1707_v56 = vmul.f32 -1.442695, %v474_v58  ;;  %v547_v58 = vstv %s1711_s5 }
 0x48e   :  { %v1723_v48 = vmul.f32 -1.442695, %v922_v53  ;;  %v551_v53 = vstv %s1712_s6 }
 0x48f   :  { %1791 = vpow2.f32 %v1707_v56  ;;  %v921_v14 = vpop.xlane.xlu1 %920 }
 0x490   :  { %1793 = vpow2.f32 %v1723_v48  ;;  %v923_v15 = vadd.f32 %v921_v14, %v472_v49 }
 0x492   :  { %v1724_v17 = vmul.f32 -1.442695, %v923_v15  ;;  %v554_v15 = vstv %s1713_s8 }
 0x494   :  { %1795 = vpow2.f32 %v1724_v17 }
 0x495   :  { %1797 = vrcp.f32 %v521_v30 }
 0x496   :  { %v1790_v23 = vpop.eup %1789 }
 0x497   :  { %v481_v24 = vadd.f32 1.0, %v1790_v23 }
 0x499   :  { %v1792_v63 = vpop.eup %1791  ;;  %1799 = vrcp.f32 %v481_v24 }
 0x49a   :  { %v482_v7 = vadd.f32 1.0, %v1792_v63  ;;  %v1794_v36 = vpop.eup %1793  ;;  %1801 = vrcp.f32 %v955_v33 }
 0x49b   :  { %v930_v38 = vadd.f32 1.0, %v1794_v36 }
 0x49c   :  { %1803 = vrcp.f32 %v482_v7 }
 0x49d   :  { %1805 = vrcp.f32 %v930_v38 }
 0x49e   :  { %v1796_v32 = vpop.eup %1795 }
 0x49f   :  { %v1798_v3 = vpop.eup %1797  ;;  %v931_v52 = vadd.f32 1.0, %v1796_v32 }
 0x4a0   :  { %v524_v25 = vmul.f32 %v1798_v3, %v2544_v19  ;;  %v525_v22 = vmul.f32 %v1798_v3, %v2549_v60 }
 0x4a1   :  { %1807 = vrcp.f32 %v931_v52 }
 0x4a3   :  { %v1800_v37 = vpop.eup %1799 }
 0x4a4   :  { %v1802_v35 = vpop.eup %1801  ;;  %v526_v44 = vmul.f32 %v1800_v37, %v524_v25 }
 0x4a5   :  { %v958_v39 = vmul.f32 %v1802_v35, %v2552_v59  ;;  %v959_v42 = vmul.f32 %v1802_v35, %v2561_v4 }
 0x4a6   :  { %v1804_v12 = vpop.eup %1803  ;;  %v528_v10 = vsel %vm418_vm7, %v526_v44, 0.0  ;;  %v990_v44 = vmax.f32 %v2549_v60, 1e-06 }
 0x4a7   :  { %v527_v20 = vmul.f32 %v1804_v12, %v525_v22  ;;  %v1806_v0 = vpop.eup %1805  ;;  %v989_v22 = vmax.f32 %v2544_v19, 1e-06  ;;  %v1323_v12 = vmax.f32 %v2552_v59, 1e-06 }
 0x4a8   :  { %v960_v28 = vmul.f32 %v1806_v0, %v958_v39 }
 0x4a9   :  { %v529_v8 = vsel %vm418_vm7, %v527_v20, 0.0  ;;  %v1324_v20 = vmax.f32 %v2561_v4, 1e-06 }
 0x4aa   :  { %v530_v40 = vadd.f32 %v529_v8, %v528_v10  ;;  %v962_v5 = vsel %vm418_vm7, %v960_v28, 0.0 }
 0x4ab   :  { %v1808_v21 = vpop.eup %1807 }
 0x4ac   :  { %531 = vadd.xlane.f32.xlu1 %v530_v40  ;;  %v961_v43 = vmul.f32 %v1808_v21, %v959_v42 }
 0x4ae   :  { %v963_v47 = vsel %vm418_vm7, %v961_v43, 0.0 }
 0x4af   :  { %v964_v46 = vadd.f32 %v963_v47, %v962_v5 }
 0x4b1   :  { %965 = vadd.xlane.f32.xlu1 %v964_v46 }
 0x539   :  { %v532_v2 = vpop.xlane.xlu1 %531 }
 0x53a   :  { %v533_v13 = vrot.slane %v532_v2, 4 }
 0x53c   :  { %v534_v9 = vadd.f32 %v533_v13, %v532_v2 }
 0x53e   :  { %v535_v1 = vrot.slane %v534_v9, 2  ;;  %v966_v29 = vpop.xlane.xlu1 %965 }
 0x53f   :  { %v967_v16 = vrot.slane %v966_v29, 4 }
 0x540   :  { %v536_v45 = vadd.f32 %v535_v1, %v534_v9 }
 0x541   :  { %v968_v11 = vadd.f32 %v967_v16, %v966_v29 }
 0x542   :  { %v537_v6 = vrot.slane %v536_v45, 1 }
 0x543   :  { %v969_v34 = vrot.slane %v968_v11, 2 }
 0x544   :  { %v538_v51 = vadd.f32 %v537_v6, %v536_v45 }
 0x545   :  { %v970_v49 = vadd.f32 %v969_v34, %v968_v11 }
 0x546   :  { %1767 = vpush %v538_v51 }
 0x547   :  { %v971_v41 = vrot.slane %v970_v49, 1 }
 0x549   :  { %v972_v61 = vadd.f32 %v971_v41, %v970_v49 }
 0x54b   :  { %1769 = vpush %v972_v61 }
 0x577   :  { %s1768_s7 = spop %1767 }
 0x578   :  { %v540_v26 = vstv %s1768_s7 }
 0x579   :  { %v542_v62 = vmul.f32 0.00390625, %v540_v26 }
 0x57b   :  { %v545_v50 = vmul.f32 %v544_v31, %v542_v62 }
 0x57c   :  { %s1770_s9 = spop %1769 }
 0x57d   :  { %v548_v56 = vadd.f32 %v547_v58, %v545_v50  ;;  %v974_v57 = vstv %s1770_s9 }
 0x57e   :  { %v975_v14 = vmul.f32 0.00390625, %v974_v57 }
 0x57f   :  { %v549_v48 = vmax.f32 %v548_v56, 0.0 }
 0x580   :  { %v976_v17 = vmul.f32 %v975_v14, %v544_v31 }
 0x581   :  { %v552_v30 = vmul.f32 %v551_v53, %v549_v48 }
 0x582   :  { %v977_v23 = vadd.f32 %v976_v17, %v547_v58 }
 0x583   :  { %v555_v27 = vadd.f32 %v554_v15, %v552_v30 }
 0x584   :  { %v978_v24 = vmax.f32 %v977_v23, 0.0 }
 0x585   :  { %v1714_v33 = vmul.f32 -1.442695, %v555_v27 }
 0x586   :  { %v979_v63 = vmul.f32 %v978_v24, %v551_v53 }
 0x587   :  { %1809 = vpow2.f32 %v1714_v33 }
 0x588   :  { %v980_v7 = vadd.f32 %v979_v63, %v554_v15 }
 0x58a   :  { %v1726_v36 = vmul.f32 -1.442695, %v980_v7 }
 0x58c   :  { %1811 = vpow2.f32 %v1726_v36 }
 0x591   :  { %v1810_v38 = vpop.eup %1809 }
 0x592   :  { %v559_v32 = vadd.f32 1.0, %v1810_v38 }
 0x594   :  { %1813 = vrcp.f32 %v559_v32 }
 0x596   :  { %v1812_v3 = vpop.eup %1811 }
 0x597   :  { %v984_v52 = vadd.f32 1.0, %v1812_v3 }
 0x599   :  { %1815 = vrcp.f32 %v984_v52 }
 0x59e   :  { %v1814_v37 = vpop.eup %1813 }
 0x5a3   :  { %v1816_v25 = vpop.eup %1815 }
 0x5a4   :  { %v987_v35 = vadd.f32 %v1816_v25, %v1814_v37 }
 0x5a6   :  { %v988_v0 = vmul.f32 0.5, %v987_v35 }
 0x5a8   :  { %v2598_v10 = vmin.f32 %v989_v22, %v988_v0  ;;  %v2600_v8 = vmin.f32 %v1323_v12, %v988_v0  ;;  %v2602_v39 = vmin.f32 %v1324_v20, %v988_v0  ;;  %v2604_v40 = vmin.f32 %v990_v44, %v988_v0 }
 0x5aa   :  { %1051 = vrot.lane.b32.xlu1 %v2598_v10, %s1856_s0  ;;  %v1329_v19 = vrot.slane %v2600_v8, 7  ;;  %v1330_v60 = vrot.slane %v2602_v39, 7  ;;  %v995_v59 = vrot.slane %v2598_v10, 7  ;;  %v996_v4 = vrot.slane %v2604_v40, 7 }
 0x5ab   :  { %v1433_v43 = vrot.slane %v2600_v8, 1  ;;  %v1434_v5 = vrot.slane %v2602_v39, 1  ;;  %v1099_v2 = vrot.slane %v2598_v10, 1  ;;  %v1100_v13 = vrot.slane %v2604_v40, 1 }
 0x5ac   :  { %v2614_v42 = vsel %vm89_vm0, %v1330_v60, %v1329_v19  ;;  %v2618_v28 = vsel %vm89_vm0, %v996_v4, %v995_v59  ;;  %v2628_v21 = vsel %vm89_vm0, %v995_v59, %v996_v4  ;;  %v2638_v47 = vsel %vm89_vm0, %v1329_v19, %v1330_v60 }
 0x5ad   :  { %1333 = vrot.lane.b32.xlu0 %v2614_v42, %s1856_s0  ;;  %v2644_v46 = vsel %vm195_vm1, %v1434_v5, %v1433_v43  ;;  %v2654_v9 = vsel %vm195_vm1, %v1433_v43, %v1434_v5  ;;  %v2660_v1 = vsel %vm195_vm1, %v1100_v13, %v1099_v2  ;;  %v2666_v29 = vsel %vm195_vm1, %v1099_v2, %v1100_v13 }
 0x5ae   :  { %999 = vrot.lane.b32.xlu1 %v2618_v28, %s1856_s0 }
 0x5b1   :  { %1054 = vrot.lane.b32.xlu0 %v2604_v40, %s1856_s0 }
 0x5b2   :  { %1002 = vrot.lane.b32.xlu1 %v2628_v21, %s1856_s0 }
 0x5b5   :  { %1388 = vrot.lane.b32.xlu0 %v2602_v39, %s1856_s0 }
 0x5b6   :  { %1336 = vrot.lane.b32.xlu1 %v2638_v47, %s1856_s0 }
 0x5b9   :  { %1440 = vrot.lane.b32.xlu0 %v2644_v46, %s1856_s0 }
 0x5ba   :  { %1385 = vrot.lane.b32.xlu1 %v2600_v8, %s1856_s0 }
 0x5bd   :  { %1437 = vrot.lane.b32.xlu0 %v2654_v9, %s1856_s0 }
 0x5be   :  { %1106 = vrot.lane.b32.xlu1 %v2660_v1, %s1856_s0 }
 0x5c2   :  { %1103 = vrot.lane.b32.xlu1 %v2666_v29, %s1856_s0 }
 0x61c   :  { %v1052_v16 = vpop.permute.xlu1 %1051 }
 0x61d   :  { %v1053_v45 = vsel %vm92_vm2, %v1052_v16, %v2598_v10 }
 0x61e   :  { %1057 = vrot.lane.b32.xlu1 %v1053_v45, %s1856_s0 }
 0x61f   :  { %v1334_v11 = vpop.permute.xlu0 %1333 }
 0x620   :  { %v1000_v6 = vpop.permute.xlu1 %999  ;;  %v1335_v26 = vsel %vm92_vm2, %v1334_v11, %v2614_v42 }
 0x621   :  { %v1001_v51 = vsel %vm92_vm2, %v1000_v6, %v2618_v28 }
 0x622   :  { %1005 = vrot.lane.b32.xlu1 %v1001_v51, %s1856_s0 }
 0x623   :  { %v1055_v34 = vpop.permute.xlu0 %1054 }
 0x624   :  { %v1056_v49 = vsel %vm92_vm2, %v1055_v34, %v2604_v40  ;;  %v1003_v41 = vpop.permute.xlu1 %1002 }
 0x625   :  { %v1004_v61 = vsel %vm92_vm2, %v1003_v41, %v2628_v21  ;;  %1059 = vrot.lane.b32.xlu0 %v1056_v49, %s1856_s0 }
 0x626   :  { %1007 = vrot.lane.b32.xlu1 %v1004_v61, %s1856_s0 }
 0x627   :  { %v1389_v62 = vpop.permute.xlu0 %1388 }
 0x628   :  { %v1337_v31 = vpop.permute.xlu1 %1336  ;;  %v1390_v57 = vsel %vm92_vm2, %v1389_v62, %v2602_v39 }
 0x629   :  { %1339 = vrot.lane.b32.xlu0 %v1335_v26, %s1856_s0  ;;  %v1338_v58 = vsel %vm92_vm2, %v1337_v31, %v2638_v47 }
 0x62b   :  { %v1441_v53 = vpop.permute.xlu0 %1440 }
 0x62c   :  { %v1386_v50 = vpop.permute.xlu1 %1385  ;;  %v1442_v15 = vsel %vm92_vm2, %v1441_v53, %v2644_v46 }
 0x62d   :  { %v1387_v56 = vsel %vm92_vm2, %v1386_v50, %v2600_v8  ;;  %1341 = vrot.lane.b32.xlu0 %v1338_v58, %s1856_s0  ;;  %v1024_v58 = vstv %s1728_s10 }
 0x62e   :  { %1391 = vrot.lane.b32.xlu1 %v1387_v56, %s1856_s0  ;;  %v1029_v56 = vsel %vm36_vm3, %v2618_v28, 0.0 }
 0x62f   :  { %v1438_v17 = vpop.permute.xlu0 %1437 }
 0x630   :  { %v1107_v48 = vpop.permute.xlu1 %1106  ;;  %v1439_v23 = vsel %vm92_vm2, %v1438_v17, %v2654_v9 }
 0x631   :  { %v1108_v14 = vsel %vm92_vm2, %v1107_v48, %v2660_v1  ;;  %1393 = vrot.lane.b32.xlu0 %v1390_v57, %s1856_s0  ;;  %v1032_v48 = vstv %s1729_s11 }
 0x632   :  { %1111 = vrot.lane.b32.xlu1 %v1108_v14, %s1856_s0  ;;  %v1080_v14 = vstv %s1732_s12 }
 0x634   :  { %v1104_v30 = vpop.permute.xlu1 %1103 }
 0x635   :  { %v1105_v27 = vsel %vm92_vm2, %v1104_v30, %v2666_v29  ;;  %1445 = vrot.lane.b32.xlu0 %v1442_v15, %s1856_s0  ;;  %v1363_v15 = vsel %vm36_vm3, %v2614_v42, 0.0 }
 0x636   :  { %1109 = vrot.lane.b32.xlu1 %v1105_v27, %s1856_s0  ;;  %v994_v27 = vstv %s1727_s13 }
 0x639   :  { %1443 = vrot.lane.b32.xlu0 %v1439_v23, %s1856_s0 }
 0x690   :  { %v1058_v33 = vpop.permute.xlu1 %1057 }
 0x691   :  { %v1061_v24 = vsel %vm92_vm2, %v1058_v33, %v2598_v10  ;;  %v2790_v33 = vstv %s1735_s14 }
 0x692   :  { %1065 = vrot.lane.b32.xlu1 %v1061_v24, %s1857_s24 }
 0x694   :  { %v1006_v63 = vpop.permute.xlu1 %1005 }
 0x695   :  { %v1009_v20 = vsel %vm92_vm2, %v1006_v63, %v2618_v28  ;;  %v2795_v28 = vsel %vm39_vm4, %v2660_v1, 0.0  ;;  %v1034_v63 = vmul.f32 %v1032_v48, %v2628_v21 }
 0x696   :  { %v1011_v19 = vsel %vm36_vm3, %v1009_v20, 0.0  ;;  %v1094_v20 = vstv %s2776_s17 }
 0x697   :  { %v1060_v7 = vpop.permute.xlu0 %1059 }
 0x698   :  { %v1062_v36 = vsel %vm92_vm2, %v1060_v7, %v2604_v40  ;;  %v1008_v32 = vpop.permute.xlu1 %1007  ;;  %v1033_v7 = vmul.f32 %v1032_v48, %v1029_v56 }
 0x699   :  { %1067 = vrot.lane.b32.xlu0 %v1062_v36, %s1857_s24  ;;  %v1010_v0 = vsel %vm92_vm2, %v1008_v32, %v2628_v21  ;;  %v1368_v32 = vmul.f32 %v2638_v47, %v1032_v48 }
 0x69b   :  { %v1340_v38 = vpop.permute.xlu0 %1339 }
 0x69c   :  { %v1343_v60 = vsel %vm92_vm2, %v1340_v38, %v2614_v42  ;;  %v1081_v42 = vmul.f32 %v1080_v14, %v2598_v10 }
 0x69d   :  { %v1345_v4 = vsel %vm36_vm3, %v1343_v60, 0.0 }
 0x69f   :  { %v1342_v3 = vpop.permute.xlu0 %1341 }
 0x6a0   :  { %v1392_v52 = vpop.permute.xlu1 %1391  ;;  %v1344_v59 = vsel %vm92_vm2, %v1342_v3, %v2638_v47  ;;  %v1367_v3 = vmul.f32 %v1363_v15, %v1032_v48 }
 0x6a1   :  { %v1395_v37 = vsel %vm92_vm2, %v1392_v52, %v2600_v8 }
 0x6a2   :  { %1399 = vrot.lane.b32.xlu1 %v1395_v37, %s1857_s24 }
 0x6a3   :  { %v1394_v25 = vpop.permute.xlu0 %1393 }
 0x6a4   :  { %v1396_v35 = vsel %vm92_vm2, %v1394_v25, %v2602_v39  ;;  %v1112_v22 = vpop.permute.xlu1 %1111  ;;  %v2806_v25 = vmul.f32 %v2600_v8, %v1080_v14 }
 0x6a5   :  { %1401 = vrot.lane.b32.xlu0 %v1396_v35, %s1857_s24  ;;  %v1114_v5 = vsel %vm92_vm2, %v1112_v22, %v2660_v1  ;;  %v1082_v1 = vmul.f32 %v1080_v14, %v2604_v40  ;;  %v1046_v22 = vstv %s2774_s16 }
 0x6a6   :  { %1085 = vrot.lane.b32.xlu1 %v1061_v24, %s1858_s30  ;;  %v1116_v13 = vsel %vm39_vm4, %v1114_v5, 0.0 }
 0x6a7   :  { %v1446_v43 = vpop.permute.xlu0 %1445 }
 0x6a8   :  { %v1110_v44 = vpop.permute.xlu1 %1109  ;;  %v1448_v16 = vsel %vm92_vm2, %v1446_v43, %v2644_v46 }
 0x6a9   :  { %1087 = vrot.lane.b32.xlu0 %v1062_v36, %s1858_s30  ;;  %v1113_v12 = vsel %vm92_vm2, %v1110_v44, %v2666_v29  ;;  %v1450_v11 = vsel %vm39_vm4, %v1448_v16, 0.0  ;;  %v1416_v44 = vmul.f32 %v2602_v39, %v1080_v14 }
 0x6aa   :  { %1419 = vrot.lane.b32.xlu1 %v1395_v37, %s1858_s30 }
 0x6ab   :  { %v1444_v2 = vpop.permute.xlu0 %1443 }
 0x6ac   :  { %v1447_v45 = vsel %vm92_vm2, %v1444_v2, %v2654_v9 }
 0x6ad   :  { %1421 = vrot.lane.b32.xlu0 %v1396_v35, %s1858_s30 }
 0x6ae   :  { %1119 = vrot.lane.b32.xlu1 %v1113_v12, %s1857_s24 }
 0x6b1   :  { %1017 = vrot.lane.b32.xlu0 %v1010_v0, %s1857_s24 }
 0x6b2   :  { %1015 = vrot.lane.b32.xlu1 %v1011_v19, %s1857_s24 }
 0x6b5   :  { %1351 = vrot.lane.b32.xlu0 %v1344_v59, %s1857_s24 }
 0x6b6   :  { %1349 = vrot.lane.b32.xlu1 %v1345_v4, %s1857_s24 }
 0x6b9   :  { %1039 = vrot.lane.b32.xlu0 %v1010_v0, %s1858_s30  ;;  %v2815_v0 = vstv %s2778_s18 }
 0x6ba   :  { %1037 = vrot.lane.b32.xlu1 %v1011_v19, %s1858_s30 }
 0x6bd   :  { %1373 = vrot.lane.b32.xlu0 %v1344_v59, %s1858_s30 }
 0x6be   :  { %1371 = vrot.lane.b32.xlu1 %v1345_v4, %s1858_s30 }
 0x6c1   :  { %1121 = vrot.lane.b32.xlu0 %v1116_v13, %s1857_s24 }
 0x6c2   :  { %1453 = vrot.lane.b32.xlu1 %v1447_v45, %s1857_s24 }
 0x6c5   :  { %1455 = vrot.lane.b32.xlu0 %v1450_v11, %s1857_s24 }
 0x6c6   :  { %1141 = vrot.lane.b32.xlu1 %v1113_v12, %s1858_s30  ;;  %v1074_v12 = vstv %s2772_s15 }
 0x6c9   :  { %1143 = vrot.lane.b32.xlu0 %v1116_v13, %s1858_s30 }
 0x6ca   :  { %1475 = vrot.lane.b32.xlu1 %v1447_v45, %s1858_s30 }
 0x6cd   :  { %1477 = vrot.lane.b32.xlu0 %v1450_v11, %s1858_s30 }
 0x704   :  { %v1066_v6 = vpop.permute.xlu1 %1065 }
 0x705   :  { %v1071_v47 = vsel %vm40_vm5, %v1066_v6, 0.0 }
 0x706   :  { %v1075_v13 = vmul.f32 %v1074_v12, %v1071_v47 }
 0x70b   :  { %v1068_v51 = vpop.permute.xlu0 %1067 }
 0x70c   :  { %v1072_v19 = vsel %vm40_vm5, %v1068_v51, 0.0 }
 0x70d   :  { %v1076_v6 = vmul.f32 %v1074_v12, %v1072_v19 }
 0x714   :  { %v1400_v34 = vpop.permute.xlu1 %1399 }
 0x715   :  { %v1405_v8 = vsel %vm40_vm5, %v1400_v34, 0.0 }
 0x716   :  { %v1409_v51 = vmul.f32 %v1405_v8, %v1074_v12 }
 0x717   :  { %v1402_v49 = vpop.permute.xlu0 %1401 }
 0x718   :  { %v2762_v41 = vpop.permute.xlu1 %1085  ;;  %v1406_v60 = vsel %vm40_vm5, %v1402_v49, 0.0 }
 0x719   :  { %v1091_v34 = vsel %vm41_vm6, %v2762_v41, 0.0 }
 0x71b   :  { %v2764_v61 = vpop.permute.xlu0 %1087 }
 0x71c   :  { %v2766_v26 = vpop.permute.xlu1 %1419  ;;  %v1092_v56 = vsel %vm41_vm6, %v2764_v61, 0.0 }
 0x71f   :  { %v2768_v31 = vpop.permute.xlu0 %1421 }
 0x720   :  { %v2770_v62 = vpop.permute.xlu1 %1119 }
 0x721   :  { %v1125_v61 = vsel %vm40_vm5, %v2770_v62, 0.0 }
 0x723   :  { %v1018_v50 = vpop.permute.xlu0 %1017 }
 0x724   :  { %v1022_v53 = vsel %vm40_vm5, %v1018_v50, 0.0  ;;  %v1016_v57 = vpop.permute.xlu1 %1015  ;;  %v1410_v50 = vmul.f32 %v1406_v60, %v1074_v12  ;;  %v1150_v60 = vstv %s2830_s19 }
 0x725   :  { %v1026_v30 = vmul.f32 %v1024_v58, %v1022_v53  ;;  %v1021_v17 = vsel %vm40_vm5, %v1016_v57, 0.0 }
 0x726   :  { %v1025_v23 = vmul.f32 %v1024_v58, %v1021_v17  ;;  %v1095_v17 = vmul.f32 %v1094_v20, %v1091_v34 }
 0x727   :  { %v1352_v24 = vpop.permute.xlu0 %1351  ;;  %v1028_v52 = vadd.f32 %v1026_v30, %v994_v27 }
 0x728   :  { %v1356_v36 = vsel %vm40_vm5, %v1352_v24, 0.0  ;;  %v1350_v38 = vpop.permute.xlu1 %1349  ;;  %v1027_v10 = vadd.f32 %v1025_v23, %v994_v27 }
 0x729   :  { %v1360_v37 = vmul.f32 %v1356_v36, %v1024_v58  ;;  %v1355_v21 = vsel %vm40_vm5, %v1350_v38, 0.0  ;;  %v1036_v43 = vadd.f32 %v1034_v63, %v1028_v52  ;;  %v1096_v63 = vmul.f32 %v1094_v20, %v1092_v56 }
 0x72a   :  { %v1359_v35 = vmul.f32 %v1355_v21, %v1024_v58  ;;  %v1035_v45 = vadd.f32 %v1033_v7, %v1027_v10  ;;  %v1425_v10 = vsel %vm41_vm6, %v2766_v26, 0.0 }
 0x72b   :  { %v1040_v40 = vpop.permute.xlu0 %1039  ;;  %v1362_v4 = vadd.f32 %v1360_v37, %v994_v27 }
 0x72c   :  { %v1044_v39 = vsel %vm41_vm6, %v1040_v40, 0.0  ;;  %v1038_v59 = vpop.permute.xlu1 %1037  ;;  %v1361_v16 = vadd.f32 %v1359_v35, %v994_v27 }
 0x72d   :  { %v1048_v5 = vmul.f32 %v1046_v22, %v1044_v39  ;;  %v1043_v2 = vsel %vm41_vm6, %v1038_v59, 0.0  ;;  %v1370_v15 = vadd.f32 %v1368_v32, %v1362_v4  ;;  %v1426_v32 = vsel %vm41_vm6, %v2768_v31, 0.0 }
 0x72e   :  { %v1047_v11 = vmul.f32 %v1046_v22, %v1043_v2  ;;  %v1369_v23 = vadd.f32 %v1367_v3, %v1361_v16  ;;  %v1137_v31 = vmul.f32 %v2790_v33, %v2666_v29  ;;  %v1429_v39 = vmul.f32 %v1425_v10, %v1094_v20 }
 0x72f   :  { %v1050_v49 = vadd.f32 %v1048_v5, %v1036_v43  ;;  %v1374_v58 = vpop.permute.xlu0 %1373 }
 0x730   :  { %v1049_v53 = vadd.f32 %v1047_v11, %v1035_v45  ;;  %v1378_v57 = vsel %vm41_vm6, %v1374_v58, 0.0  ;;  %v1372_v48 = vpop.permute.xlu1 %1371  ;;  %v1471_v58 = vmul.f32 %v2654_v9, %v2790_v33 }
 0x731   :  { %v1078_v14 = vadd.f32 %v1076_v6, %v1050_v49  ;;  %v1382_v30 = vmul.f32 %v1378_v57, %v1046_v22  ;;  %v1377_v41 = vsel %vm41_vm6, %v1372_v48, 0.0 }
 0x732   :  { %v1077_v27 = vadd.f32 %v1075_v13, %v1049_v53  ;;  %v1381_v24 = vmul.f32 %v1377_v41, %v1046_v22 }
 0x733   :  { %v1384_v7 = vadd.f32 %v1382_v30, %v1370_v15  ;;  %v1122_v36 = vpop.permute.xlu0 %1121  ;;  %v1084_v38 = vadd.f32 %v1082_v1, %v1078_v14  ;;  %v1129_v1 = vmul.f32 %v2815_v0, %v1125_v61 }
 0x734   :  { %v1083_v52 = vadd.f32 %v1081_v42, %v1077_v27  ;;  %v1383_v37 = vadd.f32 %v1381_v24, %v1369_v23  ;;  %v1126_v21 = vsel %vm40_vm5, %v1122_v36, 0.0  ;;  %v1454_v3 = vpop.permute.xlu1 %1453  ;;  %v1430_v42 = vmul.f32 %v1426_v32, %v1094_v20 }
 0x735   :  { %v1412_v35 = vadd.f32 %v1410_v50, %v1384_v7  ;;  %v1098_v62 = vadd.f32 %v1096_v63, %v1084_v38  ;;  %v1130_v22 = vmul.f32 %v2815_v0, %v1126_v21  ;;  %v1459_v40 = vsel %vm40_vm5, %v1454_v3, 0.0 }
 0x736   :  { %v1411_v12 = vadd.f32 %v1409_v51, %v1383_v37  ;;  %v1097_v47 = vadd.f32 %v1095_v17, %v1083_v52  ;;  %v1138_v20 = vmul.f32 %v2790_v33, %v2795_v28 }
 0x737   :  { %v1418_v19 = vadd.f32 %v1416_v44, %v1412_v35  ;;  %v1456_v8 = vpop.permute.xlu0 %1455  ;;  %v1132_v5 = vadd.f32 %v1130_v22, %v1098_v62  ;;  %v1463_v44 = vmul.f32 %v1459_v40, %v2815_v0 }
 0x738   :  { %v1417_v26 = vadd.f32 %v2806_v25, %v1411_v12  ;;  %v1460_v59 = vsel %vm40_vm5, %v1456_v8, 0.0  ;;  %v1131_v4 = vadd.f32 %v1129_v1, %v1097_v47  ;;  %v1142_v43 = vpop.permute.xlu1 %1141  ;;  %v1468_v25 = vsel %vm39_vm4, %v2644_v46, 0.0 }
 0x739   :  { %v1432_v2 = vadd.f32 %v1430_v42, %v1418_v19  ;;  %v1464_v13 = vmul.f32 %v1460_v59, %v2815_v0  ;;  %v1147_v29 = vsel %vm41_vm6, %v1142_v43, 0.0  ;;  %v1140_v56 = vadd.f32 %v1138_v20, %v1132_v5 }
 0x73a   :  { %v1431_v16 = vadd.f32 %v1429_v39, %v1417_v26  ;;  %v1139_v45 = vadd.f32 %v1137_v31, %v1131_v4  ;;  %v1151_v11 = vmul.f32 %v1150_v60, %v1147_v29  ;;  %v1472_v15 = vmul.f32 %v1468_v25, %v2790_v33 }
 0x73b   :  { %v1144_v6 = vpop.permute.xlu0 %1143  ;;  %v1466_v0 = vadd.f32 %v1464_v13, %v1432_v2 }
 0x73c   :  { %v1465_v51 = vadd.f32 %v1463_v44, %v1431_v16  ;;  %v1153_v34 = vadd.f32 %v1151_v11, %v1139_v45  ;;  %v1148_v49 = vsel %vm41_vm6, %v1144_v6, 0.0  ;;  %v1476_v50 = vpop.permute.xlu1 %1475 }
 0x73d   :  { %v1152_v53 = vmul.f32 %v1150_v60, %v1148_v49  ;;  %v1481_v57 = vsel %vm41_vm6, %v1476_v50, 0.0  ;;  %v1474_v27 = vadd.f32 %v1472_v15, %v1466_v0 }
 0x73e   :  { %v2875_v46 = vmax.f32 %v1153_v34, 0.0  ;;  %v1473_v48 = vadd.f32 %v1471_v58, %v1465_v51  ;;  %v1485_v28 = vmul.f32 %v1481_v57, %v1150_v60 }
 0x73f   :  { %v1154_v14 = vadd.f32 %v1152_v53, %v1140_v56  ;;  %v1478_v30 = vpop.permute.xlu0 %1477 }
 0x740   :  { %v1487_v41 = vadd.f32 %v1485_v28, %v1473_v48  ;;  %v1482_v17 = vsel %vm41_vm6, %v1478_v30, 0.0  ;;  %1215 = vrot.lane.b32.xlu1 %v2875_v46, %s1856_s0  ;;  %v1159_v33 = vrot.slane %v2875_v46, 7  ;;  %v1263_v10 = vrot.slane %v2875_v46, 1 }
 0x741   :  { %v2882_v9 = vmax.f32 %v1154_v14, 0.0  ;;  %v1486_v23 = vmul.f32 %v1482_v17, %v1150_v60 }
 0x742   :  { %v2884_v24 = vmax.f32 %v1487_v41, 0.0 }
 0x743   :  { %v1488_v63 = vadd.f32 %v1486_v23, %v1474_v27  ;;  %1218 = vrot.lane.b32.xlu0 %v2882_v9, %s1856_s0  ;;  %v1160_v61 = vrot.slane %v2882_v9, 7  ;;  %v1264_v3 = vrot.slane %v2882_v9, 1 }
 0x744   :  { %v1493_v38 = vrot.slane %v2884_v24, 7  ;;  %v1597_v22 = vrot.slane %v2884_v24, 1 }
 0x745   :  { %v2890_v7 = vmax.f32 %v1488_v63, 0.0  ;;  %v2894_v36 = vsel %vm89_vm0, %v1160_v61, %v1159_v33  ;;  %v2906_v37 = vsel %vm89_vm0, %v1159_v33, %v1160_v61  ;;  %v2924_v35 = vsel %vm195_vm1, %v1264_v3, %v1263_v10 }
 0x746   :  { %1163 = vrot.lane.b32.xlu1 %v2894_v36, %s1856_s0  ;;  %v2938_v12 = vsel %vm195_vm1, %v1263_v10, %v1264_v3 }
 0x747   :  { %v1494_v32 = vrot.slane %v2890_v7, 7  ;;  %v1598_v62 = vrot.slane %v2890_v7, 1 }
 0x749   :  { %v2902_v52 = vsel %vm89_vm0, %v1494_v32, %v1493_v38  ;;  %v2914_v21 = vsel %vm89_vm0, %v1493_v38, %v1494_v32  ;;  %v2934_v1 = vsel %vm195_vm1, %v1598_v62, %v1597_v22  ;;  %v2946_v47 = vsel %vm195_vm1, %v1597_v22, %v1598_v62 }
 0x74a   :  { %1497 = vrot.lane.b32.xlu0 %v2902_v52, %s1856_s0  ;;  %1166 = vrot.lane.b32.xlu1 %v2906_v37, %s1856_s0 }
 0x74e   :  { %1500 = vrot.lane.b32.xlu0 %v2914_v21, %s1856_s0  ;;  %1549 = vrot.lane.b32.xlu1 %v2884_v24, %s1856_s0 }
 0x752   :  { %1552 = vrot.lane.b32.xlu0 %v2890_v7, %s1856_s0  ;;  %1270 = vrot.lane.b32.xlu1 %v2924_v35, %s1856_s0 }
 0x756   :  { %1604 = vrot.lane.b32.xlu0 %v2934_v1, %s1856_s0  ;;  %1267 = vrot.lane.b32.xlu1 %v2938_v12, %s1856_s0 }
 0x75a   :  { %1601 = vrot.lane.b32.xlu0 %v2946_v47, %s1856_s0 }
 0x7b2   :  { %v1216_v31 = vpop.permute.xlu1 %1215 }
 0x7b3   :  { %v1217_v42 = vsel %vm92_vm2, %v1216_v31, %v2875_v46 }
 0x7b4   :  { %1221 = vrot.lane.b32.xlu1 %v1217_v42, %s1856_s0 }
 0x7b5   :  { %v1219_v40 = vpop.permute.xlu0 %1218 }
 0x7b6   :  { %v1220_v19 = vsel %vm92_vm2, %v1219_v40, %v2882_v9 }
 0x7b7   :  { %1223 = vrot.lane.b32.xlu0 %v1220_v19, %s1856_s0 }
 0x7b8   :  { %v1164_v8 = vpop.permute.xlu1 %1163 }
 0x7b9   :  { %v1165_v60 = vsel %vm92_vm2, %v1164_v8, %v2894_v36 }
 0x7ba   :  { %1169 = vrot.lane.b32.xlu1 %v1165_v60, %s1856_s0 }
 0x7bc   :  { %v1498_v39 = vpop.permute.xlu0 %1497  ;;  %v1167_v26 = vpop.permute.xlu1 %1166 }
 0x7bd   :  { %v1499_v59 = vsel %vm92_vm2, %v1498_v39, %v2902_v52  ;;  %v1168_v4 = vsel %vm92_vm2, %v1167_v26, %v2906_v37 }
 0x7be   :  { %1503 = vrot.lane.b32.xlu0 %v1499_v59, %s1856_s0  ;;  %1171 = vrot.lane.b32.xlu1 %v1168_v4, %s1856_s0 }
 0x7c0   :  { %v1501_v43 = vpop.permute.xlu0 %1500  ;;  %v1550_v5 = vpop.permute.xlu1 %1549 }
 0x7c1   :  { %v1502_v2 = vsel %vm92_vm2, %v1501_v43, %v2914_v21  ;;  %v1551_v13 = vsel %vm92_vm2, %v1550_v5, %v2884_v24 }
 0x7c2   :  { %1505 = vrot.lane.b32.xlu0 %v1502_v2, %s1856_s0  ;;  %1555 = vrot.lane.b32.xlu1 %v1551_v13, %s1856_s0  ;;  %v1244_v13 = vstv %s1742_s20 }
 0x7c4   :  { %v1553_v29 = vpop.permute.xlu0 %1552  ;;  %v1271_v16 = vpop.permute.xlu1 %1270 }
 0x7c5   :  { %v1554_v44 = vsel %vm92_vm2, %v1553_v29, %v2890_v7  ;;  %v1272_v45 = vsel %vm92_vm2, %v1271_v16, %v2924_v35 }
 0x7c6   :  { %1557 = vrot.lane.b32.xlu0 %v1554_v44, %s1856_s0  ;;  %1275 = vrot.lane.b32.xlu1 %v1272_v45, %s1856_s0  ;;  %v1193_v44 = vsel %vm36_vm3, %v2894_v36, 0.0 }
 0x7c8   :  { %v1605_v11 = vpop.permute.xlu0 %1604  ;;  %v1268_v25 = vpop.permute.xlu1 %1267 }
 0x7c9   :  { %v1606_v20 = vsel %vm92_vm2, %v1605_v11, %v2934_v1  ;;  %v1269_v6 = vsel %vm92_vm2, %v1268_v25, %v2938_v12 }
 0x7ca   :  { %1609 = vrot.lane.b32.xlu0 %v1606_v20, %s1856_s0  ;;  %1273 = vrot.lane.b32.xlu1 %v1269_v6, %s1856_s0 }
 0x7cc   :  { %v1602_v51 = vpop.permute.xlu0 %1601 }
 0x7cd   :  { %v1603_v34 = vsel %vm92_vm2, %v1602_v51, %v2946_v47  ;;  %v1245_v51 = vmul.f32 %v1244_v13, %v2875_v46 }
 0x7ce   :  { %1607 = vrot.lane.b32.xlu0 %v1603_v34, %s1856_s0  ;;  %s1738_s0 = sld [smem:[#allocation2 + $0x29]]  ;;  %v3070_v34 = vstv %s1745_s21 }
 0x7d4   :  { %v1188_v2 = vstv %s1738_s0 }
 0x826   :  { %v1222_v49 = vpop.permute.xlu1 %1221 }
 0x827   :  { %v1225_v58 = vsel %vm92_vm2, %v1222_v49, %v2875_v46  ;;  %v3075_v49 = vsel %vm39_vm4, %v2924_v35, 0.0 }
 0x828   :  { %1229 = vrot.lane.b32.xlu1 %v1225_v58, %s1857_s24 }
 0x829   :  { %v1224_v50 = vpop.permute.xlu0 %1223 }
 0x82a   :  { %v1226_v0 = vsel %vm92_vm2, %v1224_v50, %v2882_v9  ;;  %v3079_v50 = vmul.f32 %v2884_v24, %v1244_v13 }
 0x82b   :  { %1231 = vrot.lane.b32.xlu0 %v1226_v0, %s1857_s24 }
 0x82c   :  { %v1170_v56 = vpop.permute.xlu1 %1169 }
 0x82d   :  { %v1173_v23 = vsel %vm92_vm2, %v1170_v56, %v2894_v36  ;;  %v1246_v36 = vmul.f32 %v1244_v13, %v2882_v9 }
 0x82e   :  { %v1175_v63 = vsel %vm36_vm3, %v1173_v23, 0.0  ;;  %v3107_v23 = vstv %s3060_s26 }
 0x830   :  { %v1504_v53 = vpop.permute.xlu0 %1503  ;;  %v1172_v57 = vpop.permute.xlu1 %1171 }
 0x831   :  { %v1174_v33 = vsel %vm92_vm2, %v1172_v57, %v2906_v37  ;;  %v1507_v61 = vsel %vm92_vm2, %v1504_v53, %v2902_v52 }
 0x832   :  { %v1509_v38 = vsel %vm36_vm3, %v1507_v61, 0.0 }
 0x834   :  { %v1506_v48 = vpop.permute.xlu0 %1505  ;;  %v1556_v28 = vpop.permute.xlu1 %1555 }
 0x835   :  { %v1559_v14 = vsel %vm92_vm2, %v1556_v28, %v2884_v24  ;;  %v1508_v32 = vsel %vm92_vm2, %v1506_v48, %v2914_v21 }
 0x836   :  { %1563 = vrot.lane.b32.xlu1 %v1559_v14, %s1857_s24 }
 0x838   :  { %v1558_v15 = vpop.permute.xlu0 %1557  ;;  %v1276_v30 = vpop.permute.xlu1 %1275 }
 0x839   :  { %v1560_v41 = vsel %vm92_vm2, %v1558_v15, %v2890_v7  ;;  %v1278_v10 = vsel %vm92_vm2, %v1276_v30, %v2924_v35  ;;  %v3086_v35 = vmul.f32 %v2890_v7, %v1244_v13  ;;  %v1258_v7 = vstv %s3056_s1 }
 0x83a   :  { %1565 = vrot.lane.b32.xlu0 %v1560_v41, %s1857_s24  ;;  %1249 = vrot.lane.b32.xlu1 %v1225_v58, %s1858_s30  ;;  %v1280_v22 = vsel %vm39_vm4, %v1278_v10, 0.0  ;;  %v1158_v58 = vstv %s1737_s22  ;;  %v1210_v30 = vstv %s3058_s25 }
 0x83c   :  { %v1274_v17 = vpop.permute.xlu1 %1273  ;;  %v1610_v3 = vpop.permute.xlu0 %1609 }
 0x83d   :  { %v1277_v27 = vsel %vm92_vm2, %v1274_v17, %v2938_v12  ;;  %v1612_v42 = vsel %vm92_vm2, %v1610_v3, %v2934_v1 }
 0x83e   :  { %1251 = vrot.lane.b32.xlu0 %v1226_v0, %s1858_s30  ;;  %1583 = vrot.lane.b32.xlu1 %v1559_v14, %s1858_s30  ;;  %v1614_v40 = vsel %vm39_vm4, %v1612_v42, 0.0  ;;  %v1527_v0 = vsel %vm36_vm3, %v2902_v52, 0.0  ;;  %v3095_v52 = vmul.f32 %v3070_v34, %v2938_v12 }
 0x840   :  { %v1608_v62 = vpop.permute.xlu0 %1607 }
 0x841   :  { %v1611_v31 = vsel %vm92_vm2, %v1608_v62, %v2946_v47 }
 0x842   :  { %1585 = vrot.lane.b32.xlu0 %v1560_v41, %s1858_s30  ;;  %1283 = vrot.lane.b32.xlu1 %v1277_v27, %s1857_s24 }
 0x846   :  { %1181 = vrot.lane.b32.xlu0 %v1174_v33, %s1857_s24  ;;  %1179 = vrot.lane.b32.xlu1 %v1175_v63, %s1857_s24 }
 0x84a   :  { %1515 = vrot.lane.b32.xlu0 %v1508_v32, %s1857_s24  ;;  %1513 = vrot.lane.b32.xlu1 %v1509_v38, %s1857_s24 }
 0x84e   :  { %1203 = vrot.lane.b32.xlu0 %v1174_v33, %s1858_s30  ;;  %1201 = vrot.lane.b32.xlu1 %v1175_v63, %s1858_s30 }
 0x852   :  { %1537 = vrot.lane.b32.xlu0 %v1508_v32, %s1858_s30  ;;  %1535 = vrot.lane.b32.xlu1 %v1509_v38, %s1858_s30 }
 0x856   :  { %1285 = vrot.lane.b32.xlu0 %v1280_v22, %s1857_s24  ;;  %1617 = vrot.lane.b32.xlu1 %v1611_v31, %s1857_s24 }
 0x85a   :  { %1619 = vrot.lane.b32.xlu0 %v1614_v40, %s1857_s24  ;;  %1305 = vrot.lane.b32.xlu1 %v1277_v27, %s1858_s30  ;;  %s1739_s24 = sld [smem:[#allocation2 + $0x2a]] }
 0x85e   :  { %1307 = vrot.lane.b32.xlu0 %v1280_v22, %s1858_s30  ;;  %1639 = vrot.lane.b32.xlu1 %v1611_v31, %s1858_s30 }
 0x860   :  { %v1196_v25 = vstv %s1739_s24 }
 0x861   :  { %v1198_v53 = vmul.f32 %v1196_v25, %v2906_v37  ;;  %v1197_v57 = vmul.f32 %v1196_v25, %v1193_v44  ;;  %v1532_v54 = vmul.f32 %v2914_v21, %v1196_v25  ;;  %v1531_v41 = vmul.f32 %v1527_v0, %v1196_v25 }
 0x862   :  { %1641 = vrot.lane.b32.xlu0 %v1614_v40, %s1858_s30  ;;  %s3054_s30 = sld [smem:[#allocation2 + $0x2c]] }
 0x868   :  { %v1238_v15 = vstv %s3054_s30 }
 0x89a   :  { %v1230_v19 = vpop.permute.xlu1 %1229 }
 0x89b   :  { %v1235_v17 = vsel %vm40_vm5, %v1230_v19, 0.0 }
 0x89c   :  { %v1239_v31 = vmul.f32 %v1238_v15, %v1235_v17  ;;  %v1314_v17 = vstv %s3116_s27 }
 0x89d   :  { %v1232_v8 = vpop.permute.xlu0 %1231 }
 0x89e   :  { %v1236_v27 = vsel %vm40_vm5, %v1232_v8, 0.0 }
 0x89f   :  { %v1240_v42 = vmul.f32 %v1238_v15, %v1236_v27 }
 0x8a8   :  { %v1564_v60 = vpop.permute.xlu1 %1563 }
 0x8a9   :  { %v1569_v21 = vsel %vm40_vm5, %v1564_v60, 0.0 }
 0x8aa   :  { %v1573_v40 = vmul.f32 %v1569_v21, %v1238_v15 }
 0x8ac   :  { %v3042_v39 = vpop.permute.xlu0 %1565  ;;  %v3044_v26 = vpop.permute.xlu1 %1249 }
 0x8ad   :  { %v1570_v19 = vsel %vm40_vm5, %v3042_v39, 0.0  ;;  %v1255_v8 = vsel %vm41_vm6, %v3044_v26, 0.0 }
 0x8b0   :  { %v3046_v59 = vpop.permute.xlu0 %1251  ;;  %v3048_v4 = vpop.permute.xlu1 %1583 }
 0x8b1   :  { %v1256_v60 = vsel %vm41_vm6, %v3046_v59, 0.0  ;;  %v1589_v59 = vsel %vm41_vm6, %v3048_v4, 0.0 }
 0x8b2   :  { %v1260_v0 = vmul.f32 %v1258_v7, %v1256_v60 }
 0x8b4   :  { %v3050_v43 = vpop.permute.xlu0 %1585  ;;  %v3052_v5 = vpop.permute.xlu1 %1283 }
 0x8b8   :  { %v1182_v29 = vpop.permute.xlu0 %1181  ;;  %v1180_v16 = vpop.permute.xlu1 %1179 }
 0x8b9   :  { %v1186_v45 = vsel %vm40_vm5, %v1182_v29, 0.0  ;;  %v1185_v11 = vsel %vm40_vm5, %v1180_v16, 0.0 }
 0x8ba   :  { %v1190_v20 = vmul.f32 %v1188_v2, %v1186_v45  ;;  %v1189_v6 = vmul.f32 %v1188_v2, %v1185_v11 }
 0x8bc   :  { %v1516_v46 = vpop.permute.xlu0 %1515  ;;  %v1514_v56 = vpop.permute.xlu1 %1513  ;;  %v1192_v48 = vadd.f32 %v1190_v20, %v1158_v58  ;;  %v1191_v28 = vadd.f32 %v1189_v6, %v1158_v58 }
 0x8bd   :  { %v1520_v9 = vsel %vm40_vm5, %v1516_v46, 0.0  ;;  %v1519_v24 = vsel %vm40_vm5, %v1514_v56, 0.0  ;;  %v1289_v46 = vsel %vm40_vm5, %v3052_v5, 0.0 }
 0x8be   :  { %v1524_v37 = vmul.f32 %v1520_v9, %v1188_v2  ;;  %v1523_v14 = vmul.f32 %v1519_v24, %v1188_v2  ;;  %v1200_v3 = vadd.f32 %v1198_v53, %v1192_v48  ;;  %v1199_v62 = vadd.f32 %v1197_v57, %v1191_v28 }
 0x8bf   :  { %v1259_v48 = vmul.f32 %v1258_v7, %v1255_v8  ;;  %v1590_v28 = vsel %vm41_vm6, %v3050_v43, 0.0 }
 0x8c0   :  { %v1204_v12 = vpop.permute.xlu0 %1203  ;;  %v1202_v63 = vpop.permute.xlu1 %1201  ;;  %v1526_v33 = vadd.f32 %v1524_v37, %v1158_v58  ;;  %v1525_v61 = vadd.f32 %v1523_v14, %v1158_v58  ;;  %v1574_v58 = vmul.f32 %v1570_v19, %v1238_v15  ;;  %v1594_v27 = vmul.f32 %v1590_v28, %v1258_v7 }
 0x8c1   :  { %v1208_v38 = vsel %vm41_vm6, %v1204_v12, 0.0  ;;  %v1207_v32 = vsel %vm41_vm6, %v1202_v63, 0.0  ;;  %v1635_v19 = vmul.f32 %v2946_v47, %v3070_v34 }
 0x8c2   :  { %v1212_v10 = vmul.f32 %v1210_v30, %v1208_v38  ;;  %v1211_v22 = vmul.f32 %v1210_v30, %v1207_v32  ;;  %v1534_v44 = vadd.f32 %v1532_v54, %v1526_v33  ;;  %v1533_v11 = vadd.f32 %v1531_v41, %v1525_v61 }
 0x8c4   :  { %v1214_v2 = vadd.f32 %v1212_v10, %v1200_v3  ;;  %v1213_v13 = vadd.f32 %v1211_v22, %v1199_v62  ;;  %v1538_v29 = vpop.permute.xlu0 %1537  ;;  %v1536_v16 = vpop.permute.xlu1 %1535 }
 0x8c5   :  { %v1542_v45 = vsel %vm41_vm6, %v1538_v29, 0.0  ;;  %v1541_v39 = vsel %vm41_vm6, %v1536_v16, 0.0 }
 0x8c6   :  { %v1242_v25 = vadd.f32 %v1240_v42, %v1214_v2  ;;  %v1241_v20 = vadd.f32 %v1239_v31, %v1213_v13  ;;  %v1546_v6 = vmul.f32 %v1542_v45, %v1210_v30  ;;  %v1545_v26 = vmul.f32 %v1541_v39, %v1210_v30 }
 0x8c7   :  { %v1593_v30 = vmul.f32 %v1589_v59, %v1258_v7  ;;  %v1632_v31 = vsel %vm39_vm4, %v2934_v1, 0.0 }
 0x8c8   :  { %v1247_v56 = vadd.f32 %v1245_v51, %v1241_v20  ;;  %v1548_v53 = vadd.f32 %v1546_v6, %v1534_v44  ;;  %v1547_v57 = vadd.f32 %v1545_v26, %v1533_v11  ;;  %v1286_v9 = vpop.permute.xlu0 %1285  ;;  %v1248_v24 = vadd.f32 %v1246_v36, %v1242_v25  ;;  %v1618_v54 = vpop.permute.xlu1 %1617 }
 0x8c9   :  { %v1290_v37 = vsel %vm40_vm5, %v1286_v9, 0.0  ;;  %v1623_v4 = vsel %vm40_vm5, %v1618_v54, 0.0  ;;  %v1293_v36 = vmul.f32 %v3107_v23, %v1289_v46  ;;  %v1636_v45 = vmul.f32 %v1632_v31, %v3070_v34 }
 0x8ca   :  { %v1576_v14 = vadd.f32 %v1574_v58, %v1548_v53  ;;  %v1575_v5 = vadd.f32 %v1573_v40, %v1547_v57  ;;  %v1262_v51 = vadd.f32 %v1260_v0, %v1248_v24  ;;  %v1294_v15 = vmul.f32 %v3107_v23, %v1290_v37 }
 0x8cb   :  { %v1261_v41 = vadd.f32 %v1259_v48, %v1247_v56  ;;  %v1627_v43 = vmul.f32 %v1623_v4, %v3107_v23 }
 0x8cc   :  { %v1581_v21 = vadd.f32 %v3079_v50, %v1575_v5  ;;  %v1582_v12 = vadd.f32 %v3086_v35, %v1576_v14  ;;  %v1620_v63 = vpop.permute.xlu0 %1619  ;;  %v1306_v33 = vpop.permute.xlu1 %1305  ;;  %v1296_v61 = vadd.f32 %v1294_v15, %v1262_v51  ;;  %v1302_v35 = vmul.f32 %v3070_v34, %v3075_v49 }
 0x8cd   :  { %v1624_v38 = vsel %vm40_vm5, %v1620_v63, 0.0  ;;  %v1295_v32 = vadd.f32 %v1293_v36, %v1261_v41  ;;  %v1311_v3 = vsel %vm41_vm6, %v1306_v33, 0.0 }
 0x8ce   :  { %v1595_v10 = vadd.f32 %v1593_v30, %v1581_v21  ;;  %v1596_v62 = vadd.f32 %v1594_v27, %v1582_v12  ;;  %v1628_v7 = vmul.f32 %v1624_v38, %v3107_v23  ;;  %v1315_v22 = vmul.f32 %v1314_v17, %v1311_v3 }
 0x8cf   :  { %v1303_v50 = vadd.f32 %v3095_v52, %v1295_v32  ;;  %v1304_v2 = vadd.f32 %v1302_v35, %v1296_v61 }
 0x8d0   :  { %v1629_v42 = vadd.f32 %v1627_v43, %v1595_v10  ;;  %v1308_v40 = vpop.permute.xlu0 %1307  ;;  %v1640_v8 = vpop.permute.xlu1 %1639  ;;  %v1630_v13 = vadd.f32 %v1628_v7, %v1596_v62 }
 0x8d1   :  { %v1317_v60 = vadd.f32 %v1315_v22, %v1303_v50  ;;  %v1312_v23 = vsel %vm41_vm6, %v1308_v40, 0.0  ;;  %v1645_v52 = vsel %vm41_vm6, %v1640_v8, 0.0 }
 0x8d2   :  { %v1316_v49 = vmul.f32 %v1314_v17, %v1312_v23  ;;  %v1637_v29 = vadd.f32 %v1635_v19, %v1629_v42  ;;  %v1649_v16 = vmul.f32 %v1645_v52, %v1314_v17  ;;  %v1638_v20 = vadd.f32 %v1636_v45, %v1630_v13 }
 0x8d3   :  { %v1319_v55 = vmax.f32 %v1317_v60, 0.0 }
 0x8d4   :  { %v1318_v1 = vadd.f32 %v1316_v49, %v1304_v2  ;;  %v1651_v44 = vadd.f32 %v1649_v16, %v1637_v29  ;;  %v1642_v11 = vpop.permute.xlu0 %1641 }
 0x8d5   :  { %1321 = vst.msk [vmem:[#allocation5] sm:$0xff] %vm418_vm7, %v1319_v55  ;;  %v1646_v47 = vsel %vm41_vm6, %v1642_v11, 0.0 }
 0x8d6   :  { %v1320_v39 = vmax.f32 %v1318_v1, 0.0  ;;  %v1653_v25 = vmax.f32 %v1651_v44, 0.0  ;;  %v1650_v6 = vmul.f32 %v1646_v47, %v1314_v17 }
 0x8d8   :  { %1322 = vst.msk [vmem:[#allocation5 + $0x8] sm:$0xff] %vm418_vm7, %v1320_v39  ;;  %1656 = vst.msk [vmem:[#allocation5 + $0x10] sm:$0xff] %vm418_vm7, %v1653_v25  ;;  %v1652_v26 = vadd.f32 %v1650_v6, %v1638_v20 }
 0x8da   :  { %v1654_v58 = vmax.f32 %v1652_v26, 0.0 }
 0x8dc   :  { %1657 = vst.msk [vmem:[#allocation5 + $0x18] sm:$0xff] %vm418_vm7, %v1654_v58 }
 0x8dd   :  { %1840 = shalt.err (!%p1837_p9)
}
 0x8de   :  { %s1841_s5 = scalar_lea.hbm %s3187_s4, 512 }
 0x8df   :  { %p1842_p10 = scmp.ne.s32.totalorder %s3187_s4, %s1841_s5  ;;  %p1845_p11 = scmp.lt.u32.totalorder %s1841_s5, %s3187_s4 }
 0x8e1   :  { %p1847_p12 = pnand %p1845_p11, %p1842_p10 }
 0x8e3   :  { %1850 = shalt.err (!%p1847_p12)
}
 0x8e4   :  { %s1863_s10 = smov 128   ;;  %s1864_s11 = smov 8  }
 0x8e5   :  { %1669 = dma.vmem_to_hbm [thread:$0]  %s1664_s28, 512, %s3187_s4, [#allocation3], %s1863_s10, %s1863_s10, %s1864_s11  }
 0x8e6   :  { %1853 = dma.done.wait [#allocation3], 512  }
 0x8e7   :  { %1854 = vsyncadd [#allocation3], 4294966784 }
 0x8e8   :  { %1673 = vsyncpa [#allocation3], 1 }
 0x8e9   :  { %1674 = vsyncpa [#allocation4], 1 }

</bundles_post_ra>
